<compile_context>
chip_gen: v5e
topology: v5e:2x2
jax: 0.10.0
libtpu: 0.0.40
codegen_flags: <defaults>
</compile_context>

<pallas_src>
import functools

import jax
import jax.numpy as jnp
from jax.experimental import pallas as pl
from jax.experimental.pallas import tpu as pltpu

BN_EPS = 1e-5
LANE = 128          # channel / contraction dims zero-padded to multiples of the lane width
TILE_M_CAP = 512    # rows of the im2col matrix per matmul block (multiple of 8)
BN_ROWS_CAP = 2048  # rows per BN-epilogue block (multiple of 8)


# ------------------------------ small helpers ------------------------------ #

def _round_up(v, m):
    return (v + m - 1) // m * m


def _pad_ch(c):
    return max(LANE, _round_up(c, LANE))


@functools.lru_cache(maxsize=None)
def _vmem_limit_bytes():
    """Scoped-VMEM budget gated on the physical VMEM of the local TPU generation."""
    cap = 64 * 1024 * 1024
    try:
        info = pltpu.get_tpu_info()
        cap = int(getattr(info, "vmem_capacity_bytes", cap))
    except Exception:
        pass
    # 96 MiB on 128-MiB parts (v5e/v6e); 48 MiB on 64-MiB parts (v7x).
    return 96 * 1024 * 1024 if cap >= 128 * 1024 * 1024 else 48 * 1024 * 1024


def _matmul_vmem_bytes(tm, tk, cout):
    return (2 * tm * tk * 2        # x tile (bf16, double-buffered)
            + 2 * tk * cout * 2    # weight tile (bf16, conservatively double-buffered)
            + tm * cout * 4        # f32 accumulator scratch
            + 2 * tm * cout * 2    # bf16 conv_raw output (double-buffered)
            + 2 * 2 * cout * 4)    # per-tile stats


def _pick_matmul_tiles(m, k, cout):
    """TM capped, >=2 M tiles when possible (v7x dual TC); TK = full K when it fits."""
    budget = int(_vmem_limit_bytes() * 0.8)
    m8 = _round_up(m, 8)
    tm_cap = TILE_M_CAP
    if m8 >= 16:
        tm_cap = min(tm_cap, _round_up((m8 + 1) // 2, 8))
    tm = min(m8, tm_cap)
    if _matmul_vmem_bytes(tm, k, cout) <= budget:
        return tm, k               # full-K weight residency (no per-M-tile re-DMA)
    tk = LANE
    for cand in range(k - LANE, LANE - 1, -LANE):
        if k % cand == 0 and _matmul_vmem_bytes(tm, cand, cout) <= budget:
            tk = cand
            break
    return tm, tk


def _pick_bn_rows(m_pad, cout, extra_inputs=0):
    """Large, VMEM-budget-aware row tile for the mem-bound BN epilogue."""
    budget = int(_vmem_limit_bytes() * 0.8)
    per_row = 2 * (2 + 2 + 2 * extra_inputs) * cout + 64
    cap = max(8, min(BN_ROWS_CAP, (budget // per_row) // 8 * 8))
    limit = min(cap, m_pad)
    if m_pad >= 16 and m_pad % 16 == 0:
        limit = min(limit, m_pad // 2)   # keep >=2 tiles for dual-TC parts
    for t in range(limit, 7, -8):
        if m_pad % t == 0:
            return t
    return 8


# ----------------------------- Pallas kernels ------------------------------ #

def _matmul_stats_kernel(x_ref, w_ref, o_ref, stat_ref, acc_ref):
    """Tiled (TM,TK)x(TK,COUT) bf16 matmul on the MXU with an f32 VMEM accumulator.

    On the last K step it writes the conv-output tile (bf16) plus per-tile channel
    sum / sum-of-squares (f32, computed from the f32 accumulator) so global
    train-mode BatchNorm statistics can be reduced in JAX."""
    @pl.when(pl.program_id(1) == 0)
    def _():
        acc_ref[...] = jnp.zeros_like(acc_ref)

    acc_ref[...] += jnp.dot(x_ref[...], w_ref[...],
                            preferred_element_type=jnp.float32)

    @pl.when(pl.program_id(1) == pl.num_programs(1) - 1)
    def _():
        acc = acc_ref[...]
        o_ref[...] = acc.astype(o_ref.dtype)
        s1 = jnp.sum(acc, axis=0, keepdims=True)
        s2 = jnp.sum(acc * acc, axis=0, keepdims=True)
        stat_ref[...] = jnp.concatenate([s1, s2], axis=0)[None]   # single (1,2,COUT) store


def _bn_act_kernel(x_ref, sc_ref, sh_ref, o_ref, *, relu):
    y = x_ref[...].astype(jnp.float32) * sc_ref[...] + sh_ref[...]
    if relu:
        y = jnp.maximum(y, 0.0)
    o_ref[...] = y.astype(o_ref.dtype)


def _bn_add_relu_kernel(x_ref, sc_ref, sh_ref, r_ref, o_ref):
    y = (x_ref[...].astype(jnp.float32) * sc_ref[...] + sh_ref[...]
         + r_ref[...].astype(jnp.float32))
    o_ref[...] = jnp.maximum(y, 0.0).astype(o_ref.dtype)


def _avgpool_kernel(x_ref, o_ref):
    o_ref[...] = jnp.mean(x_ref[...].astype(jnp.float32), axis=1)


# --------------------------- pallas_call wrappers --------------------------- #

def _matmul_stats(xm, w, *, tm, tk):
    m_pad, k = xm.shape
    cout = w.shape[1]
    n_m, n_k = m_pad // tm, k // tk
    cost = pl.CostEstimate(
        flops=2 * m_pad * k * cout,
        transcendentals=0,
        bytes_accessed=(xm.size * xm.dtype.itemsize
                        + w.size * w.dtype.itemsize
                        + m_pad * cout * 2 + n_m * 2 * cout * 4))
    return pl.pallas_call(
        _matmul_stats_kernel,
        grid=(n_m, n_k),
        in_specs=[pl.BlockSpec((tm, tk), lambda i, j: (i, j)),
                  pl.BlockSpec((tk, cout), lambda i, j: (j, 0))],
        out_specs=[pl.BlockSpec((tm, cout), lambda i, j: (i, 0)),
                   pl.BlockSpec((1, 2, cout), lambda i, j: (i, 0, 0))],
        out_shape=[jax.ShapeDtypeStruct((m_pad, cout), jnp.bfloat16),
                   jax.ShapeDtypeStruct((n_m, 2, cout), jnp.float32)],
        scratch_shapes=[pltpu.VMEM((tm, cout), jnp.float32)],
        compiler_params=pltpu.CompilerParams(
            dimension_semantics=("parallel", "arbitrary"),
            vmem_limit_bytes=_vmem_limit_bytes()),
        cost_estimate=cost,
    )(xm, w)


def _bn_apply(conv_raw, scale, shift, residual, *, relu):
    m_pad, cout = conv_raw.shape
    tm = _pick_bn_rows(m_pad, cout, extra_inputs=0 if residual is None else 1)
    row = pl.BlockSpec((tm, cout), lambda i: (i, 0))
    vec = pl.BlockSpec((1, cout), lambda i: (0, 0))
    cp = pltpu.CompilerParams(dimension_semantics=("parallel",),
                              vmem_limit_bytes=_vmem_limit_bytes())
    out_shape = jax.ShapeDtypeStruct((m_pad, cout), jnp.bfloat16)
    if residual is not None:
        return pl.pallas_call(
            _bn_add_relu_kernel, grid=(m_pad // tm,),
            in_specs=[row, vec, vec, row], out_specs=row,
            out_shape=out_shape, compiler_params=cp,
        )(conv_raw, scale, shift, residual)
    return pl.pallas_call(
        functools.partial(_bn_act_kernel, relu=relu), grid=(m_pad // tm,),
        in_specs=[row, vec, vec], out_specs=row,
        out_shape=out_shape, compiler_params=cp,
    )(conv_raw, scale, shift)


# ------------------------------- JAX glue ---------------------------------- #

def _im2col(x, kh, kw, stride, pad):
    """x: (N,H,W,C) -> patches (N,Ho,Wo,kh*kw*C) in (tap, C) flat order."""
    n, h, w, c = x.shape
    xp = jnp.pad(x, ((0, 0), (pad, pad), (pad, pad), (0, 0)))
    ho = (h + 2 * pad - kh) // stride + 1
    wo = (w + 2 * pad - kw) // stride + 1
    cols = []
    for i in range(kh):
        for j in range(kw):
            cols.append(xp[:, i:i + (ho - 1) * stride + 1:stride,
                           j:j + (wo - 1) * stride + 1:stride, :])
    patches = jnp.stack(cols, axis=3)  # (N,Ho,Wo,kh*kw,C)
    return patches.reshape(n, ho, wo, kh * kw * c), ho, wo


def _conv_bn(x, p, *, stride, relu=True, residual=None):
    """Conv (tiled MXU matmul) + train-mode BatchNorm (+residual) (+ReLU)."""
    kh, kw, cin = p["kh"], p["kw"], p["cin"]
    w = p["w"]
    k_rows, cout = w.shape
    n = x.shape[0]
    if kh == 1 and kw == 1:
        # 1x1 conv consumes the lane-padded activation directly (K = padded cin).
        patches = x[:, ::stride, ::stride, :]
        ho, wo = patches.shape[1], patches.shape[2]
        k_real = patches.shape[-1]
    else:
        # TODO(synk): replace the materialized im2col with in-kernel shifted-window
        # accumulation (kh*kw per-tap dots into the f32 accumulator, sourced via
        # pl.ds / manual DMA) to avoid the kh*kw-fold HBM blow-up at full
        # 224x224 / base_width=64 shapes.
        pad = (kh - 1) // 2
        patches, ho, wo = _im2col(x[..., :cin], kh, kw, stride, pad)
        k_real = kh * kw * cin          # taps concatenated at real cin; K padded once
    m = n * ho * wo
    tm, tk = _pick_matmul_tiles(m, k_rows, cout)
    m_pad = _round_up(m, tm)

    xm = patches.reshape(m, k_real).astype(jnp.bfloat16)
    if m_pad != m or k_rows != k_real:
        # zero rows / columns have no effect on the conv output or the batch stats
        xm = jnp.pad(xm, ((0, m_pad - m), (0, k_rows - k_real)))

    conv_raw, stats = _matmul_stats(xm, w, tm=tm, tk=tk)

    # Global (not per-tile) batch statistics, reduced in JAX from the side output.
    ssum = jnp.sum(stats[:, 0, :], axis=0)
    ssq = jnp.sum(stats[:, 1, :], axis=0)
    mean = ssum / m
    var = jnp.maximum(ssq / m - mean * mean, 0.0)      # biased var, as in torch BN
    inv = jax.lax.rsqrt(var + BN_EPS)
    scale = (p["gamma"] * inv).reshape(1, cout)
    shift = (p["beta"] - mean * p["gamma"] * inv).reshape(1, cout)

    res = None
    if residual is not None:
        res = residual.reshape(m, cout)
        if m_pad != m:
            res = jnp.pad(res, ((0, m_pad - m), (0, 0)))

    out = _bn_apply(conv_raw, scale, shift, res, relu=relu)
    return out[:m].reshape(n, ho, wo, cout)


def _maxpool_3x3_s2(x):
    """3x3 stride-2 max pool: fold jnp.maximum over the 9 shifted strided views."""
    n, h, w, c = x.shape
    p, k, s = 1, 3, 2
    xp = jnp.pad(x, ((0, 0), (p, p), (p, p), (0, 0)), constant_values=-jnp.inf)
    ho = (h + 2 * p - k) // s + 1
    wo = (w + 2 * p - k) // s + 1
    out = None
    for i in range(k):
        for j in range(k):
            win = xp[:, i:i + (ho - 1) * s + 1:s, j:j + (wo - 1) * s + 1:s, :]
            out = win if out is None else jnp.maximum(out, win)
    return out


def _global_avg_pool(x):
    n, h, w, c = x.shape
    xm = x.reshape(n, h * w, c)
    return pl.pallas_call(
        _avgpool_kernel,
        grid=(1,),
        in_specs=[pl.BlockSpec((n, h * w, c), lambda i: (0, 0, 0))],
        out_specs=pl.BlockSpec((n, c), lambda i: (0, 0)),
        out_shape=jax.ShapeDtypeStruct((n, c), jnp.float32),
    )(xm)


# ---------------------------- Parameter setup ------------------------------ #

def _conv_params(key, kh, kw, cin, cout):
    """He-init conv weight laid out for the im2col matmul.

    1x1 convs consume the lane-padded activation directly (rows = padded cin).
    Spatial convs concatenate the kh*kw taps at the real cin and pad the contraction
    dim once to a multiple of 128 (no per-tap padding waste)."""
    cout_p = _pad_ch(cout)
    fan_in = kh * kw * cin
    w = jax.random.normal(key, (kh * kw, cin, cout), jnp.float32) * (2.0 / fan_in) ** 0.5
    if kh == 1 and kw == 1:
        cin_p = _pad_ch(cin)
        w = jnp.pad(w[0], ((0, cin_p - cin), (0, cout_p - cout)))
    else:
        k_real = kh * kw * cin
        k_rows = _round_up(k_real, LANE)
        w = jnp.pad(w.reshape(k_real, cout),
                    ((0, k_rows - k_real), (0, cout_p - cout)))
    return {"w": w.astype(jnp.bfloat16), "kh": kh, "kw": kw, "cin": cin,
            "gamma": jnp.ones((cout_p,), jnp.float32),   # BN weight
            "beta": jnp.zeros((cout_p,), jnp.float32)}   # BN bias


def init_image_encoder_params(key, base_width=8, in_chans=3):
    """ResNet-50 topology: stem + bottleneck stages [3,4,6,3], expansion 4."""
    layers = (3, 4, 6, 3)
    expansion = 4
    keys = iter(jax.random.split(key, 256))
    params = {"stem": _conv_params(next(keys), 7, 7, in_chans, base_width)}
    stages = []
    cin = base_width
    for si, nblocks in enumerate(layers):
        planes = base_width * (2 ** si)
        cout = planes * expansion
        blocks = []
        for bi in range(nblocks):
            blk = {
                "conv1": _conv_params(next(keys), 1, 1, cin, planes),
                "conv2": _conv_params(next(keys), 3, 3, planes, planes),
                "conv3": _conv_params(next(keys), 1, 1, planes, cout),
            }
            if bi == 0:
                blk["downsample"] = _conv_params(next(keys), 1, 1, cin, cout)
            blocks.append(blk)
            cin = cout
        stages.append(blocks)
    params["stages"] = stages
    params["embed_dim"] = base_width * 8 * expansion   # true (unpadded) embedding dim
    return params


# ------------------------------- Forward ----------------------------------- #

def image_encoder_forward(params, x_nchw):
    """Equivalent of ImageEncoder.forward: x (N,C,H,W) -> embeddings (N, D)."""
    x = jnp.transpose(x_nchw, (0, 2, 3, 1)).astype(jnp.bfloat16)  # NCHW -> NHWC
    cin = x.shape[-1]
    x = jnp.pad(x, ((0, 0), (0, 0), (0, 0), (0, _pad_ch(cin) - cin)))

    x = _conv_bn(x, params["stem"], stride=2, relu=True)
    x = _maxpool_3x3_s2(x)

    for si, blocks in enumerate(params["stages"]):
        for bi, blk in enumerate(blocks):
            stride = 2 if (si > 0 and bi == 0) else 1
            identity = x
            out = _conv_bn(x, blk["conv1"], stride=1, relu=True)
            out = _conv_bn(out, blk["conv2"], stride=stride, relu=True)
            if "downsample" in blk:
                identity = _conv_bn(x, blk["downsample"], stride=stride, relu=False)
            x = _conv_bn(out, blk["conv3"], stride=1, residual=identity)

    emb = _global_avg_pool(x)                # (N, padded C)
    return emb[:, :params["embed_dim"]]      # drop zero-padded channels


# --------------------------------- Main ------------------------------------ #

if __name__ == "__main__":
    key = jax.random.PRNGKey(0)
    pkey, xkey = jax.random.split(key)

    base_width = 8                      # scaled-down ResNet-50 widths (64 -> 2048-dim)
    params = init_image_encoder_params(pkey, base_width=base_width, in_chans=3)

    # PyTorch-convention NCHW input at small shapes.
    x = jax.random.normal(xkey, (2, 3, 16, 16), jnp.float32)

    encode = jax.jit(lambda inp: image_encoder_forward(params, inp))
    emb = jax.block_until_ready(encode(x))

    assert emb.shape == (2, base_width * 32), emb.shape
    assert bool(jnp.all(jnp.isfinite(emb)))
    print("KERNEL_OK")
</pallas_src>

<mosaic_0001>
module attributes {stable_mosaic.version = 11 : i64} {
  func.func @_matmul_stats_kernel(%arg0: i32, %arg1: i32, %arg2: memref<64x256xbf16, #tpu.memory_space<vmem>>, %arg3: memref<256x128xbf16, #tpu.memory_space<vmem>>, %arg4: memref<64x128xbf16, #tpu.memory_space<vmem>>, %arg5: memref<1x2x128xf32, #tpu.memory_space<vmem>>, %arg6: memref<64x128xf32, #tpu.memory_space<vmem>>) attributes {dimension_semantics = [#tpu.dimension_semantics<parallel>, #tpu.dimension_semantics<arbitrary>], iteration_bounds = array<i64: 2, 1>, scalar_prefetch = 0 : i64, scratch_operands = 1 : i64, tpu.core_type = #tpu.core_type<tc>, window_params = [{transform_indices = @transform_0, window_bounds = array<i64: 64, 256>}, {transform_indices = @transform_1, window_bounds = array<i64: 256, 128>}, {transform_indices = @transform_2, window_bounds = array<i64: 64, 128>}, {transform_indices = @transform_3, window_bounds = array<i64: 1, 2, 128>}]} {
    %c0_i32 = arith.constant 0 : i32
    %0 = arith.cmpi eq, %arg1, %c0_i32 : i32
    %1 = arith.extui %0 : i1 to i32
    %c0_i32_0 = arith.constant 0 : i32
    %2 = arith.cmpi ne, %1, %c0_i32_0 : i32
    scf.if %2 {
      %cst_10 = arith.constant 0.000000e+00 : f32
      %12 = vector.broadcast %cst_10 : f32 to vector<64x128xf32>
      %c0_11 = arith.constant 0 : index
      %c0_12 = arith.constant 0 : index
      %13 = vector.load %arg6[%c0_11, %c0_12] : memref<64x128xf32, #tpu.memory_space<vmem>>, vector<64x128xf32>
      tpu.vector_store %arg6[%c0_11, %c0_12], %12 {strides = array<i32>} : memref<64x128xf32, #tpu.memory_space<vmem>>, vector<64x128xf32>,
    } else {
    }
    %c0 = arith.constant 0 : index
    %c0_1 = arith.constant 0 : index
    %3 = vector.load %arg6[%c0, %c0_1] : memref<64x128xf32, #tpu.memory_space<vmem>>, vector<64x128xf32>
    %c0_2 = arith.constant 0 : index
    %c0_3 = arith.constant 0 : index
    %4 = vector.load %arg2[%c0_2, %c0_3] : memref<64x256xbf16, #tpu.memory_space<vmem>>, vector<64x256xbf16>
    %c0_4 = arith.constant 0 : index
    %c0_5 = arith.constant 0 : index
    %5 = vector.load %arg3[%c0_4, %c0_5] : memref<256x128xbf16, #tpu.memory_space<vmem>>, vector<256x128xbf16>
    %cst = arith.constant dense<0.000000e+00> : vector<64x128xf32>
    %6 = tpu.matmul %4, %5, %cst {dimension_numbers = #tpu.dot_dimension_numbers<[1], [0], [0], [1], [0, 0, 1, 1], [], []>} : vector<64x256xbf16>, vector<256x128xbf16>, vector<64x128xf32> -> vector<64x128xf32>
    %7 = arith.addf %3, %6 : vector<64x128xf32>
    %c0_6 = arith.constant 0 : index
    %c0_7 = arith.constant 0 : index
    %8 = vector.load %arg6[%c0_6, %c0_7] : memref<64x128xf32, #tpu.memory_space<vmem>>, vector<64x128xf32>
    tpu.vector_store %arg6[%c0_6, %c0_7], %7 {strides = array<i32>} : memref<64x128xf32, #tpu.memory_space<vmem>>, vector<64x128xf32>,
    %c0_i32_8 = arith.constant 0 : i32
    %9 = arith.cmpi eq, %arg1, %c0_i32_8 : i32
    %10 = arith.extui %9 : i1 to i32
    %c0_i32_9 = arith.constant 0 : i32
    %11 = arith.cmpi ne, %10, %c0_i32_9 : i32
    scf.if %11 {
      %c0_10 = arith.constant 0 : index
      %c0_11 = arith.constant 0 : index
      %12 = vector.load %arg6[%c0_10, %c0_11] : memref<64x128xf32, #tpu.memory_space<vmem>>, vector<64x128xf32>
      %13 = arith.truncf %12 : vector<64x128xf32> to vector<64x128xbf16>
      %c0_12 = arith.constant 0 : index
      %c0_13 = arith.constant 0 : index
      %14 = vector.load %arg4[%c0_12, %c0_13] : memref<64x128xbf16, #tpu.memory_space<vmem>>, vector<64x128xbf16>
      tpu.vector_store %arg4[%c0_12, %c0_13], %13 {strides = array<i32>} : memref<64x128xbf16, #tpu.memory_space<vmem>>, vector<64x128xbf16>,
      %cst_14 = arith.constant dense<0.000000e+00> : vector<128xf32>
      %15 = vector.multi_reduction <add>, %12, %cst_14 [0] : vector<64x128xf32> to vector<128xf32>
      %16 = vector.shape_cast %15 : vector<128xf32> to vector<1x128xf32>
      %17 = arith.mulf %12, %12 : vector<64x128xf32>
      %cst_15 = arith.constant dense<0.000000e+00> : vector<128xf32>
      %18 = vector.multi_reduction <add>, %17, %cst_15 [0] : vector<64x128xf32> to vector<128xf32>
      %19 = vector.shape_cast %18 : vector<128xf32> to vector<1x128xf32>
      %20 = tpu.concatenate %16, %19 in 0 : vector<1x128xf32>, vector<1x128xf32> -> vector<2x128xf32>
      %21 = vector.shape_cast %20 : vector<2x128xf32> to vector<1x2x128xf32>
      %c0_16 = arith.constant 0 : index
      %c0_17 = arith.constant 0 : index
      %c0_18 = arith.constant 0 : index
      %22 = vector.load %arg5[%c0_16, %c0_17, %c0_18] : memref<1x2x128xf32, #tpu.memory_space<vmem>>, vector<1x2x128xf32>
      tpu.vector_store %arg5[%c0_16, %c0_17, %c0_18], %21 {strides = array<i32>} : memref<1x2x128xf32, #tpu.memory_space<vmem>>, vector<1x2x128xf32>,
    } else {
    }
    return
  }
  func.func @transform_0(%arg0: i32, %arg1: i32) -> (i32, i32) {
    %c0_i32 = arith.constant 0 : i32
    return %arg0, %arg1 : i32, i32
  }
  func.func @transform_1(%arg0: i32, %arg1: i32) -> (i32, i32) {
    %c0_i32 = arith.constant 0 : i32
    %c0_i32_0 = arith.constant 0 : i32
    return %arg1, %c0_i32 : i32, i32
  }
  func.func @transform_2(%arg0: i32, %arg1: i32) -> (i32, i32) {
    %c0_i32 = arith.constant 0 : i32
    %c0_i32_0 = arith.constant 0 : i32
    return %arg0, %c0_i32 : i32, i32
  }
  func.func @transform_3(%arg0: i32, %arg1: i32) -> (i32, i32, i32) {
    %c0_i32 = arith.constant 0 : i32
    %c0_i32_0 = arith.constant 0 : i32
    %c0_i32_1 = arith.constant 0 : i32
    return %arg0, %c0_i32, %c0_i32_0 : i32, i32, i32
  }
}

module attributes {stable_mosaic.version = 11 : i64} {
  func.func @_bn_act_kernel(%arg0: i32, %arg1: memref<64x128xbf16, #tpu.memory_space<vmem>>, %arg2: memref<1x128xf32, #tpu.memory_space<vmem>>, %arg3: memref<1x128xf32, #tpu.memory_space<vmem>>, %arg4: memref<64x128xbf16, #tpu.memory_space<vmem>>) attributes {dimension_semantics = [#tpu.dimension_semantics<parallel>], iteration_bounds = array<i64: 2>, scalar_prefetch = 0 : i64, scratch_operands = 0 : i64, tpu.core_type = #tpu.core_type<tc>, window_params = [{transform_indices = @transform_0, window_bounds = array<i64: 64, 128>}, {pipeline_mode = #tpu.pipeline_mode<synchronous>, transform_indices = @transform_1, window_bounds = array<i64: 1, 128>}, {pipeline_mode = #tpu.pipeline_mode<synchronous>, transform_indices = @transform_2, window_bounds = array<i64: 1, 128>}, {transform_indices = @transform_3, window_bounds = array<i64: 64, 128>}]} {
    %c0 = arith.constant 0 : index
    %c0_0 = arith.constant 0 : index
    %0 = vector.load %arg1[%c0, %c0_0] : memref<64x128xbf16, #tpu.memory_space<vmem>>, vector<64x128xbf16>
    %1 = arith.extf %0 : vector<64x128xbf16> to vector<64x128xf32>
    %c0_1 = arith.constant 0 : index
    %c0_2 = arith.constant 0 : index
    %2 = vector.load %arg2[%c0_1, %c0_2] : memref<1x128xf32, #tpu.memory_space<vmem>>, vector<1x128xf32>
    %3 = vector.broadcast %2 : vector<1x128xf32> to vector<64x128xf32>
    %4 = arith.mulf %1, %3 : vector<64x128xf32>
    %c0_3 = arith.constant 0 : index
    %c0_4 = arith.constant 0 : index
    %5 = vector.load %arg3[%c0_3, %c0_4] : memref<1x128xf32, #tpu.memory_space<vmem>>, vector<1x128xf32>
    %6 = vector.broadcast %5 : vector<1x128xf32> to vector<64x128xf32>
    %7 = arith.addf %4, %6 : vector<64x128xf32>
    %cst = arith.constant 0.000000e+00 : f32
    %8 = vector.broadcast %cst : f32 to vector<64x128xf32>
    %9 = arith.maximumf %7, %8 : vector<64x128xf32>
    %10 = arith.truncf %9 : vector<64x128xf32> to vector<64x128xbf16>
    %c0_5 = arith.constant 0 : index
    %c0_6 = arith.constant 0 : index
    %11 = vector.load %arg4[%c0_5, %c0_6] : memref<64x128xbf16, #tpu.memory_space<vmem>>, vector<64x128xbf16>
    tpu.vector_store %arg4[%c0_5, %c0_6], %10 {strides = array<i32>} : memref<64x128xbf16, #tpu.memory_space<vmem>>, vector<64x128xbf16>,
    return
  }
  func.func @transform_0(%arg0: i32) -> (i32, i32) {
    %c0_i32 = arith.constant 0 : i32
    %c0_i32_0 = arith.constant 0 : i32
    return %arg0, %c0_i32 : i32, i32
  }
  func.func @transform_1(%arg0: i32) -> (i32, i32) {
    %c0_i32 = arith.constant 0 : i32
    %c0_i32_0 = arith.constant 0 : i32
    %c0_i32_1 = arith.constant 0 : i32
    return %c0_i32, %c0_i32_0 : i32, i32
  }
  func.func @transform_2(%arg0: i32) -> (i32, i32) {
    %c0_i32 = arith.constant 0 : i32
    %c0_i32_0 = arith.constant 0 : i32
    %c0_i32_1 = arith.constant 0 : i32
    return %c0_i32, %c0_i32_0 : i32, i32
  }
  func.func @transform_3(%arg0: i32) -> (i32, i32) {
    %c0_i32 = arith.constant 0 : i32
    %c0_i32_0 = arith.constant 0 : i32
    return %arg0, %c0_i32 : i32, i32
  }
}

module attributes {stable_mosaic.version = 11 : i64} {
  func.func @_bn_act_kernel(%arg0: i32, %arg1: memref<16x128xbf16, #tpu.memory_space<vmem>>, %arg2: memref<1x128xf32, #tpu.memory_space<vmem>>, %arg3: memref<1x128xf32, #tpu.memory_space<vmem>>, %arg4: memref<16x128xbf16, #tpu.memory_space<vmem>>) attributes {dimension_semantics = [#tpu.dimension_semantics<parallel>], iteration_bounds = array<i64: 2>, scalar_prefetch = 0 : i64, scratch_operands = 0 : i64, tpu.core_type = #tpu.core_type<tc>, window_params = [{transform_indices = @transform_0, window_bounds = array<i64: 16, 128>}, {pipeline_mode = #tpu.pipeline_mode<synchronous>, transform_indices = @transform_1, window_bounds = array<i64: 1, 128>}, {pipeline_mode = #tpu.pipeline_mode<synchronous>, transform_indices = @transform_2, window_bounds = array<i64: 1, 128>}, {transform_indices = @transform_3, window_bounds = array<i64: 16, 128>}]} {
    %c0 = arith.constant 0 : index
    %c0_0 = arith.constant 0 : index
    %0 = vector.load %arg1[%c0, %c0_0] : memref<16x128xbf16, #tpu.memory_space<vmem>>, vector<16x128xbf16>
    %1 = arith.extf %0 : vector<16x128xbf16> to vector<16x128xf32>
    %c0_1 = arith.constant 0 : index
    %c0_2 = arith.constant 0 : index
    %2 = vector.load %arg2[%c0_1, %c0_2] : memref<1x128xf32, #tpu.memory_space<vmem>>, vector<1x128xf32>
    %3 = vector.broadcast %2 : vector<1x128xf32> to vector<16x128xf32>
    %4 = arith.mulf %1, %3 : vector<16x128xf32>
    %c0_3 = arith.constant 0 : index
    %c0_4 = arith.constant 0 : index
    %5 = vector.load %arg3[%c0_3, %c0_4] : memref<1x128xf32, #tpu.memory_space<vmem>>, vector<1x128xf32>
    %6 = vector.broadcast %5 : vector<1x128xf32> to vector<16x128xf32>
    %7 = arith.addf %4, %6 : vector<16x128xf32>
    %8 = arith.truncf %7 : vector<16x128xf32> to vector<16x128xbf16>
    %c0_5 = arith.constant 0 : index
    %c0_6 = arith.constant 0 : index
    %9 = vector.load %arg4[%c0_5, %c0_6] : memref<16x128xbf16, #tpu.memory_space<vmem>>, vector<16x128xbf16>
    tpu.vector_store %arg4[%c0_5, %c0_6], %8 {strides = array<i32>} : memref<16x128xbf16, #tpu.memory_space<vmem>>, vector<16x128xbf16>,
    return
  }
  func.func @transform_0(%arg0: i32) -> (i32, i32) {
    %c0_i32 = arith.constant 0 : i32
    %c0_i32_0 = arith.constant 0 : i32
    return %arg0, %c0_i32 : i32, i32
  }
  func.func @transform_1(%arg0: i32) -> (i32, i32) {
    %c0_i32 = arith.constant 0 : i32
    %c0_i32_0 = arith.constant 0 : i32
    %c0_i32_1 = arith.constant 0 : i32
    return %c0_i32, %c0_i32_0 : i32, i32
  }
  func.func @transform_2(%arg0: i32) -> (i32, i32) {
    %c0_i32 = arith.constant 0 : i32
    %c0_i32_0 = arith.constant 0 : i32
    %c0_i32_1 = arith.constant 0 : i32
    return %c0_i32, %c0_i32_0 : i32, i32
  }
  func.func @transform_3(%arg0: i32) -> (i32, i32) {
    %c0_i32 = arith.constant 0 : i32
    %c0_i32_0 = arith.constant 0 : i32
    return %arg0, %c0_i32 : i32, i32
  }
}

module attributes {stable_mosaic.version = 11 : i64} {
  func.func @_matmul_stats_kernel(%arg0: i32, %arg1: i32, %arg2: memref<16x128xbf16, #tpu.memory_space<vmem>>, %arg3: memref<128x128xbf16, #tpu.memory_space<vmem>>, %arg4: memref<16x128xbf16, #tpu.memory_space<vmem>>, %arg5: memref<1x2x128xf32, #tpu.memory_space<vmem>>, %arg6: memref<16x128xf32, #tpu.memory_space<vmem>>) attributes {dimension_semantics = [#tpu.dimension_semantics<parallel>, #tpu.dimension_semantics<arbitrary>], iteration_bounds = array<i64: 2, 1>, scalar_prefetch = 0 : i64, scratch_operands = 1 : i64, tpu.core_type = #tpu.core_type<tc>, window_params = [{transform_indices = @transform_0, window_bounds = array<i64: 16, 128>}, {transform_indices = @transform_1, window_bounds = array<i64: 128, 128>}, {transform_indices = @transform_2, window_bounds = array<i64: 16, 128>}, {transform_indices = @transform_3, window_bounds = array<i64: 1, 2, 128>}]} {
    %c0_i32 = arith.constant 0 : i32
    %0 = arith.cmpi eq, %arg1, %c0_i32 : i32
    %1 = arith.extui %0 : i1 to i32
    %c0_i32_0 = arith.constant 0 : i32
    %2 = arith.cmpi ne, %1, %c0_i32_0 : i32
    scf.if %2 {
      %cst_10 = arith.constant 0.000000e+00 : f32
      %12 = vector.broadcast %cst_10 : f32 to vector<16x128xf32>
      %c0_11 = arith.constant 0 : index
      %c0_12 = arith.constant 0 : index
      %13 = vector.load %arg6[%c0_11, %c0_12] : memref<16x128xf32, #tpu.memory_space<vmem>>, vector<16x128xf32>
      tpu.vector_store %arg6[%c0_11, %c0_12], %12 {strides = array<i32>} : memref<16x128xf32, #tpu.memory_space<vmem>>, vector<16x128xf32>,
    } else {
    }
    %c0 = arith.constant 0 : index
    %c0_1 = arith.constant 0 : index
    %3 = vector.load %arg6[%c0, %c0_1] : memref<16x128xf32, #tpu.memory_space<vmem>>, vector<16x128xf32>
    %c0_2 = arith.constant 0 : index
    %c0_3 = arith.constant 0 : index
    %4 = vector.load %arg2[%c0_2, %c0_3] : memref<16x128xbf16, #tpu.memory_space<vmem>>, vector<16x128xbf16>
    %c0_4 = arith.constant 0 : index
    %c0_5 = arith.constant 0 : index
    %5 = vector.load %arg3[%c0_4, %c0_5] : memref<128x128xbf16, #tpu.memory_space<vmem>>, vector<128x128xbf16>
    %cst = arith.constant dense<0.000000e+00> : vector<16x128xf32>
    %6 = tpu.matmul %4, %5, %cst {dimension_numbers = #tpu.dot_dimension_numbers<[1], [0], [0], [1], [0, 0, 1, 1], [], []>} : vector<16x128xbf16>, vector<128x128xbf16>, vector<16x128xf32> -> vector<16x128xf32>
    %7 = arith.addf %3, %6 : vector<16x128xf32>
    %c0_6 = arith.constant 0 : index
    %c0_7 = arith.constant 0 : index
    %8 = vector.load %arg6[%c0_6, %c0_7] : memref<16x128xf32, #tpu.memory_space<vmem>>, vector<16x128xf32>
    tpu.vector_store %arg6[%c0_6, %c0_7], %7 {strides = array<i32>} : memref<16x128xf32, #tpu.memory_space<vmem>>, vector<16x128xf32>,
    %c0_i32_8 = arith.constant 0 : i32
    %9 = arith.cmpi eq, %arg1, %c0_i32_8 : i32
    %10 = arith.extui %9 : i1 to i32
    %c0_i32_9 = arith.constant 0 : i32
    %11 = arith.cmpi ne, %10, %c0_i32_9 : i32
    scf.if %11 {
      %c0_10 = arith.constant 0 : index
      %c0_11 = arith.constant 0 : index
      %12 = vector.load %arg6[%c0_10, %c0_11] : memref<16x128xf32, #tpu.memory_space<vmem>>, vector<16x128xf32>
      %13 = arith.truncf %12 : vector<16x128xf32> to vector<16x128xbf16>
      %c0_12 = arith.constant 0 : index
      %c0_13 = arith.constant 0 : index
      %14 = vector.load %arg4[%c0_12, %c0_13] : memref<16x128xbf16, #tpu.memory_space<vmem>>, vector<16x128xbf16>
      tpu.vector_store %arg4[%c0_12, %c0_13], %13 {strides = array<i32>} : memref<16x128xbf16, #tpu.memory_space<vmem>>, vector<16x128xbf16>,
      %cst_14 = arith.constant dense<0.000000e+00> : vector<128xf32>
      %15 = vector.multi_reduction <add>, %12, %cst_14 [0] : vector<16x128xf32> to vector<128xf32>
      %16 = vector.shape_cast %15 : vector<128xf32> to vector<1x128xf32>
      %17 = arith.mulf %12, %12 : vector<16x128xf32>
      %cst_15 = arith.constant dense<0.000000e+00> : vector<128xf32>
      %18 = vector.multi_reduction <add>, %17, %cst_15 [0] : vector<16x128xf32> to vector<128xf32>
      %19 = vector.shape_cast %18 : vector<128xf32> to vector<1x128xf32>
      %20 = tpu.concatenate %16, %19 in 0 : vector<1x128xf32>, vector<1x128xf32> -> vector<2x128xf32>
      %21 = vector.shape_cast %20 : vector<2x128xf32> to vector<1x2x128xf32>
      %c0_16 = arith.constant 0 : index
      %c0_17 = arith.constant 0 : index
      %c0_18 = arith.constant 0 : index
      %22 = vector.load %arg5[%c0_16, %c0_17, %c0_18] : memref<1x2x128xf32, #tpu.memory_space<vmem>>, vector<1x2x128xf32>
      tpu.vector_store %arg5[%c0_16, %c0_17, %c0_18], %21 {strides = array<i32>} : memref<1x2x128xf32, #tpu.memory_space<vmem>>, vector<1x2x128xf32>,
    } else {
    }
    return
  }
  func.func @transform_0(%arg0: i32, %arg1: i32) -> (i32, i32) {
    %c0_i32 = arith.constant 0 : i32
    return %arg0, %arg1 : i32, i32
  }
  func.func @transform_1(%arg0: i32, %arg1: i32) -> (i32, i32) {
    %c0_i32 = arith.constant 0 : i32
    %c0_i32_0 = arith.constant 0 : i32
    return %arg1, %c0_i32 : i32, i32
  }
  func.func @transform_2(%arg0: i32, %arg1: i32) -> (i32, i32) {
    %c0_i32 = arith.constant 0 : i32
    %c0_i32_0 = arith.constant 0 : i32
    return %arg0, %c0_i32 : i32, i32
  }
  func.func @transform_3(%arg0: i32, %arg1: i32) -> (i32, i32, i32) {
    %c0_i32 = arith.constant 0 : i32
    %c0_i32_0 = arith.constant 0 : i32
    %c0_i32_1 = arith.constant 0 : i32
    return %arg0, %c0_i32, %c0_i32_0 : i32, i32, i32
  }
}

module attributes {stable_mosaic.version = 11 : i64} {
  func.func @_bn_act_kernel(%arg0: i32, %arg1: memref<16x128xbf16, #tpu.memory_space<vmem>>, %arg2: memref<1x128xf32, #tpu.memory_space<vmem>>, %arg3: memref<1x128xf32, #tpu.memory_space<vmem>>, %arg4: memref<16x128xbf16, #tpu.memory_space<vmem>>) attributes {dimension_semantics = [#tpu.dimension_semantics<parallel>], iteration_bounds = array<i64: 2>, scalar_prefetch = 0 : i64, scratch_operands = 0 : i64, tpu.core_type = #tpu.core_type<tc>, window_params = [{transform_indices = @transform_0, window_bounds = array<i64: 16, 128>}, {pipeline_mode = #tpu.pipeline_mode<synchronous>, transform_indices = @transform_1, window_bounds = array<i64: 1, 128>}, {pipeline_mode = #tpu.pipeline_mode<synchronous>, transform_indices = @transform_2, window_bounds = array<i64: 1, 128>}, {transform_indices = @transform_3, window_bounds = array<i64: 16, 128>}]} {
    %c0 = arith.constant 0 : index
    %c0_0 = arith.constant 0 : index
    %0 = vector.load %arg1[%c0, %c0_0] : memref<16x128xbf16, #tpu.memory_space<vmem>>, vector<16x128xbf16>
    %1 = arith.extf %0 : vector<16x128xbf16> to vector<16x128xf32>
    %c0_1 = arith.constant 0 : index
    %c0_2 = arith.constant 0 : index
    %2 = vector.load %arg2[%c0_1, %c0_2] : memref<1x128xf32, #tpu.memory_space<vmem>>, vector<1x128xf32>
    %3 = vector.broadcast %2 : vector<1x128xf32> to vector<16x128xf32>
    %4 = arith.mulf %1, %3 : vector<16x128xf32>
    %c0_3 = arith.constant 0 : index
    %c0_4 = arith.constant 0 : index
    %5 = vector.load %arg3[%c0_3, %c0_4] : memref<1x128xf32, #tpu.memory_space<vmem>>, vector<1x128xf32>
    %6 = vector.broadcast %5 : vector<1x128xf32> to vector<16x128xf32>
    %7 = arith.addf %4, %6 : vector<16x128xf32>
    %cst = arith.constant 0.000000e+00 : f32
    %8 = vector.broadcast %cst : f32 to vector<16x128xf32>
    %9 = arith.maximumf %7, %8 : vector<16x128xf32>
    %10 = arith.truncf %9 : vector<16x128xf32> to vector<16x128xbf16>
    %c0_5 = arith.constant 0 : index
    %c0_6 = arith.constant 0 : index
    %11 = vector.load %arg4[%c0_5, %c0_6] : memref<16x128xbf16, #tpu.memory_space<vmem>>, vector<16x128xbf16>
    tpu.vector_store %arg4[%c0_5, %c0_6], %10 {strides = array<i32>} : memref<16x128xbf16, #tpu.memory_space<vmem>>, vector<16x128xbf16>,
    return
  }
  func.func @transform_0(%arg0: i32) -> (i32, i32) {
    %c0_i32 = arith.constant 0 : i32
    %c0_i32_0 = arith.constant 0 : i32
    return %arg0, %c0_i32 : i32, i32
  }
  func.func @transform_1(%arg0: i32) -> (i32, i32) {
    %c0_i32 = arith.constant 0 : i32
    %c0_i32_0 = arith.constant 0 : i32
    %c0_i32_1 = arith.constant 0 : i32
    return %c0_i32, %c0_i32_0 : i32, i32
  }
  func.func @transform_2(%arg0: i32) -> (i32, i32) {
    %c0_i32 = arith.constant 0 : i32
    %c0_i32_0 = arith.constant 0 : i32
    %c0_i32_1 = arith.constant 0 : i32
    return %c0_i32, %c0_i32_0 : i32, i32
  }
  func.func @transform_3(%arg0: i32) -> (i32, i32) {
    %c0_i32 = arith.constant 0 : i32
    %c0_i32_0 = arith.constant 0 : i32
    return %arg0, %c0_i32 : i32, i32
  }
}

module attributes {stable_mosaic.version = 11 : i64} {
  func.func @_bn_add_relu_kernel(%arg0: i32, %arg1: memref<16x128xbf16, #tpu.memory_space<vmem>>, %arg2: memref<1x128xf32, #tpu.memory_space<vmem>>, %arg3: memref<1x128xf32, #tpu.memory_space<vmem>>, %arg4: memref<16x128xbf16, #tpu.memory_space<vmem>>, %arg5: memref<16x128xbf16, #tpu.memory_space<vmem>>) attributes {dimension_semantics = [#tpu.dimension_semantics<parallel>], iteration_bounds = array<i64: 2>, scalar_prefetch = 0 : i64, scratch_operands = 0 : i64, tpu.core_type = #tpu.core_type<tc>, window_params = [{transform_indices = @transform_0, window_bounds = array<i64: 16, 128>}, {pipeline_mode = #tpu.pipeline_mode<synchronous>, transform_indices = @transform_1, window_bounds = array<i64: 1, 128>}, {pipeline_mode = #tpu.pipeline_mode<synchronous>, transform_indices = @transform_2, window_bounds = array<i64: 1, 128>}, {transform_indices = @transform_3, window_bounds = array<i64: 16, 128>}, {transform_indices = @transform_4, window_bounds = array<i64: 16, 128>}]} {
    %c0 = arith.constant 0 : index
    %c0_0 = arith.constant 0 : index
    %0 = vector.load %arg1[%c0, %c0_0] : memref<16x128xbf16, #tpu.memory_space<vmem>>, vector<16x128xbf16>
    %1 = arith.extf %0 : vector<16x128xbf16> to vector<16x128xf32>
    %c0_1 = arith.constant 0 : index
    %c0_2 = arith.constant 0 : index
    %2 = vector.load %arg2[%c0_1, %c0_2] : memref<1x128xf32, #tpu.memory_space<vmem>>, vector<1x128xf32>
    %3 = vector.broadcast %2 : vector<1x128xf32> to vector<16x128xf32>
    %4 = arith.mulf %1, %3 : vector<16x128xf32>
    %c0_3 = arith.constant 0 : index
    %c0_4 = arith.constant 0 : index
    %5 = vector.load %arg3[%c0_3, %c0_4] : memref<1x128xf32, #tpu.memory_space<vmem>>, vector<1x128xf32>
    %6 = vector.broadcast %5 : vector<1x128xf32> to vector<16x128xf32>
    %7 = arith.addf %4, %6 : vector<16x128xf32>
    %c0_5 = arith.constant 0 : index
    %c0_6 = arith.constant 0 : index
    %8 = vector.load %arg4[%c0_5, %c0_6] : memref<16x128xbf16, #tpu.memory_space<vmem>>, vector<16x128xbf16>
    %9 = arith.extf %8 : vector<16x128xbf16> to vector<16x128xf32>
    %10 = arith.addf %7, %9 : vector<16x128xf32>
    %cst = arith.constant 0.000000e+00 : f32
    %11 = vector.broadcast %cst : f32 to vector<16x128xf32>
    %12 = arith.maximumf %10, %11 : vector<16x128xf32>
    %13 = arith.truncf %12 : vector<16x128xf32> to vector<16x128xbf16>
    %c0_7 = arith.constant 0 : index
    %c0_8 = arith.constant 0 : index
    %14 = vector.load %arg5[%c0_7, %c0_8] : memref<16x128xbf16, #tpu.memory_space<vmem>>, vector<16x128xbf16>
    tpu.vector_store %arg5[%c0_7, %c0_8], %13 {strides = array<i32>} : memref<16x128xbf16, #tpu.memory_space<vmem>>, vector<16x128xbf16>,
    return
  }
  func.func @transform_0(%arg0: i32) -> (i32, i32) {
    %c0_i32 = arith.constant 0 : i32
    %c0_i32_0 = arith.constant 0 : i32
    return %arg0, %c0_i32 : i32, i32
  }
  func.func @transform_1(%arg0: i32) -> (i32, i32) {
    %c0_i32 = arith.constant 0 : i32
    %c0_i32_0 = arith.constant 0 : i32
    %c0_i32_1 = arith.constant 0 : i32
    return %c0_i32, %c0_i32_0 : i32, i32
  }
  func.func @transform_2(%arg0: i32) -> (i32, i32) {
    %c0_i32 = arith.constant 0 : i32
    %c0_i32_0 = arith.constant 0 : i32
    %c0_i32_1 = arith.constant 0 : i32
    return %c0_i32, %c0_i32_0 : i32, i32
  }
  func.func @transform_3(%arg0: i32) -> (i32, i32) {
    %c0_i32 = arith.constant 0 : i32
    %c0_i32_0 = arith.constant 0 : i32
    return %arg0, %c0_i32 : i32, i32
  }
  func.func @transform_4(%arg0: i32) -> (i32, i32) {
    %c0_i32 = arith.constant 0 : i32
    %c0_i32_0 = arith.constant 0 : i32
    return %arg0, %c0_i32 : i32, i32
  }
}

module attributes {stable_mosaic.version = 11 : i64} {
  func.func @_matmul_stats_kernel(%arg0: i32, %arg1: i32, %arg2: memref<8x128xbf16, #tpu.memory_space<vmem>>, %arg3: memref<128x128xbf16, #tpu.memory_space<vmem>>, %arg4: memref<8x128xbf16, #tpu.memory_space<vmem>>, %arg5: memref<1x2x128xf32, #tpu.memory_space<vmem>>, %arg6: memref<8x128xf32, #tpu.memory_space<vmem>>) attributes {dimension_semantics = [#tpu.dimension_semantics<parallel>, #tpu.dimension_semantics<arbitrary>], iteration_bounds = array<i64: 1, 1>, scalar_prefetch = 0 : i64, scratch_operands = 1 : i64, tpu.core_type = #tpu.core_type<tc>, window_params = [{transform_indices = @transform_0, window_bounds = array<i64: 8, 128>}, {transform_indices = @transform_1, window_bounds = array<i64: 128, 128>}, {transform_indices = @transform_2, window_bounds = array<i64: 8, 128>}, {transform_indices = @transform_3, window_bounds = array<i64: 1, 2, 128>}]} {
    %c0_i32 = arith.constant 0 : i32
    %0 = arith.cmpi eq, %arg1, %c0_i32 : i32
    %1 = arith.extui %0 : i1 to i32
    %c0_i32_0 = arith.constant 0 : i32
    %2 = arith.cmpi ne, %1, %c0_i32_0 : i32
    scf.if %2 {
      %cst_10 = arith.constant 0.000000e+00 : f32
      %12 = vector.broadcast %cst_10 : f32 to vector<8x128xf32>
      %c0_11 = arith.constant 0 : index
      %c0_12 = arith.constant 0 : index
      %13 = vector.load %arg6[%c0_11, %c0_12] : memref<8x128xf32, #tpu.memory_space<vmem>>, vector<8x128xf32>
      tpu.vector_store %arg6[%c0_11, %c0_12], %12 {strides = array<i32>} : memref<8x128xf32, #tpu.memory_space<vmem>>, vector<8x128xf32>,
    } else {
    }
    %c0 = arith.constant 0 : index
    %c0_1 = arith.constant 0 : index
    %3 = vector.load %arg6[%c0, %c0_1] : memref<8x128xf32, #tpu.memory_space<vmem>>, vector<8x128xf32>
    %c0_2 = arith.constant 0 : index
    %c0_3 = arith.constant 0 : index
    %4 = vector.load %arg2[%c0_2, %c0_3] : memref<8x128xbf16, #tpu.memory_space<vmem>>, vector<8x128xbf16>
    %c0_4 = arith.constant 0 : index
    %c0_5 = arith.constant 0 : index
    %5 = vector.load %arg3[%c0_4, %c0_5] : memref<128x128xbf16, #tpu.memory_space<vmem>>, vector<128x128xbf16>
    %cst = arith.constant dense<0.000000e+00> : vector<8x128xf32>
    %6 = tpu.matmul %4, %5, %cst {dimension_numbers = #tpu.dot_dimension_numbers<[1], [0], [0], [1], [0, 0, 1, 1], [], []>} : vector<8x128xbf16>, vector<128x128xbf16>, vector<8x128xf32> -> vector<8x128xf32>
    %7 = arith.addf %3, %6 : vector<8x128xf32>
    %c0_6 = arith.constant 0 : index
    %c0_7 = arith.constant 0 : index
    %8 = vector.load %arg6[%c0_6, %c0_7] : memref<8x128xf32, #tpu.memory_space<vmem>>, vector<8x128xf32>
    tpu.vector_store %arg6[%c0_6, %c0_7], %7 {strides = array<i32>} : memref<8x128xf32, #tpu.memory_space<vmem>>, vector<8x128xf32>,
    %c0_i32_8 = arith.constant 0 : i32
    %9 = arith.cmpi eq, %arg1, %c0_i32_8 : i32
    %10 = arith.extui %9 : i1 to i32
    %c0_i32_9 = arith.constant 0 : i32
    %11 = arith.cmpi ne, %10, %c0_i32_9 : i32
    scf.if %11 {
      %c0_10 = arith.constant 0 : index
      %c0_11 = arith.constant 0 : index
      %12 = vector.load %arg6[%c0_10, %c0_11] : memref<8x128xf32, #tpu.memory_space<vmem>>, vector<8x128xf32>
      %13 = arith.truncf %12 : vector<8x128xf32> to vector<8x128xbf16>
      %c0_12 = arith.constant 0 : index
      %c0_13 = arith.constant 0 : index
      %14 = vector.load %arg4[%c0_12, %c0_13] : memref<8x128xbf16, #tpu.memory_space<vmem>>, vector<8x128xbf16>
      tpu.vector_store %arg4[%c0_12, %c0_13], %13 {strides = array<i32>} : memref<8x128xbf16, #tpu.memory_space<vmem>>, vector<8x128xbf16>,
      %cst_14 = arith.constant dense<0.000000e+00> : vector<128xf32>
      %15 = vector.multi_reduction <add>, %12, %cst_14 [0] : vector<8x128xf32> to vector<128xf32>
      %16 = vector.shape_cast %15 : vector<128xf32> to vector<1x128xf32>
      %17 = arith.mulf %12, %12 : vector<8x128xf32>
      %cst_15 = arith.constant dense<0.000000e+00> : vector<128xf32>
      %18 = vector.multi_reduction <add>, %17, %cst_15 [0] : vector<8x128xf32> to vector<128xf32>
      %19 = vector.shape_cast %18 : vector<128xf32> to vector<1x128xf32>
      %20 = tpu.concatenate %16, %19 in 0 : vector<1x128xf32>, vector<1x128xf32> -> vector<2x128xf32>
      %21 = vector.shape_cast %20 : vector<2x128xf32> to vector<1x2x128xf32>
      %c0_16 = arith.constant 0 : index
      %c0_17 = arith.constant 0 : index
      %c0_18 = arith.constant 0 : index
      %22 = vector.load %arg5[%c0_16, %c0_17, %c0_18] : memref<1x2x128xf32, #tpu.memory_space<vmem>>, vector<1x2x128xf32>
      tpu.vector_store %arg5[%c0_16, %c0_17, %c0_18], %21 {strides = array<i32>} : memref<1x2x128xf32, #tpu.memory_space<vmem>>, vector<1x2x128xf32>,
    } else {
    }
    return
  }
  func.func @transform_0(%arg0: i32, %arg1: i32) -> (i32, i32) {
    %c0_i32 = arith.constant 0 : i32
    return %arg0, %arg1 : i32, i32
  }
  func.func @transform_1(%arg0: i32, %arg1: i32) -> (i32, i32) {
    %c0_i32 = arith.constant 0 : i32
    %c0_i32_0 = arith.constant 0 : i32
    return %arg1, %c0_i32 : i32, i32
  }
  func.func @transform_2(%arg0: i32, %arg1: i32) -> (i32, i32) {
    %c0_i32 = arith.constant 0 : i32
    %c0_i32_0 = arith.constant 0 : i32
    return %arg0, %c0_i32 : i32, i32
  }
  func.func @transform_3(%arg0: i32, %arg1: i32) -> (i32, i32, i32) {
    %c0_i32 = arith.constant 0 : i32
    %c0_i32_0 = arith.constant 0 : i32
    %c0_i32_1 = arith.constant 0 : i32
    return %arg0, %c0_i32, %c0_i32_0 : i32, i32, i32
  }
}

module attributes {stable_mosaic.version = 11 : i64} {
  func.func @_bn_act_kernel(%arg0: i32, %arg1: memref<8x128xbf16, #tpu.memory_space<vmem>>, %arg2: memref<1x128xf32, #tpu.memory_space<vmem>>, %arg3: memref<1x128xf32, #tpu.memory_space<vmem>>, %arg4: memref<8x128xbf16, #tpu.memory_space<vmem>>) attributes {dimension_semantics = [#tpu.dimension_semantics<parallel>], iteration_bounds = array<i64: 1>, scalar_prefetch = 0 : i64, scratch_operands = 0 : i64, tpu.core_type = #tpu.core_type<tc>, window_params = [{transform_indices = @transform_0, window_bounds = array<i64: 8, 128>}, {pipeline_mode = #tpu.pipeline_mode<synchronous>, transform_indices = @transform_1, window_bounds = array<i64: 1, 128>}, {pipeline_mode = #tpu.pipeline_mode<synchronous>, transform_indices = @transform_2, window_bounds = array<i64: 1, 128>}, {transform_indices = @transform_3, window_bounds = array<i64: 8, 128>}]} {
    %c0 = arith.constant 0 : index
    %c0_0 = arith.constant 0 : index
    %0 = vector.load %arg1[%c0, %c0_0] : memref<8x128xbf16, #tpu.memory_space<vmem>>, vector<8x128xbf16>
    %1 = arith.extf %0 : vector<8x128xbf16> to vector<8x128xf32>
    %c0_1 = arith.constant 0 : index
    %c0_2 = arith.constant 0 : index
    %2 = vector.load %arg2[%c0_1, %c0_2] : memref<1x128xf32, #tpu.memory_space<vmem>>, vector<1x128xf32>
    %3 = vector.broadcast %2 : vector<1x128xf32> to vector<8x128xf32>
    %4 = arith.mulf %1, %3 : vector<8x128xf32>
    %c0_3 = arith.constant 0 : index
    %c0_4 = arith.constant 0 : index
    %5 = vector.load %arg3[%c0_3, %c0_4] : memref<1x128xf32, #tpu.memory_space<vmem>>, vector<1x128xf32>
    %6 = vector.broadcast %5 : vector<1x128xf32> to vector<8x128xf32>
    %7 = arith.addf %4, %6 : vector<8x128xf32>
    %8 = arith.truncf %7 : vector<8x128xf32> to vector<8x128xbf16>
    %c0_5 = arith.constant 0 : index
    %c0_6 = arith.constant 0 : index
    %9 = vector.load %arg4[%c0_5, %c0_6] : memref<8x128xbf16, #tpu.memory_space<vmem>>, vector<8x128xbf16>
    tpu.vector_store %arg4[%c0_5, %c0_6], %8 {strides = array<i32>} : memref<8x128xbf16, #tpu.memory_space<vmem>>, vector<8x128xbf16>,
    return
  }
  func.func @transform_0(%arg0: i32) -> (i32, i32) {
    %c0_i32 = arith.constant 0 : i32
    %c0_i32_0 = arith.constant 0 : i32
    return %arg0, %c0_i32 : i32, i32
  }
  func.func @transform_1(%arg0: i32) -> (i32, i32) {
    %c0_i32 = arith.constant 0 : i32
    %c0_i32_0 = arith.constant 0 : i32
    %c0_i32_1 = arith.constant 0 : i32
    return %c0_i32, %c0_i32_0 : i32, i32
  }
  func.func @transform_2(%arg0: i32) -> (i32, i32) {
    %c0_i32 = arith.constant 0 : i32
    %c0_i32_0 = arith.constant 0 : i32
    %c0_i32_1 = arith.constant 0 : i32
    return %c0_i32, %c0_i32_0 : i32, i32
  }
  func.func @transform_3(%arg0: i32) -> (i32, i32) {
    %c0_i32 = arith.constant 0 : i32
    %c0_i32_0 = arith.constant 0 : i32
    return %arg0, %c0_i32 : i32, i32
  }
}

module attributes {stable_mosaic.version = 11 : i64} {
  func.func @_matmul_stats_kernel(%arg0: i32, %arg1: i32, %arg2: memref<8x256xbf16, #tpu.memory_space<vmem>>, %arg3: memref<256x128xbf16, #tpu.memory_space<vmem>>, %arg4: memref<8x128xbf16, #tpu.memory_space<vmem>>, %arg5: memref<1x2x128xf32, #tpu.memory_space<vmem>>, %arg6: memref<8x128xf32, #tpu.memory_space<vmem>>) attributes {dimension_semantics = [#tpu.dimension_semantics<parallel>, #tpu.dimension_semantics<arbitrary>], iteration_bounds = array<i64: 1, 1>, scalar_prefetch = 0 : i64, scratch_operands = 1 : i64, tpu.core_type = #tpu.core_type<tc>, window_params = [{transform_indices = @transform_0, window_bounds = array<i64: 8, 256>}, {transform_indices = @transform_1, window_bounds = array<i64: 256, 128>}, {transform_indices = @transform_2, window_bounds = array<i64: 8, 128>}, {transform_indices = @transform_3, window_bounds = array<i64: 1, 2, 128>}]} {
    %c0_i32 = arith.constant 0 : i32
    %0 = arith.cmpi eq, %arg1, %c0_i32 : i32
    %1 = arith.extui %0 : i1 to i32
    %c0_i32_0 = arith.constant 0 : i32
    %2 = arith.cmpi ne, %1, %c0_i32_0 : i32
    scf.if %2 {
      %cst_10 = arith.constant 0.000000e+00 : f32
      %12 = vector.broadcast %cst_10 : f32 to vector<8x128xf32>
      %c0_11 = arith.constant 0 : index
      %c0_12 = arith.constant 0 : index
      %13 = vector.load %arg6[%c0_11, %c0_12] : memref<8x128xf32, #tpu.memory_space<vmem>>, vector<8x128xf32>
      tpu.vector_store %arg6[%c0_11, %c0_12], %12 {strides = array<i32>} : memref<8x128xf32, #tpu.memory_space<vmem>>, vector<8x128xf32>,
    } else {
    }
    %c0 = arith.constant 0 : index
    %c0_1 = arith.constant 0 : index
    %3 = vector.load %arg6[%c0, %c0_1] : memref<8x128xf32, #tpu.memory_space<vmem>>, vector<8x128xf32>
    %c0_2 = arith.constant 0 : index
    %c0_3 = arith.constant 0 : index
    %4 = vector.load %arg2[%c0_2, %c0_3] : memref<8x256xbf16, #tpu.memory_space<vmem>>, vector<8x256xbf16>
    %c0_4 = arith.constant 0 : index
    %c0_5 = arith.constant 0 : index
    %5 = vector.load %arg3[%c0_4, %c0_5] : memref<256x128xbf16, #tpu.memory_space<vmem>>, vector<256x128xbf16>
    %cst = arith.constant dense<0.000000e+00> : vector<8x128xf32>
    %6 = tpu.matmul %4, %5, %cst {dimension_numbers = #tpu.dot_dimension_numbers<[1], [0], [0], [1], [0, 0, 1, 1], [], []>} : vector<8x256xbf16>, vector<256x128xbf16>, vector<8x128xf32> -> vector<8x128xf32>
    %7 = arith.addf %3, %6 : vector<8x128xf32>
    %c0_6 = arith.constant 0 : index
    %c0_7 = arith.constant 0 : index
    %8 = vector.load %arg6[%c0_6, %c0_7] : memref<8x128xf32, #tpu.memory_space<vmem>>, vector<8x128xf32>
    tpu.vector_store %arg6[%c0_6, %c0_7], %7 {strides = array<i32>} : memref<8x128xf32, #tpu.memory_space<vmem>>, vector<8x128xf32>,
    %c0_i32_8 = arith.constant 0 : i32
    %9 = arith.cmpi eq, %arg1, %c0_i32_8 : i32
    %10 = arith.extui %9 : i1 to i32
    %c0_i32_9 = arith.constant 0 : i32
    %11 = arith.cmpi ne, %10, %c0_i32_9 : i32
    scf.if %11 {
      %c0_10 = arith.constant 0 : index
      %c0_11 = arith.constant 0 : index
      %12 = vector.load %arg6[%c0_10, %c0_11] : memref<8x128xf32, #tpu.memory_space<vmem>>, vector<8x128xf32>
      %13 = arith.truncf %12 : vector<8x128xf32> to vector<8x128xbf16>
      %c0_12 = arith.constant 0 : index
      %c0_13 = arith.constant 0 : index
      %14 = vector.load %arg4[%c0_12, %c0_13] : memref<8x128xbf16, #tpu.memory_space<vmem>>, vector<8x128xbf16>
      tpu.vector_store %arg4[%c0_12, %c0_13], %13 {strides = array<i32>} : memref<8x128xbf16, #tpu.memory_space<vmem>>, vector<8x128xbf16>,
      %cst_14 = arith.constant dense<0.000000e+00> : vector<128xf32>
      %15 = vector.multi_reduction <add>, %12, %cst_14 [0] : vector<8x128xf32> to vector<128xf32>
      %16 = vector.shape_cast %15 : vector<128xf32> to vector<1x128xf32>
      %17 = arith.mulf %12, %12 : vector<8x128xf32>
      %cst_15 = arith.constant dense<0.000000e+00> : vector<128xf32>
      %18 = vector.multi_reduction <add>, %17, %cst_15 [0] : vector<8x128xf32> to vector<128xf32>
      %19 = vector.shape_cast %18 : vector<128xf32> to vector<1x128xf32>
      %20 = tpu.concatenate %16, %19 in 0 : vector<1x128xf32>, vector<1x128xf32> -> vector<2x128xf32>
      %21 = vector.shape_cast %20 : vector<2x128xf32> to vector<1x2x128xf32>
      %c0_16 = arith.constant 0 : index
      %c0_17 = arith.constant 0 : index
      %c0_18 = arith.constant 0 : index
      %22 = vector.load %arg5[%c0_16, %c0_17, %c0_18] : memref<1x2x128xf32, #tpu.memory_space<vmem>>, vector<1x2x128xf32>
      tpu.vector_store %arg5[%c0_16, %c0_17, %c0_18], %21 {strides = array<i32>} : memref<1x2x128xf32, #tpu.memory_space<vmem>>, vector<1x2x128xf32>,
    } else {
    }
    return
  }
  func.func @transform_0(%arg0: i32, %arg1: i32) -> (i32, i32) {
    %c0_i32 = arith.constant 0 : i32
    return %arg0, %arg1 : i32, i32
  }
  func.func @transform_1(%arg0: i32, %arg1: i32) -> (i32, i32) {
    %c0_i32 = arith.constant 0 : i32
    %c0_i32_0 = arith.constant 0 : i32
    return %arg1, %c0_i32 : i32, i32
  }
  func.func @transform_2(%arg0: i32, %arg1: i32) -> (i32, i32) {
    %c0_i32 = arith.constant 0 : i32
    %c0_i32_0 = arith.constant 0 : i32
    return %arg0, %c0_i32 : i32, i32
  }
  func.func @transform_3(%arg0: i32, %arg1: i32) -> (i32, i32, i32) {
    %c0_i32 = arith.constant 0 : i32
    %c0_i32_0 = arith.constant 0 : i32
    %c0_i32_1 = arith.constant 0 : i32
    return %arg0, %c0_i32, %c0_i32_0 : i32, i32, i32
  }
}

module attributes {stable_mosaic.version = 11 : i64} {
  func.func @_bn_act_kernel(%arg0: i32, %arg1: memref<8x128xbf16, #tpu.memory_space<vmem>>, %arg2: memref<1x128xf32, #tpu.memory_space<vmem>>, %arg3: memref<1x128xf32, #tpu.memory_space<vmem>>, %arg4: memref<8x128xbf16, #tpu.memory_space<vmem>>) attributes {dimension_semantics = [#tpu.dimension_semantics<parallel>], iteration_bounds = array<i64: 1>, scalar_prefetch = 0 : i64, scratch_operands = 0 : i64, tpu.core_type = #tpu.core_type<tc>, window_params = [{transform_indices = @transform_0, window_bounds = array<i64: 8, 128>}, {pipeline_mode = #tpu.pipeline_mode<synchronous>, transform_indices = @transform_1, window_bounds = array<i64: 1, 128>}, {pipeline_mode = #tpu.pipeline_mode<synchronous>, transform_indices = @transform_2, window_bounds = array<i64: 1, 128>}, {transform_indices = @transform_3, window_bounds = array<i64: 8, 128>}]} {
    %c0 = arith.constant 0 : index
    %c0_0 = arith.constant 0 : index
    %0 = vector.load %arg1[%c0, %c0_0] : memref<8x128xbf16, #tpu.memory_space<vmem>>, vector<8x128xbf16>
    %1 = arith.extf %0 : vector<8x128xbf16> to vector<8x128xf32>
    %c0_1 = arith.constant 0 : index
    %c0_2 = arith.constant 0 : index
    %2 = vector.load %arg2[%c0_1, %c0_2] : memref<1x128xf32, #tpu.memory_space<vmem>>, vector<1x128xf32>
    %3 = vector.broadcast %2 : vector<1x128xf32> to vector<8x128xf32>
    %4 = arith.mulf %1, %3 : vector<8x128xf32>
    %c0_3 = arith.constant 0 : index
    %c0_4 = arith.constant 0 : index
    %5 = vector.load %arg3[%c0_3, %c0_4] : memref<1x128xf32, #tpu.memory_space<vmem>>, vector<1x128xf32>
    %6 = vector.broadcast %5 : vector<1x128xf32> to vector<8x128xf32>
    %7 = arith.addf %4, %6 : vector<8x128xf32>
    %cst = arith.constant 0.000000e+00 : f32
    %8 = vector.broadcast %cst : f32 to vector<8x128xf32>
    %9 = arith.maximumf %7, %8 : vector<8x128xf32>
    %10 = arith.truncf %9 : vector<8x128xf32> to vector<8x128xbf16>
    %c0_5 = arith.constant 0 : index
    %c0_6 = arith.constant 0 : index
    %11 = vector.load %arg4[%c0_5, %c0_6] : memref<8x128xbf16, #tpu.memory_space<vmem>>, vector<8x128xbf16>
    tpu.vector_store %arg4[%c0_5, %c0_6], %10 {strides = array<i32>} : memref<8x128xbf16, #tpu.memory_space<vmem>>, vector<8x128xbf16>,
    return
  }
  func.func @transform_0(%arg0: i32) -> (i32, i32) {
    %c0_i32 = arith.constant 0 : i32
    %c0_i32_0 = arith.constant 0 : i32
    return %arg0, %c0_i32 : i32, i32
  }
  func.func @transform_1(%arg0: i32) -> (i32, i32) {
    %c0_i32 = arith.constant 0 : i32
    %c0_i32_0 = arith.constant 0 : i32
    %c0_i32_1 = arith.constant 0 : i32
    return %c0_i32, %c0_i32_0 : i32, i32
  }
  func.func @transform_2(%arg0: i32) -> (i32, i32) {
    %c0_i32 = arith.constant 0 : i32
    %c0_i32_0 = arith.constant 0 : i32
    %c0_i32_1 = arith.constant 0 : i32
    return %c0_i32, %c0_i32_0 : i32, i32
  }
  func.func @transform_3(%arg0: i32) -> (i32, i32) {
    %c0_i32 = arith.constant 0 : i32
    %c0_i32_0 = arith.constant 0 : i32
    return %arg0, %c0_i32 : i32, i32
  }
}

module attributes {stable_mosaic.version = 11 : i64} {
  func.func @_bn_add_relu_kernel(%arg0: i32, %arg1: memref<8x128xbf16, #tpu.memory_space<vmem>>, %arg2: memref<1x128xf32, #tpu.memory_space<vmem>>, %arg3: memref<1x128xf32, #tpu.memory_space<vmem>>, %arg4: memref<8x128xbf16, #tpu.memory_space<vmem>>, %arg5: memref<8x128xbf16, #tpu.memory_space<vmem>>) attributes {dimension_semantics = [#tpu.dimension_semantics<parallel>], iteration_bounds = array<i64: 1>, scalar_prefetch = 0 : i64, scratch_operands = 0 : i64, tpu.core_type = #tpu.core_type<tc>, window_params = [{transform_indices = @transform_0, window_bounds = array<i64: 8, 128>}, {pipeline_mode = #tpu.pipeline_mode<synchronous>, transform_indices = @transform_1, window_bounds = array<i64: 1, 128>}, {pipeline_mode = #tpu.pipeline_mode<synchronous>, transform_indices = @transform_2, window_bounds = array<i64: 1, 128>}, {transform_indices = @transform_3, window_bounds = array<i64: 8, 128>}, {transform_indices = @transform_4, window_bounds = array<i64: 8, 128>}]} {
    %c0 = arith.constant 0 : index
    %c0_0 = arith.constant 0 : index
    %0 = vector.load %arg1[%c0, %c0_0] : memref<8x128xbf16, #tpu.memory_space<vmem>>, vector<8x128xbf16>
    %1 = arith.extf %0 : vector<8x128xbf16> to vector<8x128xf32>
    %c0_1 = arith.constant 0 : index
    %c0_2 = arith.constant 0 : index
    %2 = vector.load %arg2[%c0_1, %c0_2] : memref<1x128xf32, #tpu.memory_space<vmem>>, vector<1x128xf32>
    %3 = vector.broadcast %2 : vector<1x128xf32> to vector<8x128xf32>
    %4 = arith.mulf %1, %3 : vector<8x128xf32>
    %c0_3 = arith.constant 0 : index
    %c0_4 = arith.constant 0 : index
    %5 = vector.load %arg3[%c0_3, %c0_4] : memref<1x128xf32, #tpu.memory_space<vmem>>, vector<1x128xf32>
    %6 = vector.broadcast %5 : vector<1x128xf32> to vector<8x128xf32>
    %7 = arith.addf %4, %6 : vector<8x128xf32>
    %c0_5 = arith.constant 0 : index
    %c0_6 = arith.constant 0 : index
    %8 = vector.load %arg4[%c0_5, %c0_6] : memref<8x128xbf16, #tpu.memory_space<vmem>>, vector<8x128xbf16>
    %9 = arith.extf %8 : vector<8x128xbf16> to vector<8x128xf32>
    %10 = arith.addf %7, %9 : vector<8x128xf32>
    %cst = arith.constant 0.000000e+00 : f32
    %11 = vector.broadcast %cst : f32 to vector<8x128xf32>
    %12 = arith.maximumf %10, %11 : vector<8x128xf32>
    %13 = arith.truncf %12 : vector<8x128xf32> to vector<8x128xbf16>
    %c0_7 = arith.constant 0 : index
    %c0_8 = arith.constant 0 : index
    %14 = vector.load %arg5[%c0_7, %c0_8] : memref<8x128xbf16, #tpu.memory_space<vmem>>, vector<8x128xbf16>
    tpu.vector_store %arg5[%c0_7, %c0_8], %13 {strides = array<i32>} : memref<8x128xbf16, #tpu.memory_space<vmem>>, vector<8x128xbf16>,
    return
  }
  func.func @transform_0(%arg0: i32) -> (i32, i32) {
    %c0_i32 = arith.constant 0 : i32
    %c0_i32_0 = arith.constant 0 : i32
    return %arg0, %c0_i32 : i32, i32
  }
  func.func @transform_1(%arg0: i32) -> (i32, i32) {
    %c0_i32 = arith.constant 0 : i32
    %c0_i32_0 = arith.constant 0 : i32
    %c0_i32_1 = arith.constant 0 : i32
    return %c0_i32, %c0_i32_0 : i32, i32
  }
  func.func @transform_2(%arg0: i32) -> (i32, i32) {
    %c0_i32 = arith.constant 0 : i32
    %c0_i32_0 = arith.constant 0 : i32
    %c0_i32_1 = arith.constant 0 : i32
    return %c0_i32, %c0_i32_0 : i32, i32
  }
  func.func @transform_3(%arg0: i32) -> (i32, i32) {
    %c0_i32 = arith.constant 0 : i32
    %c0_i32_0 = arith.constant 0 : i32
    return %arg0, %c0_i32 : i32, i32
  }
  func.func @transform_4(%arg0: i32) -> (i32, i32) {
    %c0_i32 = arith.constant 0 : i32
    %c0_i32_0 = arith.constant 0 : i32
    return %arg0, %c0_i32 : i32, i32
  }
}

module attributes {stable_mosaic.version = 11 : i64} {
  func.func @_matmul_stats_kernel(%arg0: i32, %arg1: i32, %arg2: memref<8x128xbf16, #tpu.memory_space<vmem>>, %arg3: memref<128x256xbf16, #tpu.memory_space<vmem>>, %arg4: memref<8x256xbf16, #tpu.memory_space<vmem>>, %arg5: memref<1x2x256xf32, #tpu.memory_space<vmem>>, %arg6: memref<8x256xf32, #tpu.memory_space<vmem>>) attributes {dimension_semantics = [#tpu.dimension_semantics<parallel>, #tpu.dimension_semantics<arbitrary>], iteration_bounds = array<i64: 1, 1>, scalar_prefetch = 0 : i64, scratch_operands = 1 : i64, tpu.core_type = #tpu.core_type<tc>, window_params = [{transform_indices = @transform_0, window_bounds = array<i64: 8, 128>}, {transform_indices = @transform_1, window_bounds = array<i64: 128, 256>}, {transform_indices = @transform_2, window_bounds = array<i64: 8, 256>}, {transform_indices = @transform_3, window_bounds = array<i64: 1, 2, 256>}]} {
    %c0_i32 = arith.constant 0 : i32
    %0 = arith.cmpi eq, %arg1, %c0_i32 : i32
    %1 = arith.extui %0 : i1 to i32
    %c0_i32_0 = arith.constant 0 : i32
    %2 = arith.cmpi ne, %1, %c0_i32_0 : i32
    scf.if %2 {
      %cst_10 = arith.constant 0.000000e+00 : f32
      %12 = vector.broadcast %cst_10 : f32 to vector<8x256xf32>
      %c0_11 = arith.constant 0 : index
      %c0_12 = arith.constant 0 : index
      %13 = vector.load %arg6[%c0_11, %c0_12] : memref<8x256xf32, #tpu.memory_space<vmem>>, vector<8x256xf32>
      tpu.vector_store %arg6[%c0_11, %c0_12], %12 {strides = array<i32>} : memref<8x256xf32, #tpu.memory_space<vmem>>, vector<8x256xf32>,
    } else {
    }
    %c0 = arith.constant 0 : index
    %c0_1 = arith.constant 0 : index
    %3 = vector.load %arg6[%c0, %c0_1] : memref<8x256xf32, #tpu.memory_space<vmem>>, vector<8x256xf32>
    %c0_2 = arith.constant 0 : index
    %c0_3 = arith.constant 0 : index
    %4 = vector.load %arg2[%c0_2, %c0_3] : memref<8x128xbf16, #tpu.memory_space<vmem>>, vector<8x128xbf16>
    %c0_4 = arith.constant 0 : index
    %c0_5 = arith.constant 0 : index
    %5 = vector.load %arg3[%c0_4, %c0_5] : memref<128x256xbf16, #tpu.memory_space<vmem>>, vector<128x256xbf16>
    %cst = arith.constant dense<0.000000e+00> : vector<8x256xf32>
    %6 = tpu.matmul %4, %5, %cst {dimension_numbers = #tpu.dot_dimension_numbers<[1], [0], [0], [1], [0, 0, 1, 1], [], []>} : vector<8x128xbf16>, vector<128x256xbf16>, vector<8x256xf32> -> vector<8x256xf32>
    %7 = arith.addf %3, %6 : vector<8x256xf32>
    %c0_6 = arith.constant 0 : index
    %c0_7 = arith.constant 0 : index
    %8 = vector.load %arg6[%c0_6, %c0_7] : memref<8x256xf32, #tpu.memory_space<vmem>>, vector<8x256xf32>
    tpu.vector_store %arg6[%c0_6, %c0_7], %7 {strides = array<i32>} : memref<8x256xf32, #tpu.memory_space<vmem>>, vector<8x256xf32>,
    %c0_i32_8 = arith.constant 0 : i32
    %9 = arith.cmpi eq, %arg1, %c0_i32_8 : i32
    %10 = arith.extui %9 : i1 to i32
    %c0_i32_9 = arith.constant 0 : i32
    %11 = arith.cmpi ne, %10, %c0_i32_9 : i32
    scf.if %11 {
      %c0_10 = arith.constant 0 : index
      %c0_11 = arith.constant 0 : index
      %12 = vector.load %arg6[%c0_10, %c0_11] : memref<8x256xf32, #tpu.memory_space<vmem>>, vector<8x256xf32>
      %13 = arith.truncf %12 : vector<8x256xf32> to vector<8x256xbf16>
      %c0_12 = arith.constant 0 : index
      %c0_13 = arith.constant 0 : index
      %14 = vector.load %arg4[%c0_12, %c0_13] : memref<8x256xbf16, #tpu.memory_space<vmem>>, vector<8x256xbf16>
      tpu.vector_store %arg4[%c0_12, %c0_13], %13 {strides = array<i32>} : memref<8x256xbf16, #tpu.memory_space<vmem>>, vector<8x256xbf16>,
      %cst_14 = arith.constant dense<0.000000e+00> : vector<256xf32>
      %15 = vector.multi_reduction <add>, %12, %cst_14 [0] : vector<8x256xf32> to vector<256xf32>
      %16 = vector.shape_cast %15 : vector<256xf32> to vector<1x256xf32>
      %17 = arith.mulf %12, %12 : vector<8x256xf32>
      %cst_15 = arith.constant dense<0.000000e+00> : vector<256xf32>
      %18 = vector.multi_reduction <add>, %17, %cst_15 [0] : vector<8x256xf32> to vector<256xf32>
      %19 = vector.shape_cast %18 : vector<256xf32> to vector<1x256xf32>
      %20 = tpu.concatenate %16, %19 in 0 : vector<1x256xf32>, vector<1x256xf32> -> vector<2x256xf32>
      %21 = vector.shape_cast %20 : vector<2x256xf32> to vector<1x2x256xf32>
      %c0_16 = arith.constant 0 : index
      %c0_17 = arith.constant 0 : index
      %c0_18 = arith.constant 0 : index
      %22 = vector.load %arg5[%c0_16, %c0_17, %c0_18] : memref<1x2x256xf32, #tpu.memory_space<vmem>>, vector<1x2x256xf32>
      tpu.vector_store %arg5[%c0_16, %c0_17, %c0_18], %21 {strides = array<i32>} : memref<1x2x256xf32, #tpu.memory_space<vmem>>, vector<1x2x256xf32>,
    } else {
    }
    return
  }
  func.func @transform_0(%arg0: i32, %arg1: i32) -> (i32, i32) {
    %c0_i32 = arith.constant 0 : i32
    return %arg0, %arg1 : i32, i32
  }
  func.func @transform_1(%arg0: i32, %arg1: i32) -> (i32, i32) {
    %c0_i32 = arith.constant 0 : i32
    %c0_i32_0 = arith.constant 0 : i32
    return %arg1, %c0_i32 : i32, i32
  }
  func.func @transform_2(%arg0: i32, %arg1: i32) -> (i32, i32) {
    %c0_i32 = arith.constant 0 : i32
    %c0_i32_0 = arith.constant 0 : i32
    return %arg0, %c0_i32 : i32, i32
  }
  func.func @transform_3(%arg0: i32, %arg1: i32) -> (i32, i32, i32) {
    %c0_i32 = arith.constant 0 : i32
    %c0_i32_0 = arith.constant 0 : i32
    %c0_i32_1 = arith.constant 0 : i32
    return %arg0, %c0_i32, %c0_i32_0 : i32, i32, i32
  }
}

module attributes {stable_mosaic.version = 11 : i64} {
  func.func @_matmul_stats_kernel(%arg0: i32, %arg1: i32, %arg2: memref<8x384xbf16, #tpu.memory_space<vmem>>, %arg3: memref<384x128xbf16, #tpu.memory_space<vmem>>, %arg4: memref<8x128xbf16, #tpu.memory_space<vmem>>, %arg5: memref<1x2x128xf32, #tpu.memory_space<vmem>>, %arg6: memref<8x128xf32, #tpu.memory_space<vmem>>) attributes {dimension_semantics = [#tpu.dimension_semantics<parallel>, #tpu.dimension_semantics<arbitrary>], iteration_bounds = array<i64: 1, 1>, scalar_prefetch = 0 : i64, scratch_operands = 1 : i64, tpu.core_type = #tpu.core_type<tc>, window_params = [{transform_indices = @transform_0, window_bounds = array<i64: 8, 384>}, {transform_indices = @transform_1, window_bounds = array<i64: 384, 128>}, {transform_indices = @transform_2, window_bounds = array<i64: 8, 128>}, {transform_indices = @transform_3, window_bounds = array<i64: 1, 2, 128>}]} {
    %c0_i32 = arith.constant 0 : i32
    %0 = arith.cmpi eq, %arg1, %c0_i32 : i32
    %1 = arith.extui %0 : i1 to i32
    %c0_i32_0 = arith.constant 0 : i32
    %2 = arith.cmpi ne, %1, %c0_i32_0 : i32
    scf.if %2 {
      %cst_10 = arith.constant 0.000000e+00 : f32
      %12 = vector.broadcast %cst_10 : f32 to vector<8x128xf32>
      %c0_11 = arith.constant 0 : index
      %c0_12 = arith.constant 0 : index
      %13 = vector.load %arg6[%c0_11, %c0_12] : memref<8x128xf32, #tpu.memory_space<vmem>>, vector<8x128xf32>
      tpu.vector_store %arg6[%c0_11, %c0_12], %12 {strides = array<i32>} : memref<8x128xf32, #tpu.memory_space<vmem>>, vector<8x128xf32>,
    } else {
    }
    %c0 = arith.constant 0 : index
    %c0_1 = arith.constant 0 : index
    %3 = vector.load %arg6[%c0, %c0_1] : memref<8x128xf32, #tpu.memory_space<vmem>>, vector<8x128xf32>
    %c0_2 = arith.constant 0 : index
    %c0_3 = arith.constant 0 : index
    %4 = vector.load %arg2[%c0_2, %c0_3] : memref<8x384xbf16, #tpu.memory_space<vmem>>, vector<8x384xbf16>
    %c0_4 = arith.constant 0 : index
    %c0_5 = arith.constant 0 : index
    %5 = vector.load %arg3[%c0_4, %c0_5] : memref<384x128xbf16, #tpu.memory_space<vmem>>, vector<384x128xbf16>
    %cst = arith.constant dense<0.000000e+00> : vector<8x128xf32>
    %6 = tpu.matmul %4, %5, %cst {dimension_numbers = #tpu.dot_dimension_numbers<[1], [0], [0], [1], [0, 0, 1, 1], [], []>} : vector<8x384xbf16>, vector<384x128xbf16>, vector<8x128xf32> -> vector<8x128xf32>
    %7 = arith.addf %3, %6 : vector<8x128xf32>
    %c0_6 = arith.constant 0 : index
    %c0_7 = arith.constant 0 : index
    %8 = vector.load %arg6[%c0_6, %c0_7] : memref<8x128xf32, #tpu.memory_space<vmem>>, vector<8x128xf32>
    tpu.vector_store %arg6[%c0_6, %c0_7], %7 {strides = array<i32>} : memref<8x128xf32, #tpu.memory_space<vmem>>, vector<8x128xf32>,
    %c0_i32_8 = arith.constant 0 : i32
    %9 = arith.cmpi eq, %arg1, %c0_i32_8 : i32
    %10 = arith.extui %9 : i1 to i32
    %c0_i32_9 = arith.constant 0 : i32
    %11 = arith.cmpi ne, %10, %c0_i32_9 : i32
    scf.if %11 {
      %c0_10 = arith.constant 0 : index
      %c0_11 = arith.constant 0 : index
      %12 = vector.load %arg6[%c0_10, %c0_11] : memref<8x128xf32, #tpu.memory_space<vmem>>, vector<8x128xf32>
      %13 = arith.truncf %12 : vector<8x128xf32> to vector<8x128xbf16>
      %c0_12 = arith.constant 0 : index
      %c0_13 = arith.constant 0 : index
      %14 = vector.load %arg4[%c0_12, %c0_13] : memref<8x128xbf16, #tpu.memory_space<vmem>>, vector<8x128xbf16>
      tpu.vector_store %arg4[%c0_12, %c0_13], %13 {strides = array<i32>} : memref<8x128xbf16, #tpu.memory_space<vmem>>, vector<8x128xbf16>,
      %cst_14 = arith.constant dense<0.000000e+00> : vector<128xf32>
      %15 = vector.multi_reduction <add>, %12, %cst_14 [0] : vector<8x128xf32> to vector<128xf32>
      %16 = vector.shape_cast %15 : vector<128xf32> to vector<1x128xf32>
      %17 = arith.mulf %12, %12 : vector<8x128xf32>
      %cst_15 = arith.constant dense<0.000000e+00> : vector<128xf32>
      %18 = vector.multi_reduction <add>, %17, %cst_15 [0] : vector<8x128xf32> to vector<128xf32>
      %19 = vector.shape_cast %18 : vector<128xf32> to vector<1x128xf32>
      %20 = tpu.concatenate %16, %19 in 0 : vector<1x128xf32>, vector<1x128xf32> -> vector<2x128xf32>
      %21 = vector.shape_cast %20 : vector<2x128xf32> to vector<1x2x128xf32>
      %c0_16 = arith.constant 0 : index
      %c0_17 = arith.constant 0 : index
      %c0_18 = arith.constant 0 : index
      %22 = vector.load %arg5[%c0_16, %c0_17, %c0_18] : memref<1x2x128xf32, #tpu.memory_space<vmem>>, vector<1x2x128xf32>
      tpu.vector_store %arg5[%c0_16, %c0_17, %c0_18], %21 {strides = array<i32>} : memref<1x2x128xf32, #tpu.memory_space<vmem>>, vector<1x2x128xf32>,
    } else {
    }
    return
  }
  func.func @transform_0(%arg0: i32, %arg1: i32) -> (i32, i32) {
    %c0_i32 = arith.constant 0 : i32
    return %arg0, %arg1 : i32, i32
  }
  func.func @transform_1(%arg0: i32, %arg1: i32) -> (i32, i32) {
    %c0_i32 = arith.constant 0 : i32
    %c0_i32_0 = arith.constant 0 : i32
    return %arg1, %c0_i32 : i32, i32
  }
  func.func @transform_2(%arg0: i32, %arg1: i32) -> (i32, i32) {
    %c0_i32 = arith.constant 0 : i32
    %c0_i32_0 = arith.constant 0 : i32
    return %arg0, %c0_i32 : i32, i32
  }
  func.func @transform_3(%arg0: i32, %arg1: i32) -> (i32, i32, i32) {
    %c0_i32 = arith.constant 0 : i32
    %c0_i32_0 = arith.constant 0 : i32
    %c0_i32_1 = arith.constant 0 : i32
    return %arg0, %c0_i32, %c0_i32_0 : i32, i32, i32
  }
}

module attributes {stable_mosaic.version = 11 : i64} {
  func.func @_bn_act_kernel(%arg0: i32, %arg1: memref<8x256xbf16, #tpu.memory_space<vmem>>, %arg2: memref<1x256xf32, #tpu.memory_space<vmem>>, %arg3: memref<1x256xf32, #tpu.memory_space<vmem>>, %arg4: memref<8x256xbf16, #tpu.memory_space<vmem>>) attributes {dimension_semantics = [#tpu.dimension_semantics<parallel>], iteration_bounds = array<i64: 1>, scalar_prefetch = 0 : i64, scratch_operands = 0 : i64, tpu.core_type = #tpu.core_type<tc>, window_params = [{transform_indices = @transform_0, window_bounds = array<i64: 8, 256>}, {pipeline_mode = #tpu.pipeline_mode<synchronous>, transform_indices = @transform_1, window_bounds = array<i64: 1, 256>}, {pipeline_mode = #tpu.pipeline_mode<synchronous>, transform_indices = @transform_2, window_bounds = array<i64: 1, 256>}, {transform_indices = @transform_3, window_bounds = array<i64: 8, 256>}]} {
    %c0 = arith.constant 0 : index
    %c0_0 = arith.constant 0 : index
    %0 = vector.load %arg1[%c0, %c0_0] : memref<8x256xbf16, #tpu.memory_space<vmem>>, vector<8x256xbf16>
    %1 = arith.extf %0 : vector<8x256xbf16> to vector<8x256xf32>
    %c0_1 = arith.constant 0 : index
    %c0_2 = arith.constant 0 : index
    %2 = vector.load %arg2[%c0_1, %c0_2] : memref<1x256xf32, #tpu.memory_space<vmem>>, vector<1x256xf32>
    %3 = vector.broadcast %2 : vector<1x256xf32> to vector<8x256xf32>
    %4 = arith.mulf %1, %3 : vector<8x256xf32>
    %c0_3 = arith.constant 0 : index
    %c0_4 = arith.constant 0 : index
    %5 = vector.load %arg3[%c0_3, %c0_4] : memref<1x256xf32, #tpu.memory_space<vmem>>, vector<1x256xf32>
    %6 = vector.broadcast %5 : vector<1x256xf32> to vector<8x256xf32>
    %7 = arith.addf %4, %6 : vector<8x256xf32>
    %8 = arith.truncf %7 : vector<8x256xf32> to vector<8x256xbf16>
    %c0_5 = arith.constant 0 : index
    %c0_6 = arith.constant 0 : index
    %9 = vector.load %arg4[%c0_5, %c0_6] : memref<8x256xbf16, #tpu.memory_space<vmem>>, vector<8x256xbf16>
    tpu.vector_store %arg4[%c0_5, %c0_6], %8 {strides = array<i32>} : memref<8x256xbf16, #tpu.memory_space<vmem>>, vector<8x256xbf16>,
    return
  }
  func.func @transform_0(%arg0: i32) -> (i32, i32) {
    %c0_i32 = arith.constant 0 : i32
    %c0_i32_0 = arith.constant 0 : i32
    return %arg0, %c0_i32 : i32, i32
  }
  func.func @transform_1(%arg0: i32) -> (i32, i32) {
    %c0_i32 = arith.constant 0 : i32
    %c0_i32_0 = arith.constant 0 : i32
    %c0_i32_1 = arith.constant 0 : i32
    return %c0_i32, %c0_i32_0 : i32, i32
  }
  func.func @transform_2(%arg0: i32) -> (i32, i32) {
    %c0_i32 = arith.constant 0 : i32
    %c0_i32_0 = arith.constant 0 : i32
    %c0_i32_1 = arith.constant 0 : i32
    return %c0_i32, %c0_i32_0 : i32, i32
  }
  func.func @transform_3(%arg0: i32) -> (i32, i32) {
    %c0_i32 = arith.constant 0 : i32
    %c0_i32_0 = arith.constant 0 : i32
    return %arg0, %c0_i32 : i32, i32
  }
}

module attributes {stable_mosaic.version = 11 : i64} {
  func.func @_bn_add_relu_kernel(%arg0: i32, %arg1: memref<8x256xbf16, #tpu.memory_space<vmem>>, %arg2: memref<1x256xf32, #tpu.memory_space<vmem>>, %arg3: memref<1x256xf32, #tpu.memory_space<vmem>>, %arg4: memref<8x256xbf16, #tpu.memory_space<vmem>>, %arg5: memref<8x256xbf16, #tpu.memory_space<vmem>>) attributes {dimension_semantics = [#tpu.dimension_semantics<parallel>], iteration_bounds = array<i64: 1>, scalar_prefetch = 0 : i64, scratch_operands = 0 : i64, tpu.core_type = #tpu.core_type<tc>, window_params = [{transform_indices = @transform_0, window_bounds = array<i64: 8, 256>}, {pipeline_mode = #tpu.pipeline_mode<synchronous>, transform_indices = @transform_1, window_bounds = array<i64: 1, 256>}, {pipeline_mode = #tpu.pipeline_mode<synchronous>, transform_indices = @transform_2, window_bounds = array<i64: 1, 256>}, {transform_indices = @transform_3, window_bounds = array<i64: 8, 256>}, {transform_indices = @transform_4, window_bounds = array<i64: 8, 256>}]} {
    %c0 = arith.constant 0 : index
    %c0_0 = arith.constant 0 : index
    %0 = vector.load %arg1[%c0, %c0_0] : memref<8x256xbf16, #tpu.memory_space<vmem>>, vector<8x256xbf16>
    %1 = arith.extf %0 : vector<8x256xbf16> to vector<8x256xf32>
    %c0_1 = arith.constant 0 : index
    %c0_2 = arith.constant 0 : index
    %2 = vector.load %arg2[%c0_1, %c0_2] : memref<1x256xf32, #tpu.memory_space<vmem>>, vector<1x256xf32>
    %3 = vector.broadcast %2 : vector<1x256xf32> to vector<8x256xf32>
    %4 = arith.mulf %1, %3 : vector<8x256xf32>
    %c0_3 = arith.constant 0 : index
    %c0_4 = arith.constant 0 : index
    %5 = vector.load %arg3[%c0_3, %c0_4] : memref<1x256xf32, #tpu.memory_space<vmem>>, vector<1x256xf32>
    %6 = vector.broadcast %5 : vector<1x256xf32> to vector<8x256xf32>
    %7 = arith.addf %4, %6 : vector<8x256xf32>
    %c0_5 = arith.constant 0 : index
    %c0_6 = arith.constant 0 : index
    %8 = vector.load %arg4[%c0_5, %c0_6] : memref<8x256xbf16, #tpu.memory_space<vmem>>, vector<8x256xbf16>
    %9 = arith.extf %8 : vector<8x256xbf16> to vector<8x256xf32>
    %10 = arith.addf %7, %9 : vector<8x256xf32>
    %cst = arith.constant 0.000000e+00 : f32
    %11 = vector.broadcast %cst : f32 to vector<8x256xf32>
    %12 = arith.maximumf %10, %11 : vector<8x256xf32>
    %13 = arith.truncf %12 : vector<8x256xf32> to vector<8x256xbf16>
    %c0_7 = arith.constant 0 : index
    %c0_8 = arith.constant 0 : index
    %14 = vector.load %arg5[%c0_7, %c0_8] : memref<8x256xbf16, #tpu.memory_space<vmem>>, vector<8x256xbf16>
    tpu.vector_store %arg5[%c0_7, %c0_8], %13 {strides = array<i32>} : memref<8x256xbf16, #tpu.memory_space<vmem>>, vector<8x256xbf16>,
    return
  }
  func.func @transform_0(%arg0: i32) -> (i32, i32) {
    %c0_i32 = arith.constant 0 : i32
    %c0_i32_0 = arith.constant 0 : i32
    return %arg0, %c0_i32 : i32, i32
  }
  func.func @transform_1(%arg0: i32) -> (i32, i32) {
    %c0_i32 = arith.constant 0 : i32
    %c0_i32_0 = arith.constant 0 : i32
    %c0_i32_1 = arith.constant 0 : i32
    return %c0_i32, %c0_i32_0 : i32, i32
  }
  func.func @transform_2(%arg0: i32) -> (i32, i32) {
    %c0_i32 = arith.constant 0 : i32
    %c0_i32_0 = arith.constant 0 : i32
    %c0_i32_1 = arith.constant 0 : i32
    return %c0_i32, %c0_i32_0 : i32, i32
  }
  func.func @transform_3(%arg0: i32) -> (i32, i32) {
    %c0_i32 = arith.constant 0 : i32
    %c0_i32_0 = arith.constant 0 : i32
    return %arg0, %c0_i32 : i32, i32
  }
  func.func @transform_4(%arg0: i32) -> (i32, i32) {
    %c0_i32 = arith.constant 0 : i32
    %c0_i32_0 = arith.constant 0 : i32
    return %arg0, %c0_i32 : i32, i32
  }
}

module attributes {stable_mosaic.version = 11 : i64} {
  func.func @_matmul_stats_kernel(%arg0: i32, %arg1: i32, %arg2: memref<8x640xbf16, #tpu.memory_space<vmem>>, %arg3: memref<640x128xbf16, #tpu.memory_space<vmem>>, %arg4: memref<8x128xbf16, #tpu.memory_space<vmem>>, %arg5: memref<1x2x128xf32, #tpu.memory_space<vmem>>, %arg6: memref<8x128xf32, #tpu.memory_space<vmem>>) attributes {dimension_semantics = [#tpu.dimension_semantics<parallel>, #tpu.dimension_semantics<arbitrary>], iteration_bounds = array<i64: 1, 1>, scalar_prefetch = 0 : i64, scratch_operands = 1 : i64, tpu.core_type = #tpu.core_type<tc>, window_params = [{transform_indices = @transform_0, window_bounds = array<i64: 8, 640>}, {transform_indices = @transform_1, window_bounds = array<i64: 640, 128>}, {transform_indices = @transform_2, window_bounds = array<i64: 8, 128>}, {transform_indices = @transform_3, window_bounds = array<i64: 1, 2, 128>}]} {
    %c0_i32 = arith.constant 0 : i32
    %0 = arith.cmpi eq, %arg1, %c0_i32 : i32
    %1 = arith.extui %0 : i1 to i32
    %c0_i32_0 = arith.constant 0 : i32
    %2 = arith.cmpi ne, %1, %c0_i32_0 : i32
    scf.if %2 {
      %cst_10 = arith.constant 0.000000e+00 : f32
      %12 = vector.broadcast %cst_10 : f32 to vector<8x128xf32>
      %c0_11 = arith.constant 0 : index
      %c0_12 = arith.constant 0 : index
      %13 = vector.load %arg6[%c0_11, %c0_12] : memref<8x128xf32, #tpu.memory_space<vmem>>, vector<8x128xf32>
      tpu.vector_store %arg6[%c0_11, %c0_12], %12 {strides = array<i32>} : memref<8x128xf32, #tpu.memory_space<vmem>>, vector<8x128xf32>,
    } else {
    }
    %c0 = arith.constant 0 : index
    %c0_1 = arith.constant 0 : index
    %3 = vector.load %arg6[%c0, %c0_1] : memref<8x128xf32, #tpu.memory_space<vmem>>, vector<8x128xf32>
    %c0_2 = arith.constant 0 : index
    %c0_3 = arith.constant 0 : index
    %4 = vector.load %arg2[%c0_2, %c0_3] : memref<8x640xbf16, #tpu.memory_space<vmem>>, vector<8x640xbf16>
    %c0_4 = arith.constant 0 : index
    %c0_5 = arith.constant 0 : index
    %5 = vector.load %arg3[%c0_4, %c0_5] : memref<640x128xbf16, #tpu.memory_space<vmem>>, vector<640x128xbf16>
    %cst = arith.constant dense<0.000000e+00> : vector<8x128xf32>
    %6 = tpu.matmul %4, %5, %cst {dimension_numbers = #tpu.dot_dimension_numbers<[1], [0], [0], [1], [0, 0, 1, 1], [], []>} : vector<8x640xbf16>, vector<640x128xbf16>, vector<8x128xf32> -> vector<8x128xf32>
    %7 = arith.addf %3, %6 : vector<8x128xf32>
    %c0_6 = arith.constant 0 : index
    %c0_7 = arith.constant 0 : index
    %8 = vector.load %arg6[%c0_6, %c0_7] : memref<8x128xf32, #tpu.memory_space<vmem>>, vector<8x128xf32>
    tpu.vector_store %arg6[%c0_6, %c0_7], %7 {strides = array<i32>} : memref<8x128xf32, #tpu.memory_space<vmem>>, vector<8x128xf32>,
    %c0_i32_8 = arith.constant 0 : i32
    %9 = arith.cmpi eq, %arg1, %c0_i32_8 : i32
    %10 = arith.extui %9 : i1 to i32
    %c0_i32_9 = arith.constant 0 : i32
    %11 = arith.cmpi ne, %10, %c0_i32_9 : i32
    scf.if %11 {
      %c0_10 = arith.constant 0 : index
      %c0_11 = arith.constant 0 : index
      %12 = vector.load %arg6[%c0_10, %c0_11] : memref<8x128xf32, #tpu.memory_space<vmem>>, vector<8x128xf32>
      %13 = arith.truncf %12 : vector<8x128xf32> to vector<8x128xbf16>
      %c0_12 = arith.constant 0 : index
      %c0_13 = arith.constant 0 : index
      %14 = vector.load %arg4[%c0_12, %c0_13] : memref<8x128xbf16, #tpu.memory_space<vmem>>, vector<8x128xbf16>
      tpu.vector_store %arg4[%c0_12, %c0_13], %13 {strides = array<i32>} : memref<8x128xbf16, #tpu.memory_space<vmem>>, vector<8x128xbf16>,
      %cst_14 = arith.constant dense<0.000000e+00> : vector<128xf32>
      %15 = vector.multi_reduction <add>, %12, %cst_14 [0] : vector<8x128xf32> to vector<128xf32>
      %16 = vector.shape_cast %15 : vector<128xf32> to vector<1x128xf32>
      %17 = arith.mulf %12, %12 : vector<8x128xf32>
      %cst_15 = arith.constant dense<0.000000e+00> : vector<128xf32>
      %18 = vector.multi_reduction <add>, %17, %cst_15 [0] : vector<8x128xf32> to vector<128xf32>
      %19 = vector.shape_cast %18 : vector<128xf32> to vector<1x128xf32>
      %20 = tpu.concatenate %16, %19 in 0 : vector<1x128xf32>, vector<1x128xf32> -> vector<2x128xf32>
      %21 = vector.shape_cast %20 : vector<2x128xf32> to vector<1x2x128xf32>
      %c0_16 = arith.constant 0 : index
      %c0_17 = arith.constant 0 : index
      %c0_18 = arith.constant 0 : index
      %22 = vector.load %arg5[%c0_16, %c0_17, %c0_18] : memref<1x2x128xf32, #tpu.memory_space<vmem>>, vector<1x2x128xf32>
      tpu.vector_store %arg5[%c0_16, %c0_17, %c0_18], %21 {strides = array<i32>} : memref<1x2x128xf32, #tpu.memory_space<vmem>>, vector<1x2x128xf32>,
    } else {
    }
    return
  }
  func.func @transform_0(%arg0: i32, %arg1: i32) -> (i32, i32) {
    %c0_i32 = arith.constant 0 : i32
    return %arg0, %arg1 : i32, i32
  }
  func.func @transform_1(%arg0: i32, %arg1: i32) -> (i32, i32) {
    %c0_i32 = arith.constant 0 : i32
    %c0_i32_0 = arith.constant 0 : i32
    return %arg1, %c0_i32 : i32, i32
  }
  func.func @transform_2(%arg0: i32, %arg1: i32) -> (i32, i32) {
    %c0_i32 = arith.constant 0 : i32
    %c0_i32_0 = arith.constant 0 : i32
    return %arg0, %c0_i32 : i32, i32
  }
  func.func @transform_3(%arg0: i32, %arg1: i32) -> (i32, i32, i32) {
    %c0_i32 = arith.constant 0 : i32
    %c0_i32_0 = arith.constant 0 : i32
    %c0_i32_1 = arith.constant 0 : i32
    return %arg0, %c0_i32, %c0_i32_0 : i32, i32, i32
  }
}

module attributes {stable_mosaic.version = 11 : i64} {
  func.func @_avgpool_kernel(%arg0: i32, %arg1: memref<2x1x256xbf16, #tpu.memory_space<vmem>>, %arg2: memref<2x256xf32, #tpu.memory_space<vmem>>) attributes {dimension_semantics = [#tpu.dimension_semantics<arbitrary>], iteration_bounds = array<i64: 1>, scalar_prefetch = 0 : i64, scratch_operands = 0 : i64, tpu.core_type = #tpu.core_type<tc>, window_params = [{pipeline_mode = #tpu.pipeline_mode<synchronous>, transform_indices = @transform_0, window_bounds = array<i64: 2, 1, 256>}, {pipeline_mode = #tpu.pipeline_mode<synchronous>, transform_indices = @transform_1, window_bounds = array<i64: 2, 256>}]} {
    %c0 = arith.constant 0 : index
    %c0_0 = arith.constant 0 : index
    %c0_1 = arith.constant 0 : index
    %0 = vector.load %arg1[%c0, %c0_0, %c0_1] : memref<2x1x256xbf16, #tpu.memory_space<vmem>>, vector<2x1x256xbf16>
    %1 = arith.extf %0 : vector<2x1x256xbf16> to vector<2x1x256xf32>
    %cst = arith.constant dense<0.000000e+00> : vector<2x256xf32>
    %2 = vector.multi_reduction <add>, %1, %cst [1] : vector<2x1x256xf32> to vector<2x256xf32>
    %cst_2 = arith.constant 1.000000e+00 : f32
    %3 = vector.broadcast %cst_2 : f32 to vector<2x256xf32>
    %4 = arith.divf %2, %3 : vector<2x256xf32>
    %c0_3 = arith.constant 0 : index
    %c0_4 = arith.constant 0 : index
    %5 = vector.load %arg2[%c0_3, %c0_4] : memref<2x256xf32, #tpu.memory_space<vmem>>, vector<2x256xf32>
    tpu.vector_store %arg2[%c0_3, %c0_4], %4 {strides = array<i32>} : memref<2x256xf32, #tpu.memory_space<vmem>>, vector<2x256xf32>,
    return
  }
  func.func @transform_0(%arg0: i32) -> (i32, i32, i32) {
    %c0_i32 = arith.constant 0 : i32
    %c0_i32_0 = arith.constant 0 : i32
    %c0_i32_1 = arith.constant 0 : i32
    %c0_i32_2 = arith.constant 0 : i32
    return %c0_i32, %c0_i32_0, %c0_i32_1 : i32, i32, i32
  }
  func.func @transform_1(%arg0: i32) -> (i32, i32) {
    %c0_i32 = arith.constant 0 : i32
    %c0_i32_0 = arith.constant 0 : i32
    %c0_i32_1 = arith.constant 0 : i32
    return %c0_i32, %c0_i32_0 : i32, i32
  }
}

</mosaic_0001>

<bundles_post_ra>
// kernel: _lambda_.108
= control target key start
LH: loop header
LB: loop body
LE: loop exit
PB: predicated region body
PF: predicated region fallthrough
CT: control target
= control target key end

     0   :  { %s385_s12 = smov 0   ;;  %s415_s0 = inlined_call_operand.vmem [shape: bf16[128,128], index: 0, kind: input, shape index: {}]   ;;  %s416_s1 = inlined_call_operand.vmem [shape: f32[1,128], index: 1, kind: input, shape index: {}]   ;;  %s417_s2 = inlined_call_operand.vmem [shape: f32[1,128], index: 2, kind: input, shape index: {}]   ;;  %s418_s3 = inlined_call_operand.vmem [shape: bf16[128,128], index: 3, kind: output, shape index: {}]  }
   0x1 LB: > { %s294_s13 = sadd.s32 4294967295, %s363_s12   ;;  %p298_p0 = scmp.ge.s32.totalorder %s363_s12, 1  ;;  %s363_s12 = sphi %s385_s12, %s13_s12  }
   0x2   : > { %p138_p1 = scmp.lt.s32.totalorder %s363_s12, 3 }
   0x4   : > { %p139_p2 = pnand %p298_p0, %p138_p1 }
   0x5   : > { %s299_s14 = sshll.u32 (!%p139_p2), %s294_s13, 3 }
   0x6   : > { %142 = sbr.rel (%p139_p2) target bundleno = 29 (0x1d), region = 32  ;;  %p163_p3 = scmp.lt.s32.totalorder (!%p139_p2), %s299_s14, 15 }
   0xb   : > { %s420_s14 = smov (!%p163_p3, %s299_s14), 15  ;;  %v355_v0 = vld [vmem:[%s416_s1] ss:$0 sm:$0xff] }
   0xc   : > { %s300_s15 = sshll.u32 %s420_s14, 2  ;;  %v356_v6 = vld [vmem:[%s417_s2] ss:$0 sm:$0xff] }
   0xd   : > { %s166_s18 = scalar_lea.vmem %s415_s0, %s300_s15  ;;  %s172_s25 = scalar_lea.vmem %s418_s3, %s300_s15 }
   0xe   : > { %v306_v1 = vld [vmem:[%s166_s18] sm:$0xff]   ;;  %v341_v2 = vld [vmem:[%s166_s18 + $0x8] sm:$0xff]   ;;  %v342_v3 = vld [vmem:[%s166_s18 + $0x10] sm:$0xff]  }
   0xf   : > { %v307_v4 = vunpack.c.l.bf16 %v306_v1  ;;  %v308_v5 = vunpack.c.h.bf16 %v306_v1  ;;  %v311_v7 = vunpack.c.l.bf16 %v341_v2  ;;  %v312_v8 = vunpack.c.h.bf16 %v341_v2  ;;  %v343_v9 = vld [vmem:[%s166_s18 + $0x18] sm:$0xff]  }
  0x10   : > { %v315_v10 = vunpack.c.l.bf16 %v342_v3  ;;  %v316_v11 = vunpack.c.h.bf16 %v342_v3  ;;  %v319_v12 = vunpack.c.l.bf16 %v343_v9  ;;  %v320_v13 = vunpack.c.h.bf16 %v343_v9 }
  0x11   : > { %v194_v14 = vmul.f32 %v355_v0, %v307_v4  ;;  %v195_v15 = vmul.f32 %v355_v0, %v308_v5  ;;  %v196_v16 = vmul.f32 %v355_v0, %v311_v7  ;;  %v197_v17 = vmul.f32 %v355_v0, %v312_v8 }
  0x12   : > { %v198_v18 = vmul.f32 %v355_v0, %v315_v10  ;;  %v199_v19 = vmul.f32 %v355_v0, %v316_v11  ;;  %v200_v20 = vmul.f32 %v355_v0, %v319_v12  ;;  %v201_v21 = vmul.f32 %v355_v0, %v320_v13 }
  0x13   : > { %v206_v22 = vadd.f32 %v356_v6, %v194_v14  ;;  %v207_v23 = vadd.f32 %v356_v6, %v195_v15  ;;  %v208_v24 = vadd.f32 %v356_v6, %v196_v16  ;;  %v209_v25 = vadd.f32 %v356_v6, %v197_v17 }
  0x14   : > { %v210_v26 = vadd.f32 %v356_v6, %v198_v18  ;;  %v211_v27 = vadd.f32 %v356_v6, %v199_v19  ;;  %v212_v28 = vadd.f32 %v356_v6, %v200_v20  ;;  %v213_v29 = vadd.f32 %v356_v6, %v201_v21 }
  0x15   : > { %v214_v30 = vmax.f32 %v206_v22, 0.0  ;;  %v215_v31 = vmax.f32 %v207_v23, 0.0  ;;  %v216_v32 = vmax.f32 %v208_v24, 0.0  ;;  %v217_v33 = vmax.f32 %v209_v25, 0.0 }
  0x16   : > { %v218_v34 = vmax.f32 %v210_v26, 0.0  ;;  %v219_v35 = vmax.f32 %v211_v27, 0.0  ;;  %v220_v36 = vmax.f32 %v212_v28, 0.0  ;;  %v221_v37 = vmax.f32 %v213_v29, 0.0 }
  0x17   : > { %v324_v38 = vpack.c.bf16 %v215_v31, %v214_v30  ;;  %v329_v39 = vpack.c.bf16 %v217_v33, %v216_v32 }
  0x18   : > { %v334_v40 = vpack.c.bf16 %v219_v35, %v218_v34  ;;  %v339_v41 = vpack.c.bf16 %v221_v37, %v220_v36 }
  0x19   : > { %325 = vst [vmem:[%s172_s25] sm:$0xff] %v324_v38  }
  0x1a   : > { %344 = vst [vmem:[%s172_s25 + $0x8] sm:$0xff] %v329_v39  }
  0x1b   : > { %345 = vst [vmem:[%s172_s25 + $0x10] sm:$0xff] %v334_v40  }
  0x1c   : > { %346 = vst [vmem:[%s172_s25 + $0x18] sm:$0xff] %v339_v41  }
  0x1d PF: > { %s13_s12 = sadd.s32 1, %s363_s12  }
  0x1e   : > { %p10_p4 = scmp.ge.s32.totalorder %s13_s12, 4  }
  0x20   :  { %12 = sbr.rel (!%p10_p4) target bundleno = 1 (0x1), region = 62 }

// kernel: _lambda_.107
= control target key start
LH: loop header
LB: loop body
LE: loop exit
PB: predicated region body
PF: predicated region fallthrough
CT: control target
= control target key end

     0   :  { %s931_s12 = smov 0   ;;  %s933_s13 = smov 0   ;;  %s1048_s0 = inlined_call_operand.vmem [shape: bf16[128,256], index: 0, kind: input, shape index: {}]   ;;  %s1049_s1 = inlined_call_operand.vmem [shape: bf16[256,128], index: 1, kind: input, shape index: {}]   ;;  %s1050_s2 = inlined_call_operand.vmem [shape: bf16[128,128], index: 2, kind: output, shape index: {0}]   ;;  %s1051_s3 = inlined_call_operand.vmem [shape: f32[2,2,128], index: 3, kind: output, shape index: {1}]  }
   0x1   :  { %s935_s14 = smov 0  }
   0x2 LB: > { %s26_s15 = sadd.s32 1, %s905_s13  ;;  %p694_p0 = scmp.ge.s32.totalorder %s909_s14, 1  ;;  %s909_s14 = sphi %s935_s14, %s14_s14   ;;  %s905_s13 = sphi %s933_s13, %s1053_s13   ;;  %s901_s12 = sphi %s931_s12, %s1052_s12  }
   0x3   : > { %p28_p1 = scmp.ge.s32.totalorder %s26_s15, 2  ;;  %p172_p2 = scmp.lt.s32.totalorder %s909_s14, 3 }
   0x5   : > { %s1055_s15 = smov (%p28_p1, %s26_s15), 0  ;;  %p173_p3 = pnand %p694_p0, %p172_p2 }
   0x6   : > { %s695_s28 = sshll.u32 (!%p173_p3), %s901_s12, 3  ;;  %p234_p5 = scmp.lt.s32.totalorder (!%p173_p3), %s901_s12, 1 }
   0x7   : > { %176 = sbr.rel (%p173_p3) target bundleno = 223 (0xdf), region = 28  ;;  %p212_p4 = scmp.lt.s32.totalorder (!%p173_p3), %s695_s28, 15 }
   0xc   : > { %v815_v0 = vld [vmem:[%s1049_s1 + $0x38] sm:$0xff]  ;;  %v814_v2 = vld [vmem:[%s1049_s1 + $0x30] sm:$0xff]  ;;  %v813_v4 = vld [vmem:[%s1049_s1 + $0x28] sm:$0xff]  ;;  %s1057_s28 = smov (!%p212_p4, %s695_s28), 15  ;;  %s1059_s12 = smov (!%p234_p5, %s901_s12), 1  ;;  %vm569_vm0 = vcmask 1040384  }
   0xd   : > { %v823_v1 = vld [vmem:[%s1049_s1 + $0x78] sm:$0xff]  ;;  %434 = vmatpush.bf16.msra.mxu0 %v815_v0  ;;  %847 = vmatpush.bf16.msra.mxu2 %v815_v0  ;;  %v822_v3 = vld [vmem:[%s1049_s1 + $0x70] sm:$0xff]  ;;  %v821_v5 = vld [vmem:[%s1049_s1 + $0x68] sm:$0xff]  ;;  %s799_s18 = sshll.u32 %s1057_s28, 3  ;;  %s699_s4 = sshll.u32 %s1057_s28, 2 }
   0xe   : > { %463 = vmatpush.bf16.msra.mxu1 %v823_v1  ;;  %855 = vmatpush.bf16.msra.mxu3 %v823_v1  ;;  %v812_v6 = vld [vmem:[%s1049_s1 + $0x20] sm:$0xff]  ;;  %v811_v8 = vld [vmem:[%s1049_s1 + $0x18] sm:$0xff]  ;;  %v810_v10 = vld [vmem:[%s1049_s1 + $0x10] sm:$0xff]  ;;  %s997_s23 = scalar_lea.vmem %s1048_s0, %s799_s18  ;;  %s1028_s7 = scalar_lea.vmem %s1050_s2, %s699_s4 }
   0xf   : > { %v820_v7 = vld [vmem:[%s1049_s1 + $0x60] sm:$0xff]  ;;  %v819_v9 = vld [vmem:[%s1049_s1 + $0x58] sm:$0xff]  ;;  %v818_v11 = vld [vmem:[%s1049_s1 + $0x50] sm:$0xff]  ;;  %s700_s28 = sshll.u32 %s1059_s12, 1 }
  0x10   : > { %v809_v12 = vld [vmem:[%s1049_s1 + $0x8] sm:$0xff]  ;;  %v808_v14 = vld [vmem:[%s1049_s1] sm:$0xff]  ;;  %v711_v28 = vld [vmem:[%s997_s23 + $0x10] sm:$0xf]  ;;  %s237_s10 = scalar_lea.vmem %s1051_s3, %s700_s28 }
  0x11   : > { %435 = vmatpush.bf16.msra.mxu0 %v814_v2  ;;  %848 = vmatpush.bf16.msra.mxu2 %v814_v2  ;;  %v817_v13 = vld [vmem:[%s1049_s1 + $0x48] sm:$0xff]  ;;  %v816_v15 = vld [vmem:[%s1049_s1 + $0x40] sm:$0xff]  ;;  %v803_v29 = vld [vmem:[%s997_s23 + $0x14] sm:$0xf0] }
  0x12   : > { %464 = vmatpush.bf16.msra.mxu1 %v822_v3  ;;  %856 = vmatpush.bf16.msra.mxu3 %v822_v3  ;;  %v703_v16 = vld [vmem:[%s997_s23] sm:$0xf]  ;;  %v801_v17 = vld [vmem:[%s997_s23 + $0x4] sm:$0xf0]  ;;  %v800_v20 = vld [vmem:[%s997_s23 + $0x4] sm:$0xf]  ;;  %v712_v36 = vor.u32 %v803_v29, %v711_v28 }
  0x13   : > { %v719_v18 = vld [vmem:[%s997_s23 + $0x20] sm:$0xf]  ;;  %v805_v19 = vld [vmem:[%s997_s23 + $0x24] sm:$0xf0]  ;;  %v705_v21 = vld [vmem:[%s997_s23 + $0x8] sm:$0xf0]  ;;  %v704_v24 = vor.u32 %v801_v17, %v703_v16 }
  0x14   : > { %v804_v22 = vld [vmem:[%s997_s23 + $0x24] sm:$0xf]  ;;  %v721_v23 = vld [vmem:[%s997_s23 + $0x28] sm:$0xf0]  ;;  %v720_v25 = vor.u32 %v805_v19, %v719_v18  ;;  %v708_v26 = vor.u32 %v800_v20, %v705_v21  ;;  %v727_v30 = vld [vmem:[%s997_s23 + $0x30] sm:$0xf] }
  0x15   : > { %436 = vmatpush.bf16.msra.mxu0 %v813_v4  ;;  %849 = vmatpush.bf16.msra.mxu2 %v813_v4  ;;  %v724_v27 = vor.u32 %v804_v22, %v721_v23  ;;  %v807_v31 = vld [vmem:[%s997_s23 + $0x34] sm:$0xf0]  ;;  %v802_v32 = vld [vmem:[%s997_s23 + $0x14] sm:$0xf]  ;;  %v713_v33 = vld [vmem:[%s997_s23 + $0x18] sm:$0xf0] }
  0x16   : > { %465 = vmatpush.bf16.msra.mxu1 %v821_v5  ;;  %857 = vmatpush.bf16.msra.mxu3 %v821_v5  ;;  %v806_v34 = vld [vmem:[%s997_s23 + $0x34] sm:$0xf]  ;;  %v729_v35 = vld [vmem:[%s997_s23 + $0x38] sm:$0xf0]  ;;  %v728_v37 = vor.u32 %v807_v31, %v727_v30  ;;  %v716_v38 = vor.u32 %v802_v32, %v713_v33 }
  0x17   : > { %v732_v39 = vor.u32 %v806_v34, %v729_v35 }
  0x19   : > { %437 = vmatpush.bf16.msra.mxu0 %v812_v6  ;;  %850 = vmatpush.bf16.msra.mxu2 %v812_v6 }
  0x1a   : > { %466 = vmatpush.bf16.msra.mxu1 %v820_v7  ;;  %858 = vmatpush.bf16.msra.mxu3 %v820_v7 }
  0x1d   : > { %438 = vmatpush.bf16.msra.mxu0 %v811_v8  ;;  %851 = vmatpush.bf16.msra.mxu2 %v811_v8 }
  0x1e   : > { %467 = vmatpush.bf16.msra.mxu1 %v819_v9  ;;  %859 = vmatpush.bf16.msra.mxu3 %v819_v9 }
  0x21   : > { %439 = vmatpush.bf16.msra.mxu0 %v810_v10  ;;  %852 = vmatpush.bf16.msra.mxu2 %v810_v10 }
  0x22   : > { %468 = vmatpush.bf16.msra.mxu1 %v818_v11  ;;  %860 = vmatpush.bf16.msra.mxu3 %v818_v11 }
  0x25   : > { %440 = vmatpush.bf16.msra.mxu0 %v809_v12  ;;  %853 = vmatpush.bf16.msra.mxu2 %v809_v12 }
  0x26   : > { %469 = vmatpush.bf16.msra.mxu1 %v817_v13  ;;  %861 = vmatpush.bf16.msra.mxu3 %v817_v13 }
  0x29   : > { %441 = vmatpush.bf16.msra.mxu0 %v808_v14  ;;  %854 = vmatpush.bf16.msra.mxu2 %v808_v14 }
  0x2a   : > { %470 = vmatpush.bf16.msra.mxu1 %v816_v15  ;;  %862 = vmatpush.bf16.msra.mxu3 %v816_v15 }
  0x2c   : > { %442 = vmatmul.bf16.vlgmr.msra.gmra.mxu0 %v704_v24  ;;  %452 = vmatmul.bf16.vlgmr.msra.gmra.mxu2 %v720_v25 }
  0x2d   : > { %471 = vmatmul.bf16.vlgmr.msra.gmra.mxu1 %v708_v26  ;;  %481 = vmatmul.bf16.vlgmr.msra.gmra.mxu3 %v724_v27 }
  0x3c   : > { %447 = vmatmul.bf16.gmra.mxu0 %v712_v36  ;;  %457 = vmatmul.bf16.gmra.mxu2 %v728_v37 }
  0x3d   : > { %476 = vmatmul.bf16.gmra.mxu1 %v716_v38  ;;  %486 = vmatmul.bf16.gmra.mxu3 %v732_v39 }
  0xa9   : > { %v443_v40 = vpop.f32.mrf.mxu0 }
  0xaa   : > { %v472_v41 = vpop.f32.mrf.mxu1 }
  0xab   : > { %v473_v46 = vadd.f32 %v472_v41, %v443_v40 }
  0xad   : > { %v548_v60 = vmul.f32 %v473_v46, %v473_v46 }
  0xaf   : > { %v453_v42 = vpop.f32.mrf.mxu2 }
  0xb0   : > { %v482_v43 = vpop.f32.mrf.mxu3 }
  0xb1   : > { %v445_v44 = vpop.f32.mrf.mxu0  ;;  %v483_v51 = vadd.f32 %v482_v43, %v453_v42 }
  0xb2   : > { %v474_v45 = vpop.f32.mrf.mxu1 }
  0xb3   : > { %v475_v47 = vadd.f32 %v474_v45, %v445_v44  ;;  %v552_v8 = vmul.f32 %v483_v51, %v483_v51 }
  0xb5   : > { %v827_v48 = vpack.c.bf16 %v475_v47, %v473_v46  ;;  %v549_v57 = vmul.f32 %v475_v47, %v475_v47  ;;  %v535_v61 = vadd.f32 %v475_v47, %v473_v46 }
  0xb7   : > { %828 = vst [vmem:[%s1028_s7] sm:$0xff] %v827_v48   ;;  %v455_v49 = vpop.f32.mrf.mxu2  ;;  %v556_v1 = vadd.f32 %v549_v57, %v548_v60 }
  0xb8   : > { %v484_v50 = vpop.f32.mrf.mxu3 }
  0xb9   : > { %v485_v52 = vadd.f32 %v484_v50, %v455_v49  ;;  %v448_v53 = vpop.f32.mrf.mxu0 }
  0xba   : > { %v477_v54 = vpop.f32.mrf.mxu1 }
  0xbb   : > { %v837_v55 = vpack.c.bf16 %v485_v52, %v483_v51  ;;  %v478_v56 = vadd.f32 %v477_v54, %v448_v53  ;;  %v553_v14 = vmul.f32 %v485_v52, %v485_v52 }
  0xbd   : > { %845 = vst [vmem:[%s1028_s7 + $0x10] sm:$0xff] %v837_v55   ;;  %v550_v62 = vmul.f32 %v478_v56, %v478_v56  ;;  %v536_v2 = vadd.f32 %v535_v61, %v478_v56 }
  0xbf   : > { %v458_v58 = vpop.f32.mrf.mxu2  ;;  %v557_v4 = vadd.f32 %v556_v1, %v550_v62 }
  0xc0   : > { %v487_v59 = vpop.f32.mrf.mxu3 }
  0xc1   : > { %v450_v63 = vpop.f32.mrf.mxu0  ;;  %v488_v9 = vadd.f32 %v487_v59, %v458_v58 }
  0xc2   : > { %v479_v0 = vpop.f32.mrf.mxu1 }
  0xc3   : > { %v480_v3 = vadd.f32 %v479_v0, %v450_v63  ;;  %v554_v18 = vmul.f32 %v488_v9, %v488_v9 }
  0xc5   : > { %v832_v5 = vpack.c.bf16 %v480_v3, %v478_v56  ;;  %v537_v6 = vadd.f32 %v536_v2, %v480_v3  ;;  %v551_v7 = vmul.f32 %v480_v3, %v480_v3 }
  0xc7   : > { %844 = vst [vmem:[%s1028_s7 + $0x8] sm:$0xff] %v832_v5   ;;  %v538_v10 = vadd.f32 %v537_v6, %v483_v51  ;;  %v558_v11 = vadd.f32 %v557_v4, %v551_v7  ;;  %v460_v12 = vpop.f32.mrf.mxu2 }
  0xc8   : > { %v489_v13 = vpop.f32.mrf.mxu3 }
  0xc9   : > { %v559_v15 = vadd.f32 %v558_v11, %v552_v8  ;;  %v490_v16 = vadd.f32 %v489_v13, %v460_v12  ;;  %v539_v17 = vadd.f32 %v538_v10, %v485_v52 }
  0xcb   : > { %v842_v19 = vpack.c.bf16 %v490_v16, %v488_v9  ;;  %v540_v20 = vadd.f32 %v539_v17, %v488_v9  ;;  %v560_v21 = vadd.f32 %v559_v15, %v553_v14  ;;  %v555_v23 = vmul.f32 %v490_v16, %v490_v16 }
  0xcd   : > { %846 = vst [vmem:[%s1028_s7 + $0x18] sm:$0xff] %v842_v19   ;;  %v541_v22 = vadd.f32 %v540_v20, %v490_v16  ;;  %v561_v24 = vadd.f32 %v560_v21, %v554_v18 }
  0xcf   : > { %v542_v25 = vrot.slane %v541_v22, 4  ;;  %v562_v26 = vadd.f32 %v561_v24, %v555_v23 }
  0xd1   : > { %v543_v27 = vadd.f32 %v542_v25, %v541_v22  ;;  %v563_v28 = vrot.slane %v562_v26, 4 }
  0xd3   : > { %v544_v29 = vrot.slane %v543_v27, 2  ;;  %v564_v30 = vadd.f32 %v563_v28, %v562_v26 }
  0xd5   : > { %v545_v31 = vadd.f32 %v544_v29, %v543_v27  ;;  %v565_v32 = vrot.slane %v564_v30, 2 }
  0xd7   : > { %v546_v33 = vrot.slane %v545_v31, 1  ;;  %v566_v34 = vadd.f32 %v565_v32, %v564_v30 }
  0xd9   : > { %v567_v35 = vrot.slane %v566_v34, 1  ;;  %v547_v36 = vadd.f32 %v546_v33, %v545_v31 }
  0xdb   : > { %v568_v37 = vadd.f32 %v567_v35, %v566_v34 }
  0xdd   : > { %v570_v38 = vsel %vm569_vm0, %v547_v36, %v568_v37 }
  0xde   : > { %571 = vst [vmem:[%s237_s10] sm:$0x3] %v570_v38 }
  0xdf PF: > { %s14_s14 = sadd.s32 1, %s909_s14   ;;  %s1052_s12 = smov %s905_s13 }
  0xe0   : > { %p11_p6 = scmp.ge.s32.totalorder %s14_s14, 4   ;;  %s1053_s13 = smov %s1055_s15 }
  0xe2   :  { %13 = sbr.rel (!%p11_p6) target bundleno = 2 (0x2), region = 81 }

// kernel: _lambda_.114
= control target key start
LH: loop header
LB: loop body
LE: loop exit
PB: predicated region body
PF: predicated region fallthrough
CT: control target
= control target key end

     0   :  { %s308_s12 = smov 0   ;;  %s325_s0 = inlined_call_operand.vmem [shape: bf16[32,128], index: 0, kind: input, shape index: {}]   ;;  %s326_s1 = inlined_call_operand.vmem [shape: f32[1,128], index: 1, kind: input, shape index: {}]   ;;  %s327_s2 = inlined_call_operand.vmem [shape: f32[1,128], index: 2, kind: input, shape index: {}]   ;;  %s328_s3 = inlined_call_operand.vmem [shape: bf16[32,128], index: 3, kind: output, shape index: {}]  }
   0x1 LB: > { %s250_s13 = sadd.s32 4294967295, %s286_s12   ;;  %p254_p0 = scmp.ge.s32.totalorder %s286_s12, 1  ;;  %s286_s12 = sphi %s308_s12, %s13_s12  }
   0x2   : > { %p138_p1 = scmp.lt.s32.totalorder %s286_s12, 3 }
   0x4   : > { %p139_p2 = pnand %p254_p0, %p138_p1 }
   0x5   : > { %s255_s14 = sshll.u32 (!%p139_p2), %s250_s13, 1 }
   0x6   : > { %142 = sbr.rel (%p139_p2) target bundleno = 24 (0x18), region = 32  ;;  %p163_p3 = scmp.lt.s32.totalorder (!%p139_p2), %s255_s14, 3 }
   0xb   : > { %s330_s14 = smov (!%p163_p3, %s255_s14), 3  ;;  %v278_v0 = vld [vmem:[%s326_s1] ss:$0 sm:$0xff] }
   0xc   : > { %s256_s15 = sshll.u32 %s330_s14, 2  ;;  %v279_v4 = vld [vmem:[%s327_s2] ss:$0 sm:$0xff] }
   0xd   : > { %s166_s18 = scalar_lea.vmem %s325_s0, %s256_s15  ;;  %s172_s25 = scalar_lea.vmem %s328_s3, %s256_s15 }
   0xe   : > { %v262_v1 = vld [vmem:[%s166_s18] sm:$0xff]  }
   0xf   : > { %v263_v2 = vunpack.c.l.bf16 %v262_v1  ;;  %v264_v3 = vunpack.c.h.bf16 %v262_v1 }
  0x11   : > { %v182_v5 = vmul.f32 %v278_v0, %v263_v2  ;;  %v183_v6 = vmul.f32 %v278_v0, %v264_v3 }
  0x13   : > { %v188_v7 = vadd.f32 %v279_v4, %v182_v5  ;;  %v189_v8 = vadd.f32 %v279_v4, %v183_v6 }
  0x15   : > { %v268_v9 = vpack.c.bf16 %v189_v8, %v188_v7 }
  0x17   : > { %269 = vst [vmem:[%s172_s25] sm:$0xff] %v268_v9  }
  0x18 PF: > { %s13_s12 = sadd.s32 1, %s286_s12  }
  0x19   : > { %p10_p4 = scmp.ge.s32.totalorder %s13_s12, 4  }
  0x1b   :  { %12 = sbr.rel (!%p10_p4) target bundleno = 1 (0x1), region = 62 }

// kernel: _lambda_.110
= control target key start
LH: loop header
LB: loop body
LE: loop exit
PB: predicated region body
PF: predicated region fallthrough
CT: control target
= control target key end

     0   :  { %s310_s12 = smov 0   ;;  %s327_s0 = inlined_call_operand.vmem [shape: bf16[32,128], index: 0, kind: input, shape index: {}]   ;;  %s328_s1 = inlined_call_operand.vmem [shape: f32[1,128], index: 1, kind: input, shape index: {}]   ;;  %s329_s2 = inlined_call_operand.vmem [shape: f32[1,128], index: 2, kind: input, shape index: {}]   ;;  %s330_s3 = inlined_call_operand.vmem [shape: bf16[32,128], index: 3, kind: output, shape index: {}]  }
   0x1 LB: > { %s252_s13 = sadd.s32 4294967295, %s288_s12   ;;  %p256_p0 = scmp.ge.s32.totalorder %s288_s12, 1  ;;  %s288_s12 = sphi %s310_s12, %s13_s12  }
   0x2   : > { %p138_p1 = scmp.lt.s32.totalorder %s288_s12, 3 }
   0x4   : > { %p139_p2 = pnand %p256_p0, %p138_p1 }
   0x5   : > { %s257_s14 = sshll.u32 (!%p139_p2), %s252_s13, 1 }
   0x6   : > { %142 = sbr.rel (%p139_p2) target bundleno = 26 (0x1a), region = 32  ;;  %p163_p3 = scmp.lt.s32.totalorder (!%p139_p2), %s257_s14, 3 }
   0xb   : > { %s332_s14 = smov (!%p163_p3, %s257_s14), 3  ;;  %v280_v0 = vld [vmem:[%s328_s1] ss:$0 sm:$0xff] }
   0xc   : > { %s258_s15 = sshll.u32 %s332_s14, 2  ;;  %v281_v4 = vld [vmem:[%s329_s2] ss:$0 sm:$0xff] }
   0xd   : > { %s166_s18 = scalar_lea.vmem %s327_s0, %s258_s15  ;;  %s172_s25 = scalar_lea.vmem %s330_s3, %s258_s15 }
   0xe   : > { %v264_v1 = vld [vmem:[%s166_s18] sm:$0xff]  }
   0xf   : > { %v265_v2 = vunpack.c.l.bf16 %v264_v1  ;;  %v266_v3 = vunpack.c.h.bf16 %v264_v1 }
  0x11   : > { %v182_v5 = vmul.f32 %v280_v0, %v265_v2  ;;  %v183_v6 = vmul.f32 %v280_v0, %v266_v3 }
  0x13   : > { %v188_v7 = vadd.f32 %v281_v4, %v182_v5  ;;  %v189_v8 = vadd.f32 %v281_v4, %v183_v6 }
  0x15   : > { %v190_v9 = vmax.f32 %v188_v7, 0.0  ;;  %v191_v10 = vmax.f32 %v189_v8, 0.0 }
  0x17   : > { %v270_v11 = vpack.c.bf16 %v191_v10, %v190_v9 }
  0x19   : > { %271 = vst [vmem:[%s172_s25] sm:$0xff] %v270_v11  }
  0x1a PF: > { %s13_s12 = sadd.s32 1, %s288_s12  }
  0x1b   : > { %p10_p4 = scmp.ge.s32.totalorder %s13_s12, 4  }
  0x1d   :  { %12 = sbr.rel (!%p10_p4) target bundleno = 1 (0x1), region = 62 }

// kernel: _lambda_.113
= control target key start
LH: loop header
LB: loop body
LE: loop exit
PB: predicated region body
PF: predicated region fallthrough
CT: control target
= control target key end

     0   :  { %s601_s12 = smov 0   ;;  %s603_s13 = smov 0   ;;  %s666_s0 = inlined_call_operand.vmem [shape: bf16[32,128], index: 0, kind: input, shape index: {}]   ;;  %s667_s1 = inlined_call_operand.vmem [shape: bf16[128,128], index: 1, kind: input, shape index: {}]   ;;  %s668_s2 = inlined_call_operand.vmem [shape: bf16[32,128], index: 2, kind: output, shape index: {0}]   ;;  %s669_s3 = inlined_call_operand.vmem [shape: f32[2,2,128], index: 3, kind: output, shape index: {1}]  }
   0x1   :  { %s605_s14 = smov 0  }
   0x2 LB: > { %s26_s15 = sadd.s32 1, %s575_s13  ;;  %p475_p0 = scmp.ge.s32.totalorder %s579_s14, 1  ;;  %s579_s14 = sphi %s605_s14, %s14_s14   ;;  %s575_s13 = sphi %s603_s13, %s671_s13   ;;  %s571_s12 = sphi %s601_s12, %s670_s12  }
   0x3   : > { %p28_p1 = scmp.ge.s32.totalorder %s26_s15, 2  ;;  %p169_p2 = scmp.lt.s32.totalorder %s579_s14, 3 }
   0x5   : > { %s673_s15 = smov (%p28_p1, %s26_s15), 0  ;;  %p170_p3 = pnand %p475_p0, %p169_p2 }
   0x6   : > { %s476_s24 = sshll.u32 (!%p170_p3), %s571_s12, 1  ;;  %p226_p5 = scmp.lt.s32.totalorder (!%p170_p3), %s571_s12, 1 }
   0x7   : > { %173 = sbr.rel (%p170_p3) target bundleno = 196 (0xc4), region = 28  ;;  %p206_p4 = scmp.lt.s32.totalorder (!%p170_p3), %s476_s24, 3 }
   0xc   : > { %v527_v0 = vld [vmem:[%s667_s1 + $0x38] sm:$0xff]  ;;  %v526_v1 = vld [vmem:[%s667_s1 + $0x30] sm:$0xff]  ;;  %v525_v2 = vld [vmem:[%s667_s1 + $0x28] sm:$0xff]  ;;  %s675_s24 = smov (!%p206_p4, %s476_s24), 3  ;;  %s677_s12 = smov (!%p226_p5, %s571_s12), 1  ;;  %vm353_vm0 = vcmask 1040384  }
   0xd   : > { %310 = vmatpush.bf16.msra.mxu0 %v527_v0  ;;  %v524_v3 = vld [vmem:[%s667_s1 + $0x20] sm:$0xff]  ;;  %v523_v4 = vld [vmem:[%s667_s1 + $0x18] sm:$0xff]  ;;  %v522_v5 = vld [vmem:[%s667_s1 + $0x10] sm:$0xff]  ;;  %s477_s4 = sshll.u32 %s675_s24, 2  ;;  %s480_s17 = sshll.u32 %s677_s12, 1 }
   0xe   : > { %v521_v6 = vld [vmem:[%s667_s1 + $0x8] sm:$0xff]  ;;  %v520_v7 = vld [vmem:[%s667_s1] sm:$0xff]  ;;  %s212_s9 = scalar_lea.vmem %s666_s0, %s477_s4  ;;  %s224_s16 = scalar_lea.vmem %s668_s2, %s477_s4 }
   0xf   : > { %v519_v8 = vld [vmem:[%s212_s9] sm:$0xff]  ;;  %s229_s20 = scalar_lea.vmem %s669_s3, %s480_s17 }
  0x11   : > { %311 = vmatpush.bf16.msra.mxu0 %v526_v1 }
  0x15   : > { %312 = vmatpush.bf16.msra.mxu0 %v525_v2 }
  0x19   : > { %313 = vmatpush.bf16.msra.mxu0 %v524_v3 }
  0x1d   : > { %314 = vmatpush.bf16.msra.mxu0 %v523_v4 }
  0x21   : > { %315 = vmatpush.bf16.msra.mxu0 %v522_v5 }
  0x25   : > { %316 = vmatpush.bf16.msra.mxu0 %v521_v6 }
  0x29   : > { %317 = vmatpush.bf16.msra.mxu0 %v520_v7 }
  0x2c   : > { %318 = vmatmul.bf16.vlgmr.msra.gmra.mxu0 %v519_v8 }
  0xa9   : > { %v319_v9 = vpop.f32.mrf.mxu0 }
  0xaa   : > { %v344_v11 = vmul.f32 %v319_v9, %v319_v9 }
  0xb1   : > { %v321_v10 = vpop.f32.mrf.mxu0 }
  0xb2   : > { %v531_v12 = vpack.c.bf16 %v321_v10, %v319_v9  ;;  %v337_v13 = vadd.f32 %v321_v10, %v319_v9  ;;  %v345_v14 = vmul.f32 %v321_v10, %v321_v10 }
  0xb4   : > { %532 = vst [vmem:[%s224_s16] sm:$0xff] %v531_v12   ;;  %v338_v15 = vrot.slane %v337_v13, 4  ;;  %v346_v16 = vadd.f32 %v345_v14, %v344_v11 }
  0xb6   : > { %v339_v17 = vadd.f32 %v338_v15, %v337_v13  ;;  %v347_v18 = vrot.slane %v346_v16, 4 }
  0xb8   : > { %v340_v19 = vrot.slane %v339_v17, 2  ;;  %v348_v20 = vadd.f32 %v347_v18, %v346_v16 }
  0xba   : > { %v341_v21 = vadd.f32 %v340_v19, %v339_v17  ;;  %v349_v22 = vrot.slane %v348_v20, 2 }
  0xbc   : > { %v342_v23 = vrot.slane %v341_v21, 1  ;;  %v350_v24 = vadd.f32 %v349_v22, %v348_v20 }
  0xbe   : > { %v351_v25 = vrot.slane %v350_v24, 1  ;;  %v343_v26 = vadd.f32 %v342_v23, %v341_v21 }
  0xc0   : > { %v352_v27 = vadd.f32 %v351_v25, %v350_v24 }
  0xc2   : > { %v354_v28 = vsel %vm353_vm0, %v343_v26, %v352_v27 }
  0xc3   : > { %355 = vst [vmem:[%s229_s20] sm:$0x3] %v354_v28 }
  0xc4 PF: > { %s14_s14 = sadd.s32 1, %s579_s14   ;;  %s670_s12 = smov %s575_s13 }
  0xc5   : > { %p11_p6 = scmp.ge.s32.totalorder %s14_s14, 4   ;;  %s671_s13 = smov %s673_s15 }
  0xc7   :  { %13 = sbr.rel (!%p11_p6) target bundleno = 2 (0x2), region = 81 }

// kernel: _lambda_.116
= control target key start
LH: loop header
LB: loop body
LE: loop exit
PB: predicated region body
PF: predicated region fallthrough
CT: control target
= control target key end

     0   :  { %s388_s15 = smov 0   ;;  %s414_s0 = inlined_call_operand.vmem [shape: bf16[32,128], index: 0, kind: input, shape index: {}]   ;;  %s415_s1 = inlined_call_operand.vmem [shape: f32[1,128], index: 1, kind: input, shape index: {}]   ;;  %s416_s2 = inlined_call_operand.vmem [shape: f32[1,128], index: 2, kind: input, shape index: {}]   ;;  %s417_s3 = inlined_call_operand.vmem [shape: bf16[32,128], index: 3, kind: input, shape index: {}]   ;;  %s418_s4 = inlined_call_operand.vmem [shape: bf16[32,128], index: 4, kind: output, shape index: {}]  }
   0x1 LB: > { %s319_s16 = sadd.s32 4294967295, %s361_s15   ;;  %p323_p0 = scmp.ge.s32.totalorder %s361_s15, 1  ;;  %s361_s15 = sphi %s388_s15, %s14_s15  }
   0x2   : > { %p174_p1 = scmp.lt.s32.totalorder %s361_s15, 3 }
   0x4   : > { %p175_p2 = pnand %p323_p0, %p174_p1 }
   0x5   : > { %s324_s17 = sshll.u32 (!%p175_p2), %s319_s16, 1 }
   0x6   : > { %178 = sbr.rel (%p175_p2) target bundleno = 28 (0x1c), region = 36  ;;  %p206_p3 = scmp.lt.s32.totalorder (!%p175_p2), %s324_s17, 3 }
   0xb   : > { %s420_s17 = smov (!%p206_p3, %s324_s17), 3  ;;  %v353_v0 = vld [vmem:[%s415_s1] ss:$0 sm:$0xff] }
   0xc   : > { %s325_s18 = sshll.u32 %s420_s17, 2  ;;  %v354_v5 = vld [vmem:[%s416_s2] ss:$0 sm:$0xff] }
   0xd   : > { %s209_s21 = scalar_lea.vmem %s414_s0, %s325_s18  ;;  %s215_s24 = scalar_lea.vmem %s417_s3, %s325_s18 }
   0xe   : > { %v333_v1 = vld [vmem:[%s209_s21] sm:$0xff]   ;;  %s221_s5 = scalar_lea.vmem %s418_s4, %s325_s18 }
   0xf   : > { %v337_v2 = vld [vmem:[%s215_s24] sm:$0xff]   ;;  %v334_v3 = vunpack.c.l.bf16 %v333_v1  ;;  %v335_v4 = vunpack.c.h.bf16 %v333_v1 }
  0x10   : > { %v338_v8 = vunpack.c.l.bf16 %v337_v2  ;;  %v339_v9 = vunpack.c.h.bf16 %v337_v2 }
  0x11   : > { %v231_v6 = vmul.f32 %v353_v0, %v334_v3  ;;  %v232_v7 = vmul.f32 %v353_v0, %v335_v4 }
  0x13   : > { %v237_v10 = vadd.f32 %v354_v5, %v231_v6  ;;  %v238_v11 = vadd.f32 %v354_v5, %v232_v7 }
  0x15   : > { %v243_v12 = vadd.f32 %v338_v8, %v237_v10  ;;  %v244_v13 = vadd.f32 %v339_v9, %v238_v11 }
  0x17   : > { %v245_v14 = vmax.f32 %v243_v12, 0.0  ;;  %v246_v15 = vmax.f32 %v244_v13, 0.0 }
  0x19   : > { %v343_v16 = vpack.c.bf16 %v246_v15, %v245_v14 }
  0x1b   : > { %344 = vst [vmem:[%s221_s5] sm:$0xff] %v343_v16  }
  0x1c PF: > { %s14_s15 = sadd.s32 1, %s361_s15  }
  0x1d   : > { %p11_p4 = scmp.ge.s32.totalorder %s14_s15, 4  }
  0x1f   :  { %13 = sbr.rel (!%p11_p4) target bundleno = 1 (0x1), region = 69 }

// kernel: _lambda_.133
= control target key start
LH: loop header
LB: loop body
LE: loop exit
PB: predicated region body
PF: predicated region fallthrough
CT: control target
= control target key end

     0   :  { %vm118_vm0 = vcmask 1040384   ;;  %s222_s1 = inlined_call_operand.vmem [shape: bf16[128,128], index: 1, kind: input, shape index: {}]   ;;  %s223_s0 = inlined_call_operand.vmem [shape: bf16[8,128], index: 0, kind: input, shape index: {}]   ;;  %s224_s2 = inlined_call_operand.vmem [shape: bf16[8,128], index: 2, kind: output, shape index: {0}]   ;;  %s225_s3 = inlined_call_operand.vmem [shape: f32[1,2,128], index: 3, kind: output, shape index: {1}]  }
   0x1   :  { %v168_v0 = vld [vmem:[%s222_s1 + $0x38] sm:$0xff]  ;;  %v167_v1 = vld [vmem:[%s222_s1 + $0x30] sm:$0xff]  ;;  %v166_v2 = vld [vmem:[%s222_s1 + $0x28] sm:$0xff] }
   0x2   :  { %84 = vmatpush.bf16.msra.mxu0 %v168_v0  ;;  %v165_v3 = vld [vmem:[%s222_s1 + $0x20] sm:$0xff]  ;;  %v164_v4 = vld [vmem:[%s222_s1 + $0x18] sm:$0xff]  ;;  %v163_v5 = vld [vmem:[%s222_s1 + $0x10] sm:$0xff] }
   0x3   :  { %v162_v6 = vld [vmem:[%s222_s1 + $0x8] sm:$0xff]  ;;  %v161_v7 = vld [vmem:[%s222_s1] sm:$0xff] }
   0x4   :  { %v19_v8 = vld [vmem:[%s223_s0] sm:$0xf] }
   0x6   :  { %85 = vmatpush.bf16.msra.mxu0 %v167_v1 }
   0xa   :  { %86 = vmatpush.bf16.msra.mxu0 %v166_v2 }
   0xe   :  { %87 = vmatpush.bf16.msra.mxu0 %v165_v3 }
  0x12   :  { %88 = vmatpush.bf16.msra.mxu0 %v164_v4 }
  0x16   :  { %89 = vmatpush.bf16.msra.mxu0 %v163_v5 }
  0x1a   :  { %90 = vmatpush.bf16.msra.mxu0 %v162_v6 }
  0x1e   :  { %91 = vmatpush.bf16.msra.mxu0 %v161_v7 }
  0x21   :  { %92 = vmatmul.bf16.vlgmr.msra.gmra.mxu0 %v19_v8 }
  0x9e   :  { %v93_v9 = vpop.f32.mrf.mxu0 }
  0x9f   :  { %v103_v10 = vpack.c.bf16 %v93_v9, %v93_v9  ;;  %v105_v11 = vrot.slane %v93_v9, 4  ;;  %v111_v12 = vmul.f32 %v93_v9, %v93_v9 }
  0xa1   :  { %104 = vst [vmem:[%s224_s2] sm:$0xf] %v103_v10  ;;  %v106_v13 = vadd.f32 %v105_v11, %v93_v9  ;;  %v112_v14 = vrot.slane %v111_v12, 4 }
  0xa3   :  { %v107_v15 = vrot.slane %v106_v13, 2  ;;  %v113_v16 = vadd.f32 %v112_v14, %v111_v12 }
  0xa5   :  { %v108_v17 = vadd.f32 %v107_v15, %v106_v13  ;;  %v114_v18 = vrot.slane %v113_v16, 2 }
  0xa6   :  { %v95_v19 = vpop.f32.mrf.mxu0 }
  0xa7   :  { %v109_v20 = vrot.slane %v108_v17, 1  ;;  %v115_v21 = vadd.f32 %v114_v18, %v113_v16 }
  0xa9   :  { %v116_v22 = vrot.slane %v115_v21, 1  ;;  %v110_v23 = vadd.f32 %v109_v20, %v108_v17 }
  0xab   :  { %v117_v24 = vadd.f32 %v116_v22, %v115_v21 }
  0xad   :  { %v119_v25 = vsel %vm118_vm0, %v110_v23, %v117_v24 }
  0xae   :  { %120 = vst [vmem:[%s225_s3] sm:$0x3] %v119_v25 }

// kernel: _lambda_.134
= control target key start
LH: loop header
LB: loop body
LE: loop exit
PB: predicated region body
PF: predicated region fallthrough
CT: control target
= control target key end

     0   :  { %s66_s0 = inlined_call_operand.vmem [shape: bf16[8,128], index: 0, kind: input, shape index: {}]   ;;  %s67_s1 = inlined_call_operand.vmem [shape: f32[1,128], index: 1, kind: input, shape index: {}]   ;;  %s68_s2 = inlined_call_operand.vmem [shape: f32[1,128], index: 2, kind: input, shape index: {}]   ;;  %s69_s3 = inlined_call_operand.vmem [shape: bf16[8,128], index: 3, kind: output, shape index: {}]  }
   0x1   :  { %v14_v0 = vld [vmem:[%s66_s0] sm:$0xf] }
   0x2   :  { %v32_v1 = vld [vmem:[%s67_s1] ss:$0 sm:$0xff]  ;;  %v15_v2 = vunpack.c.l.bf16 %v14_v0 }
   0x3   :  { %v33_v3 = vld [vmem:[%s68_s2] ss:$0 sm:$0xff] }
   0x4   :  { %v20_v4 = vmul.f32 %v32_v1, %v15_v2 }
   0x6   :  { %v25_v5 = vadd.f32 %v33_v3, %v20_v4 }
   0x8   :  { %v26_v6 = vpack.c.bf16 %v25_v5, %v25_v5 }
   0xa   :  { %27 = vst [vmem:[%s69_s3] sm:$0xf] %v26_v6 }

// kernel: _lambda_.132
= control target key start
LH: loop header
LB: loop body
LE: loop exit
PB: predicated region body
PF: predicated region fallthrough
CT: control target
= control target key end

     0   :  { %s67_s0 = inlined_call_operand.vmem [shape: bf16[8,128], index: 0, kind: input, shape index: {}]   ;;  %s68_s1 = inlined_call_operand.vmem [shape: f32[1,128], index: 1, kind: input, shape index: {}]   ;;  %s69_s2 = inlined_call_operand.vmem [shape: f32[1,128], index: 2, kind: input, shape index: {}]   ;;  %s70_s3 = inlined_call_operand.vmem [shape: bf16[8,128], index: 3, kind: output, shape index: {}]  }
   0x1   :  { %v14_v0 = vld [vmem:[%s67_s0] sm:$0xf] }
   0x2   :  { %v33_v1 = vld [vmem:[%s68_s1] ss:$0 sm:$0xff]  ;;  %v15_v2 = vunpack.c.l.bf16 %v14_v0 }
   0x3   :  { %v34_v3 = vld [vmem:[%s69_s2] ss:$0 sm:$0xff] }
   0x4   :  { %v20_v4 = vmul.f32 %v33_v1, %v15_v2 }
   0x6   :  { %v25_v5 = vadd.f32 %v34_v3, %v20_v4 }
   0x8   :  { %v26_v6 = vmax.f32 %v25_v5, 0.0 }
   0xa   :  { %v27_v7 = vpack.c.bf16 %v26_v6, %v26_v6 }
   0xc   :  { %28 = vst [vmem:[%s70_s3] sm:$0xf] %v27_v7 }

// kernel: _lambda_.136
= control target key start
LH: loop header
LB: loop body
LE: loop exit
PB: predicated region body
PF: predicated region fallthrough
CT: control target
= control target key end

     0   :  { %s81_s0 = inlined_call_operand.vmem [shape: bf16[8,128], index: 0, kind: input, shape index: {}]   ;;  %s82_s1 = inlined_call_operand.vmem [shape: f32[1,128], index: 1, kind: input, shape index: {}]   ;;  %s83_s2 = inlined_call_operand.vmem [shape: f32[1,128], index: 2, kind: input, shape index: {}]   ;;  %s84_s3 = inlined_call_operand.vmem [shape: bf16[8,128], index: 3, kind: input, shape index: {}]   ;;  %s85_s4 = inlined_call_operand.vmem [shape: bf16[8,128], index: 4, kind: output, shape index: {}]  }
   0x1   :  { %v17_v0 = vld [vmem:[%s81_s0] sm:$0xf] }
   0x2   :  { %v39_v1 = vld [vmem:[%s82_s1] ss:$0 sm:$0xff]  ;;  %v18_v2 = vunpack.c.l.bf16 %v17_v0 }
   0x3   :  { %v40_v3 = vld [vmem:[%s83_s2] ss:$0 sm:$0xff] }
   0x4   :  { %v29_v4 = vld [vmem:[%s84_s3] sm:$0xf]  ;;  %v23_v5 = vmul.f32 %v39_v1, %v18_v2 }
   0x5   :  { %v30_v6 = vunpack.c.l.bf16 %v29_v4 }
   0x6   :  { %v28_v7 = vadd.f32 %v40_v3, %v23_v5 }
   0x8   :  { %v31_v8 = vadd.f32 %v30_v6, %v28_v7 }
   0xa   :  { %v32_v9 = vmax.f32 %v31_v8, 0.0 }
   0xc   :  { %v33_v10 = vpack.c.bf16 %v32_v9, %v32_v9 }
   0xe   :  { %34 = vst [vmem:[%s85_s4] sm:$0xf] %v33_v10 }

// kernel: _lambda_.131
= control target key start
LH: loop header
LB: loop body
LE: loop exit
PB: predicated region body
PF: predicated region fallthrough
CT: control target
= control target key end

     0   :  { %vm202_vm0 = vcmask 1040384   ;;  %s370_s1 = inlined_call_operand.vmem [shape: bf16[256,128], index: 1, kind: input, shape index: {}]   ;;  %s371_s0 = inlined_call_operand.vmem [shape: bf16[8,256], index: 0, kind: input, shape index: {}]   ;;  %s372_s2 = inlined_call_operand.vmem [shape: bf16[8,128], index: 2, kind: output, shape index: {0}]   ;;  %s373_s3 = inlined_call_operand.vmem [shape: f32[1,2,128], index: 3, kind: output, shape index: {1}]  }
   0x1   :  { %v284_v0 = vld [vmem:[%s370_s1 + $0x38] sm:$0xff]  ;;  %v283_v2 = vld [vmem:[%s370_s1 + $0x30] sm:$0xff]  ;;  %v282_v4 = vld [vmem:[%s370_s1 + $0x28] sm:$0xff] }
   0x2   :  { %v292_v1 = vld [vmem:[%s370_s1 + $0x78] sm:$0xff]  ;;  %155 = vmatpush.bf16.msra.mxu0 %v284_v0  ;;  %v291_v3 = vld [vmem:[%s370_s1 + $0x70] sm:$0xff]  ;;  %v290_v5 = vld [vmem:[%s370_s1 + $0x68] sm:$0xff] }
   0x3   :  { %168 = vmatpush.bf16.msra.mxu1 %v292_v1  ;;  %v281_v6 = vld [vmem:[%s370_s1 + $0x20] sm:$0xff]  ;;  %v280_v8 = vld [vmem:[%s370_s1 + $0x18] sm:$0xff]  ;;  %v279_v10 = vld [vmem:[%s370_s1 + $0x10] sm:$0xff] }
   0x4   :  { %v289_v7 = vld [vmem:[%s370_s1 + $0x60] sm:$0xff]  ;;  %v288_v9 = vld [vmem:[%s370_s1 + $0x58] sm:$0xff]  ;;  %v287_v11 = vld [vmem:[%s370_s1 + $0x50] sm:$0xff] }
   0x5   :  { %v278_v12 = vld [vmem:[%s370_s1 + $0x8] sm:$0xff]  ;;  %v19_v14 = vld [vmem:[%s371_s0] sm:$0xff] }
   0x6   :  { %156 = vmatpush.bf16.msra.mxu0 %v283_v2  ;;  %v286_v13 = vld [vmem:[%s370_s1 + $0x48] sm:$0xff]  ;;  %v53_v15 = vunpack.c.l.b16 %v19_v14  ;;  %v54_v16 = vunpack.c.h.b16 %v19_v14  ;;  %v277_v17 = vld [vmem:[%s370_s1] sm:$0xff] }
   0x7   :  { %169 = vmatpush.bf16.msra.mxu1 %v291_v3  ;;  %v285_v18 = vld [vmem:[%s370_s1 + $0x40] sm:$0xff] }
   0x8   :  { %v55_v19 = vpack.c.b16 %v53_v15, %v53_v15  ;;  %v56_v20 = vpack.c.b16 %v54_v16, %v54_v16 }
   0xa   :  { %157 = vmatpush.bf16.msra.mxu0 %v282_v4 }
   0xb   :  { %170 = vmatpush.bf16.msra.mxu1 %v290_v5 }
   0xe   :  { %158 = vmatpush.bf16.msra.mxu0 %v281_v6 }
   0xf   :  { %171 = vmatpush.bf16.msra.mxu1 %v289_v7 }
  0x12   :  { %159 = vmatpush.bf16.msra.mxu0 %v280_v8 }
  0x13   :  { %172 = vmatpush.bf16.msra.mxu1 %v288_v9 }
  0x16   :  { %160 = vmatpush.bf16.msra.mxu0 %v279_v10 }
  0x17   :  { %173 = vmatpush.bf16.msra.mxu1 %v287_v11 }
  0x1a   :  { %161 = vmatpush.bf16.msra.mxu0 %v278_v12 }
  0x1b   :  { %174 = vmatpush.bf16.msra.mxu1 %v286_v13 }
  0x1e   :  { %162 = vmatpush.bf16.msra.mxu0 %v277_v17 }
  0x1f   :  { %175 = vmatpush.bf16.msra.mxu1 %v285_v18 }
  0x21   :  { %163 = vmatmul.bf16.vlgmr.msra.gmra.mxu0 %v55_v19 }
  0x22   :  { %176 = vmatmul.bf16.vlgmr.msra.gmra.mxu1 %v56_v20 }
  0x9e   :  { %v164_v21 = vpop.f32.mrf.mxu0 }
  0x9f   :  { %v177_v22 = vpop.f32.mrf.mxu1 }
  0xa0   :  { %v178_v23 = vadd.f32 %v177_v22, %v164_v21 }
  0xa2   :  { %v187_v24 = vpack.c.bf16 %v178_v23, %v178_v23  ;;  %v189_v25 = vrot.slane %v178_v23, 4  ;;  %v195_v26 = vmul.f32 %v178_v23, %v178_v23 }
  0xa4   :  { %188 = vst [vmem:[%s372_s2] sm:$0xf] %v187_v24  ;;  %v190_v27 = vadd.f32 %v189_v25, %v178_v23  ;;  %v196_v28 = vrot.slane %v195_v26, 4 }
  0xa6   :  { %v191_v29 = vrot.slane %v190_v27, 2  ;;  %v197_v30 = vadd.f32 %v196_v28, %v195_v26  ;;  %v166_v31 = vpop.f32.mrf.mxu0 }
  0xa7   :  { %v179_v32 = vpop.f32.mrf.mxu1 }
  0xa8   :  { %v192_v33 = vadd.f32 %v191_v29, %v190_v27  ;;  %v198_v34 = vrot.slane %v197_v30, 2 }
  0xaa   :  { %v193_v35 = vrot.slane %v192_v33, 1  ;;  %v199_v36 = vadd.f32 %v198_v34, %v197_v30 }
  0xac   :  { %v200_v37 = vrot.slane %v199_v36, 1  ;;  %v194_v38 = vadd.f32 %v193_v35, %v192_v33 }
  0xae   :  { %v201_v39 = vadd.f32 %v200_v37, %v199_v36 }
  0xb0   :  { %v203_v40 = vsel %vm202_vm0, %v194_v38, %v201_v39 }
  0xb1   :  { %204 = vst [vmem:[%s373_s3] sm:$0x3] %v203_v40 }

// kernel: _lambda_.197
= control target key start
LH: loop header
LB: loop body
LE: loop exit
PB: predicated region body
PF: predicated region fallthrough
CT: control target
= control target key end

     0   :  { %vm181_vm0 = vcmask 1040384   ;;  %vm187_vm1 = vcmask 1041408   ;;  %s404_s1 = inlined_call_operand.vmem [shape: bf16[128,256], index: 1, kind: input, shape index: {}]   ;;  %s405_s0 = inlined_call_operand.vmem [shape: bf16[8,128], index: 0, kind: input, shape index: {}]   ;;  %s406_s2 = inlined_call_operand.vmem [shape: bf16[8,256], index: 2, kind: output, shape index: {0}]   ;;  %s407_s3 = inlined_call_operand.vmem [shape: f32[1,2,256], index: 3, kind: output, shape index: {1}]  }
   0x1   :  { %v257_v0 = vld [vmem:[%s404_s1 + $0x70] sm:$0xf]  ;;  %v278_v1 = vld [vmem:[%s404_s1 + $0x74] sm:$0xf0]  ;;  %v277_v2 = vld [vmem:[%s404_s1 + $0x74] sm:$0xf] }
   0x2   :  { %v258_v3 = vor.u32 %v278_v1, %v257_v0  ;;  %v259_v4 = vld [vmem:[%s404_s1 + $0x78] sm:$0xf0]  ;;  %v249_v5 = vld [vmem:[%s404_s1 + $0x60] sm:$0xf]  ;;  %v276_v6 = vld [vmem:[%s404_s1 + $0x64] sm:$0xf0] }
   0x3   :  { %v262_v7 = vor.u32 %v277_v2, %v259_v4  ;;  %v275_v8 = vld [vmem:[%s404_s1 + $0x64] sm:$0xf]  ;;  %v251_v9 = vld [vmem:[%s404_s1 + $0x68] sm:$0xf0]  ;;  %v250_v10 = vor.u32 %v276_v6, %v249_v5  ;;  %v241_v12 = vld [vmem:[%s404_s1 + $0x50] sm:$0xf] }
   0x4   :  { %118 = vmatpush.bf16.msra.mxu0 %v258_v3  ;;  %v254_v11 = vor.u32 %v275_v8, %v251_v9  ;;  %v274_v13 = vld [vmem:[%s404_s1 + $0x54] sm:$0xf0]  ;;  %v273_v14 = vld [vmem:[%s404_s1 + $0x54] sm:$0xf]  ;;  %v243_v15 = vld [vmem:[%s404_s1 + $0x58] sm:$0xf0] }
   0x5   :  { %131 = vmatpush.bf16.msra.mxu1 %v262_v7  ;;  %v242_v16 = vor.u32 %v274_v13, %v241_v12  ;;  %v246_v17 = vor.u32 %v273_v14, %v243_v15  ;;  %v233_v18 = vld [vmem:[%s404_s1 + $0x40] sm:$0xf]  ;;  %v272_v19 = vld [vmem:[%s404_s1 + $0x44] sm:$0xf0]  ;;  %v271_v20 = vld [vmem:[%s404_s1 + $0x44] sm:$0xf] }
   0x6   :  { %v235_v21 = vld [vmem:[%s404_s1 + $0x48] sm:$0xf0]  ;;  %v234_v22 = vor.u32 %v272_v19, %v233_v18  ;;  %v225_v24 = vld [vmem:[%s404_s1 + $0x30] sm:$0xf]  ;;  %v270_v25 = vld [vmem:[%s404_s1 + $0x34] sm:$0xf0] }
   0x7   :  { %v238_v23 = vor.u32 %v271_v20, %v235_v21  ;;  %v269_v26 = vld [vmem:[%s404_s1 + $0x34] sm:$0xf]  ;;  %v227_v27 = vld [vmem:[%s404_s1 + $0x38] sm:$0xf0]  ;;  %v226_v28 = vor.u32 %v270_v25, %v225_v24  ;;  %v217_v30 = vld [vmem:[%s404_s1 + $0x20] sm:$0xf] }
   0x8   :  { %119 = vmatpush.bf16.msra.mxu0 %v250_v10  ;;  %v230_v29 = vor.u32 %v269_v26, %v227_v27  ;;  %v268_v31 = vld [vmem:[%s404_s1 + $0x24] sm:$0xf0]  ;;  %v267_v32 = vld [vmem:[%s404_s1 + $0x24] sm:$0xf]  ;;  %v219_v33 = vld [vmem:[%s404_s1 + $0x28] sm:$0xf0] }
   0x9   :  { %132 = vmatpush.bf16.msra.mxu1 %v254_v11  ;;  %v218_v34 = vor.u32 %v268_v31, %v217_v30  ;;  %v222_v35 = vor.u32 %v267_v32, %v219_v33  ;;  %v209_v36 = vld [vmem:[%s404_s1 + $0x10] sm:$0xf]  ;;  %v266_v37 = vld [vmem:[%s404_s1 + $0x14] sm:$0xf0]  ;;  %v265_v38 = vld [vmem:[%s404_s1 + $0x14] sm:$0xf] }
   0xa   :  { %v211_v39 = vld [vmem:[%s404_s1 + $0x18] sm:$0xf0]  ;;  %v210_v40 = vor.u32 %v266_v37, %v209_v36  ;;  %v201_v42 = vld [vmem:[%s404_s1] sm:$0xf]  ;;  %v264_v43 = vld [vmem:[%s404_s1 + $0x4] sm:$0xf0] }
   0xb   :  { %v214_v41 = vor.u32 %v265_v38, %v211_v39  ;;  %v263_v44 = vld [vmem:[%s404_s1 + $0x4] sm:$0xf]  ;;  %v203_v45 = vld [vmem:[%s404_s1 + $0x8] sm:$0xf0]  ;;  %v202_v46 = vor.u32 %v264_v43, %v201_v42  ;;  %v21_v48 = vld [vmem:[%s405_s0] sm:$0xf] }
   0xc   :  { %120 = vmatpush.bf16.msra.mxu0 %v242_v16  ;;  %v206_v47 = vor.u32 %v263_v44, %v203_v45 }
   0xd   :  { %133 = vmatpush.bf16.msra.mxu1 %v246_v17 }
  0x10   :  { %121 = vmatpush.bf16.msra.mxu0 %v234_v22 }
  0x11   :  { %134 = vmatpush.bf16.msra.mxu1 %v238_v23 }
  0x14   :  { %122 = vmatpush.bf16.msra.mxu0 %v226_v28 }
  0x15   :  { %135 = vmatpush.bf16.msra.mxu1 %v230_v29 }
  0x18   :  { %123 = vmatpush.bf16.msra.mxu0 %v218_v34 }
  0x19   :  { %136 = vmatpush.bf16.msra.mxu1 %v222_v35 }
  0x1c   :  { %124 = vmatpush.bf16.msra.mxu0 %v210_v40 }
  0x1d   :  { %137 = vmatpush.bf16.msra.mxu1 %v214_v41 }
  0x20   :  { %125 = vmatpush.bf16.msra.mxu0 %v202_v46 }
  0x21   :  { %138 = vmatpush.bf16.msra.mxu1 %v206_v47 }
  0x23   :  { %126 = vmatmul.bf16.vlgmr.msra.gmra.mxu0 %v21_v48 }
  0x24   :  { %139 = vmatmul.bf16.vlgmr.msra.gmra.mxu1 %v21_v48 }
  0xa0   :  { %v127_v49 = vpop.f32.mrf.mxu0 }
  0xa1   :  { %v155_v50 = vrot.slane %v127_v49, 4  ;;  %v167_v51 = vmul.f32 %v127_v49, %v127_v49  ;;  %v140_v52 = vpop.f32.mrf.mxu1 }
  0xa2   :  { %v153_v53 = vpack.c.bf16 %v140_v52, %v127_v49  ;;  %v161_v54 = vrot.slane %v140_v52, 4  ;;  %v168_v55 = vmul.f32 %v140_v52, %v140_v52 }
  0xa3   :  { %v156_v56 = vadd.f32 %v155_v50, %v127_v49  ;;  %v169_v57 = vrot.slane %v167_v51, 4 }
  0xa4   :  { %154 = vst [vmem:[%s406_s2] sm:$0xff] %v153_v53  ;;  %v162_v58 = vadd.f32 %v161_v54, %v140_v52  ;;  %v175_v59 = vrot.slane %v168_v55, 4 }
  0xa5   :  { %v157_v60 = vrot.slane %v156_v56, 2  ;;  %v170_v61 = vadd.f32 %v169_v57, %v167_v51 }
  0xa6   :  { %v163_v62 = vrot.slane %v162_v58, 2  ;;  %v176_v63 = vadd.f32 %v175_v59, %v168_v55 }
  0xa7   :  { %v171_v0 = vrot.slane %v170_v61, 2  ;;  %v158_v1 = vadd.f32 %v157_v60, %v156_v56 }
  0xa8   :  { %v164_v2 = vadd.f32 %v163_v62, %v162_v58  ;;  %v177_v3 = vrot.slane %v176_v63, 2  ;;  %v129_v4 = vpop.f32.mrf.mxu0 }
  0xa9   :  { %v172_v5 = vadd.f32 %v171_v0, %v170_v61  ;;  %v142_v6 = vpop.f32.mrf.mxu1  ;;  %v159_v10 = vrot.slane %v158_v1, 1 }
  0xaa   :  { %v165_v7 = vrot.slane %v164_v2, 1  ;;  %v178_v8 = vadd.f32 %v177_v3, %v176_v63 }
  0xab   :  { %v173_v9 = vrot.slane %v172_v5, 1  ;;  %v160_v15 = vadd.f32 %v159_v10, %v158_v1 }
  0xac   :  { %v179_v11 = vrot.slane %v178_v8, 1  ;;  %v166_v13 = vadd.f32 %v165_v7, %v164_v2 }
  0xad   :  { %v174_v12 = vadd.f32 %v173_v9, %v172_v5 }
  0xae   :  { %v180_v14 = vadd.f32 %v179_v11, %v178_v8 }
  0xaf   :  { %v182_v18 = vsel %vm181_vm0, %v160_v15, %v174_v12 }
  0xb0   :  { %v183_v16 = vsel %vm181_vm0, %v166_v13, %v180_v14 }
  0xb1   :  { %v186_v17 = vrot.slane %v183_v16, 6 }
  0xb3   :  { %v188_v19 = vsel %vm187_vm1, %v182_v18, %v186_v17 }
  0xb4   :  { %190 = vst [vmem:[%s407_s3] sm:$0xf] %v188_v19 }

// kernel: _lambda_.157
= control target key start
LH: loop header
LB: loop body
LE: loop exit
PB: predicated region body
PF: predicated region fallthrough
CT: control target
= control target key end

     0   :  { %vm284_vm0 = vcmask 1040384   ;;  %s519_s1 = inlined_call_operand.vmem [shape: bf16[384,128], index: 1, kind: input, shape index: {}]   ;;  %s520_s0 = inlined_call_operand.vmem [shape: bf16[8,384], index: 0, kind: input, shape index: {}]   ;;  %s521_s2 = inlined_call_operand.vmem [shape: bf16[8,128], index: 2, kind: output, shape index: {0}]   ;;  %s522_s3 = inlined_call_operand.vmem [shape: f32[1,2,128], index: 3, kind: output, shape index: {1}]  }
   0x1   :  { %v398_v0 = vld [vmem:[%s519_s1 + $0x38] sm:$0xff]  ;;  %v397_v3 = vld [vmem:[%s519_s1 + $0x30] sm:$0xff]  ;;  %v396_v6 = vld [vmem:[%s519_s1 + $0x28] sm:$0xff] }
   0x2   :  { %v406_v1 = vld [vmem:[%s519_s1 + $0x78] sm:$0xff]  ;;  %224 = vmatpush.bf16.msra.mxu0 %v398_v0  ;;  %v405_v4 = vld [vmem:[%s519_s1 + $0x70] sm:$0xff]  ;;  %v404_v7 = vld [vmem:[%s519_s1 + $0x68] sm:$0xff] }
   0x3   :  { %v414_v2 = vld [vmem:[%s519_s1 + $0xb8] sm:$0xff]  ;;  %237 = vmatpush.bf16.msra.mxu1 %v406_v1  ;;  %v413_v5 = vld [vmem:[%s519_s1 + $0xb0] sm:$0xff]  ;;  %v412_v8 = vld [vmem:[%s519_s1 + $0xa8] sm:$0xff] }
   0x4   :  { %250 = vmatpush.bf16.msra.mxu2 %v414_v2  ;;  %v395_v9 = vld [vmem:[%s519_s1 + $0x20] sm:$0xff]  ;;  %v394_v12 = vld [vmem:[%s519_s1 + $0x18] sm:$0xff]  ;;  %v393_v15 = vld [vmem:[%s519_s1 + $0x10] sm:$0xff] }
   0x5   :  { %v403_v10 = vld [vmem:[%s519_s1 + $0x60] sm:$0xff]  ;;  %v402_v13 = vld [vmem:[%s519_s1 + $0x58] sm:$0xff]  ;;  %v401_v16 = vld [vmem:[%s519_s1 + $0x50] sm:$0xff] }
   0x6   :  { %225 = vmatpush.bf16.msra.mxu0 %v397_v3  ;;  %v411_v11 = vld [vmem:[%s519_s1 + $0xa0] sm:$0xff]  ;;  %v410_v14 = vld [vmem:[%s519_s1 + $0x98] sm:$0xff]  ;;  %v409_v17 = vld [vmem:[%s519_s1 + $0x90] sm:$0xff] }
   0x7   :  { %238 = vmatpush.bf16.msra.mxu1 %v405_v4  ;;  %v392_v18 = vld [vmem:[%s519_s1 + $0x8] sm:$0xff]  ;;  %v19_v20 = vld [vmem:[%s520_s0] sm:$0xff] }
   0x8   :  { %251 = vmatpush.bf16.msra.mxu2 %v413_v5  ;;  %v400_v19 = vld [vmem:[%s519_s1 + $0x48] sm:$0xff]  ;;  %v71_v23 = vunpack.c.l.b16 %v19_v20  ;;  %v72_v24 = vunpack.c.h.b16 %v19_v20  ;;  %v391_v25 = vld [vmem:[%s519_s1] sm:$0xff] }
   0x9   :  { %v408_v21 = vld [vmem:[%s519_s1 + $0x88] sm:$0xff]  ;;  %v399_v26 = vld [vmem:[%s519_s1 + $0x40] sm:$0xff] }
   0xa   :  { %226 = vmatpush.bf16.msra.mxu0 %v396_v6  ;;  %v20_v22 = vld [vmem:[%s520_s0 + $0x8] sm:$0xf]  ;;  %v407_v28 = vld [vmem:[%s519_s1 + $0x80] sm:$0xff]  ;;  %v74_v29 = vpack.c.b16 %v71_v23, %v71_v23  ;;  %v75_v30 = vpack.c.b16 %v72_v24, %v72_v24 }
   0xb   :  { %239 = vmatpush.bf16.msra.mxu1 %v404_v7  ;;  %v73_v27 = vunpack.c.l.b16 %v20_v22 }
   0xc   :  { %252 = vmatpush.bf16.msra.mxu2 %v412_v8 }
   0xd   :  { %v76_v31 = vpack.c.b16 %v73_v27, %v73_v27 }
   0xe   :  { %227 = vmatpush.bf16.msra.mxu0 %v395_v9 }
   0xf   :  { %240 = vmatpush.bf16.msra.mxu1 %v403_v10 }
  0x10   :  { %253 = vmatpush.bf16.msra.mxu2 %v411_v11 }
  0x12   :  { %228 = vmatpush.bf16.msra.mxu0 %v394_v12 }
  0x13   :  { %241 = vmatpush.bf16.msra.mxu1 %v402_v13 }
  0x14   :  { %254 = vmatpush.bf16.msra.mxu2 %v410_v14 }
  0x16   :  { %229 = vmatpush.bf16.msra.mxu0 %v393_v15 }
  0x17   :  { %242 = vmatpush.bf16.msra.mxu1 %v401_v16 }
  0x18   :  { %255 = vmatpush.bf16.msra.mxu2 %v409_v17 }
  0x1a   :  { %230 = vmatpush.bf16.msra.mxu0 %v392_v18 }
  0x1b   :  { %243 = vmatpush.bf16.msra.mxu1 %v400_v19 }
  0x1c   :  { %256 = vmatpush.bf16.msra.mxu2 %v408_v21 }
  0x1e   :  { %231 = vmatpush.bf16.msra.mxu0 %v391_v25 }
  0x1f   :  { %244 = vmatpush.bf16.msra.mxu1 %v399_v26 }
  0x20   :  { %257 = vmatpush.bf16.msra.mxu2 %v407_v28 }
  0x21   :  { %232 = vmatmul.bf16.vlgmr.msra.gmra.mxu0 %v74_v29 }
  0x22   :  { %245 = vmatmul.bf16.vlgmr.msra.gmra.mxu1 %v75_v30 }
  0x23   :  { %258 = vmatmul.bf16.vlgmr.msra.gmra.mxu2 %v76_v31 }
  0x9e   :  { %v233_v32 = vpop.f32.mrf.mxu0 }
  0x9f   :  { %v246_v33 = vpop.f32.mrf.mxu1 }
  0xa0   :  { %v247_v34 = vadd.f32 %v246_v33, %v233_v32 }
  0xa6   :  { %v259_v35 = vpop.f32.mrf.mxu2  ;;  %v235_v37 = vpop.f32.mrf.mxu0 }
  0xa7   :  { %v260_v36 = vadd.f32 %v259_v35, %v247_v34  ;;  %v248_v38 = vpop.f32.mrf.mxu1 }
  0xa9   :  { %v269_v39 = vpack.c.bf16 %v260_v36, %v260_v36  ;;  %v271_v40 = vrot.slane %v260_v36, 4  ;;  %v277_v41 = vmul.f32 %v260_v36, %v260_v36 }
  0xab   :  { %270 = vst [vmem:[%s521_s2] sm:$0xf] %v269_v39  ;;  %v272_v42 = vadd.f32 %v271_v40, %v260_v36  ;;  %v278_v43 = vrot.slane %v277_v41, 4 }
  0xad   :  { %v273_v44 = vrot.slane %v272_v42, 2  ;;  %v279_v45 = vadd.f32 %v278_v43, %v277_v41 }
  0xae   :  { %v261_v46 = vpop.f32.mrf.mxu2 }
  0xaf   :  { %v274_v47 = vadd.f32 %v273_v44, %v272_v42  ;;  %v280_v48 = vrot.slane %v279_v45, 2 }
  0xb1   :  { %v275_v49 = vrot.slane %v274_v47, 1  ;;  %v281_v50 = vadd.f32 %v280_v48, %v279_v45 }
  0xb3   :  { %v282_v51 = vrot.slane %v281_v50, 1  ;;  %v276_v52 = vadd.f32 %v275_v49, %v274_v47 }
  0xb5   :  { %v283_v53 = vadd.f32 %v282_v51, %v281_v50 }
  0xb7   :  { %v285_v54 = vsel %vm284_vm0, %v276_v52, %v283_v53 }
  0xb8   :  { %286 = vst [vmem:[%s522_s3] sm:$0x3] %v285_v54 }

// kernel: _lambda_.198
= control target key start
LH: loop header
LB: loop body
LE: loop exit
PB: predicated region body
PF: predicated region fallthrough
CT: control target
= control target key end

     0   :  { %s71_s0 = inlined_call_operand.vmem [shape: bf16[8,256], index: 0, kind: input, shape index: {}]   ;;  %s72_s1 = inlined_call_operand.vmem [shape: f32[1,256], index: 1, kind: input, shape index: {}]   ;;  %s73_s2 = inlined_call_operand.vmem [shape: f32[1,256], index: 2, kind: input, shape index: {}]   ;;  %s74_s3 = inlined_call_operand.vmem [shape: bf16[8,256], index: 3, kind: output, shape index: {}]  }
   0x1   :  { %v14_v0 = vld [vmem:[%s71_s0] sm:$0xff] }
   0x2   :  { %v17_v1 = vld [vmem:[%s72_s1] sm:$0x3]  ;;  %v15_v3 = vunpack.c.l.bf16 %v14_v0  ;;  %v16_v4 = vunpack.c.h.bf16 %v14_v0 }
   0x3   :  { %v25_v2 = vld [vmem:[%s73_s2] sm:$0x3]  ;;  %v19_v5 = vperm.slane %v17_v1, 0  ;;  %v20_v6 = vperm.slane %v17_v1, 1 }
   0x4   :  { %v27_v7 = vperm.slane %v25_v2, 0  ;;  %v28_v8 = vperm.slane %v25_v2, 1 }
   0x5   :  { %v23_v9 = vmul.f32 %v19_v5, %v15_v3  ;;  %v24_v10 = vmul.f32 %v20_v6, %v16_v4 }
   0x7   :  { %v31_v11 = vadd.f32 %v27_v7, %v23_v9  ;;  %v32_v12 = vadd.f32 %v28_v8, %v24_v10 }
   0x9   :  { %v33_v13 = vpack.c.bf16 %v32_v12, %v31_v11 }
   0xb   :  { %34 = vst [vmem:[%s74_s3] sm:$0xff] %v33_v13 }

// kernel: _lambda_.200
= control target key start
LH: loop header
LB: loop body
LE: loop exit
PB: predicated region body
PF: predicated region fallthrough
CT: control target
= control target key end

     0   :  { %s89_s0 = inlined_call_operand.vmem [shape: bf16[8,256], index: 0, kind: input, shape index: {}]   ;;  %s90_s1 = inlined_call_operand.vmem [shape: f32[1,256], index: 1, kind: input, shape index: {}]   ;;  %s91_s2 = inlined_call_operand.vmem [shape: f32[1,256], index: 2, kind: input, shape index: {}]   ;;  %s92_s3 = inlined_call_operand.vmem [shape: bf16[8,256], index: 3, kind: input, shape index: {}]   ;;  %s93_s4 = inlined_call_operand.vmem [shape: bf16[8,256], index: 4, kind: output, shape index: {}]  }
   0x1   :  { %v17_v0 = vld [vmem:[%s89_s0] sm:$0xff] }
   0x2   :  { %v20_v1 = vld [vmem:[%s90_s1] sm:$0x3]  ;;  %v18_v3 = vunpack.c.l.bf16 %v17_v0  ;;  %v19_v4 = vunpack.c.h.bf16 %v17_v0 }
   0x3   :  { %v28_v2 = vld [vmem:[%s91_s2] sm:$0x3]  ;;  %v22_v5 = vperm.slane %v20_v1, 0  ;;  %v23_v6 = vperm.slane %v20_v1, 1 }
   0x4   :  { %v36_v7 = vld [vmem:[%s92_s3] sm:$0xff]  ;;  %v30_v8 = vperm.slane %v28_v2, 0  ;;  %v31_v9 = vperm.slane %v28_v2, 1 }
   0x5   :  { %v26_v10 = vmul.f32 %v22_v5, %v18_v3  ;;  %v27_v11 = vmul.f32 %v23_v6, %v19_v4  ;;  %v37_v12 = vunpack.c.l.bf16 %v36_v7  ;;  %v38_v13 = vunpack.c.h.bf16 %v36_v7 }
   0x7   :  { %v34_v14 = vadd.f32 %v30_v8, %v26_v10  ;;  %v35_v15 = vadd.f32 %v31_v9, %v27_v11 }
   0x9   :  { %v39_v16 = vadd.f32 %v37_v12, %v34_v14  ;;  %v40_v17 = vadd.f32 %v38_v13, %v35_v15 }
   0xb   :  { %v41_v18 = vmax.f32 %v39_v16, 0.0  ;;  %v42_v19 = vmax.f32 %v40_v17, 0.0 }
   0xd   :  { %v43_v20 = vpack.c.bf16 %v42_v19, %v41_v18 }
   0xf   :  { %44 = vst [vmem:[%s93_s4] sm:$0xff] %v43_v20 }

// kernel: _lambda_.213
= control target key start
LH: loop header
LB: loop body
LE: loop exit
PB: predicated region body
PF: predicated region fallthrough
CT: control target
= control target key end

     0   :  { %s95_s0 = inlined_call_operand.vmem [shape: bf16[2,1,256], index: 0, kind: input, shape index: {}]   ;;  %s96_s1 = inlined_call_operand.hbm [shape: f32[2,256], index: 1, kind: output, shape index: {}]  }
   0x1   :  { %v9_v0 = vld [vmem:[%s95_s0] sm:$0x3]  ;;  %v10_v1 = vld [vmem:[%s95_s0 + $0x2] sm:$0x3] }
   0x2   :  { %v11_v2 = vunpack.c.l.bf16 %v9_v0  ;;  %v12_v3 = vunpack.c.l.bf16 %v10_v1 }
   0x3   :  { %6 = vsyncpa [#allocation3], 0  ;;  %vm22_vm0 = vcmask 1041409   ;;  %vm24_vm1 = vcmask 1043459   ;;  %vm26_vm2 = vcmask 1045509   ;;  %s75_s10 = smov [#allocation2]  }
   0x4   :  { %v21_v4 = vrot.slane %v12_v3, 7  ;;  %s37_s11 = sshll.u32 %s75_s10, 4  ;;  %s39_s14 = sshll.u32 %s96_s1, 4  ;;  %vm28_vm3 = vcmask 1047559   ;;  %s38_s11 = int_to_ptr.vmem [resolvable:$true] %s37_s11  ;;  %s40_s14 = int_to_ptr.hbm [resolvable:$true] %s39_s14 }
   0x6   :  { %v23_v5 = vsel %vm22_vm0, %v21_v4, %v11_v2 }
   0x7   :  { %v25_v6 = vsel %vm24_vm1, %v21_v4, %v23_v5 }
   0x8   :  { %v27_v7 = vsel %vm26_vm2, %v21_v4, %v25_v6 }
   0x9   :  { %v29_v8 = vsel %vm28_vm3, %v21_v4, %v27_v7 }
   0xa   :  { %31 = vst [vmem:[#allocation2] sm:$0xf] %v29_v8 }
   0xb   :  { %42 = dma.vmem_to_hbm [thread:$0]  %s38_s11, 64, %s40_s14, [#allocation3]  }
   0xc   :  { %73 = dma.done.wait [#allocation3], 64  }
   0xd   :  { %74 = vsyncadd [#allocation3], 4294967232 }
   0xe   :  { %47 = vsyncpa [#allocation3], 1 }

// kernel: _lambda_.195
= control target key start
LH: loop header
LB: loop body
LE: loop exit
PB: predicated region body
PF: predicated region fallthrough
CT: control target
= control target key end

     0   :  { %vm446_vm0 = vcmask 1040384   ;;  %s812_s1 = inlined_call_operand.vmem [shape: bf16[640,128], index: 1, kind: input, shape index: {}]   ;;  %s813_s0 = inlined_call_operand.vmem [shape: bf16[8,640], index: 0, kind: input, shape index: {}]   ;;  %s814_s2 = inlined_call_operand.vmem [shape: bf16[8,128], index: 2, kind: output, shape index: {0}]   ;;  %s815_s3 = inlined_call_operand.vmem [shape: f32[1,2,128], index: 3, kind: output, shape index: {1}]  }
   0x1   :  { %v624_v0 = vld [vmem:[%s812_s1 + $0x38] sm:$0xff]  ;;  %v623_v3 = vld [vmem:[%s812_s1 + $0x30] sm:$0xff]  ;;  %v622_v8 = vld [vmem:[%s812_s1 + $0x28] sm:$0xff] }
   0x2   :  { %v640_v1 = vld [vmem:[%s812_s1 + $0xb8] sm:$0xff]  ;;  %360 = vmatpush.bf16.msra.mxu0 %v624_v0  ;;  %v639_v5 = vld [vmem:[%s812_s1 + $0xb0] sm:$0xff]  ;;  %v638_v9 = vld [vmem:[%s812_s1 + $0xa8] sm:$0xff] }
   0x3   :  { %v648_v2 = vld [vmem:[%s812_s1 + $0xf8] sm:$0xff]  ;;  %386 = vmatpush.bf16.msra.mxu2 %v640_v1  ;;  %v647_v6 = vld [vmem:[%s812_s1 + $0xf0] sm:$0xff]  ;;  %v646_v10 = vld [vmem:[%s812_s1 + $0xe8] sm:$0xff] }
   0x4   :  { %v632_v4 = vld [vmem:[%s812_s1 + $0x78] sm:$0xff]  ;;  %399 = vmatpush.bf16.msra.mxu3 %v648_v2  ;;  %v631_v7 = vld [vmem:[%s812_s1 + $0x70] sm:$0xff]  ;;  %v630_v11 = vld [vmem:[%s812_s1 + $0x68] sm:$0xff] }
   0x5   :  { %373 = vmatpush.bf16.msra.mxu1 %v632_v4  ;;  %v621_v12 = vld [vmem:[%s812_s1 + $0x20] sm:$0xff]  ;;  %v620_v16 = vld [vmem:[%s812_s1 + $0x18] sm:$0xff]  ;;  %v619_v20 = vld [vmem:[%s812_s1 + $0x10] sm:$0xff] }
   0x6   :  { %361 = vmatpush.bf16.msra.mxu0 %v623_v3  ;;  %v637_v13 = vld [vmem:[%s812_s1 + $0xa0] sm:$0xff]  ;;  %v636_v17 = vld [vmem:[%s812_s1 + $0x98] sm:$0xff]  ;;  %v635_v21 = vld [vmem:[%s812_s1 + $0x90] sm:$0xff] }
   0x7   :  { %387 = vmatpush.bf16.msra.mxu2 %v639_v5  ;;  %v645_v14 = vld [vmem:[%s812_s1 + $0xe0] sm:$0xff]  ;;  %v644_v18 = vld [vmem:[%s812_s1 + $0xd8] sm:$0xff]  ;;  %v643_v22 = vld [vmem:[%s812_s1 + $0xd0] sm:$0xff] }
   0x8   :  { %400 = vmatpush.bf16.msra.mxu3 %v647_v6  ;;  %v629_v15 = vld [vmem:[%s812_s1 + $0x60] sm:$0xff]  ;;  %v628_v19 = vld [vmem:[%s812_s1 + $0x58] sm:$0xff]  ;;  %v627_v23 = vld [vmem:[%s812_s1 + $0x50] sm:$0xff] }
   0x9   :  { %374 = vmatpush.bf16.msra.mxu1 %v631_v7  ;;  %v618_v24 = vld [vmem:[%s812_s1 + $0x8] sm:$0xff]  ;;  %v19_v25 = vld [vmem:[%s813_s0] sm:$0xff]  ;;  %v656_v33 = vld [vmem:[%s812_s1 + $0x138] sm:$0xff] }
   0xa   :  { %362 = vmatpush.bf16.msra.mxu0 %v622_v8  ;;  %v634_v26 = vld [vmem:[%s812_s1 + $0x88] sm:$0xff]  ;;  %v105_v30 = vunpack.c.l.b16 %v19_v25  ;;  %v617_v31 = vld [vmem:[%s812_s1] sm:$0xff]  ;;  %v106_v38 = vunpack.c.h.b16 %v19_v25  ;;  %v655_v41 = vld [vmem:[%s812_s1 + $0x130] sm:$0xff] }
   0xb   :  { %388 = vmatpush.bf16.msra.mxu2 %v638_v9  ;;  %v642_v27 = vld [vmem:[%s812_s1 + $0xc8] sm:$0xff]  ;;  %v633_v34 = vld [vmem:[%s812_s1 + $0x80] sm:$0xff]  ;;  %v652_v46 = vld [vmem:[%s812_s1 + $0x118] sm:$0xff] }
   0xc   :  { %401 = vmatpush.bf16.msra.mxu3 %v646_v10  ;;  %v20_v28 = vld [vmem:[%s813_s0 + $0x8] sm:$0xff]  ;;  %v641_v36 = vld [vmem:[%s812_s1 + $0xc0] sm:$0xff]  ;;  %v110_v39 = vpack.c.b16 %v105_v30, %v105_v30  ;;  %v111_v43 = vpack.c.b16 %v106_v38, %v106_v38  ;;  %v651_v47 = vld [vmem:[%s812_s1 + $0x110] sm:$0xff] }
   0xd   :  { %375 = vmatpush.bf16.msra.mxu1 %v630_v11  ;;  %v626_v29 = vld [vmem:[%s812_s1 + $0x48] sm:$0xff]  ;;  %v107_v32 = vunpack.c.l.b16 %v20_v28  ;;  %v108_v35 = vunpack.c.h.b16 %v20_v28  ;;  %v625_v37 = vld [vmem:[%s812_s1 + $0x40] sm:$0xff]  ;;  %v21_v49 = vld [vmem:[%s813_s0 + $0x10] sm:$0xf] }
   0xe   :  { %363 = vmatpush.bf16.msra.mxu0 %v621_v12  ;;  %v654_v44 = vld [vmem:[%s812_s1 + $0x128] sm:$0xff]  ;;  %v653_v45 = vld [vmem:[%s812_s1 + $0x120] sm:$0xff]  ;;  %v109_v50 = vunpack.c.l.b16 %v21_v49 }
   0xf   :  { %389 = vmatpush.bf16.msra.mxu2 %v637_v13  ;;  %v112_v40 = vpack.c.b16 %v107_v32, %v107_v32  ;;  %v113_v42 = vpack.c.b16 %v108_v35, %v108_v35  ;;  %v650_v48 = vld [vmem:[%s812_s1 + $0x108] sm:$0xff]  ;;  %v649_v51 = vld [vmem:[%s812_s1 + $0x100] sm:$0xff] }
  0x10   :  { %402 = vmatpush.bf16.msra.mxu3 %v645_v14  ;;  %v114_v52 = vpack.c.b16 %v109_v50, %v109_v50 }
  0x11   :  { %376 = vmatpush.bf16.msra.mxu1 %v629_v15 }
  0x12   :  { %364 = vmatpush.bf16.msra.mxu0 %v620_v16 }
  0x13   :  { %390 = vmatpush.bf16.msra.mxu2 %v636_v17 }
  0x14   :  { %403 = vmatpush.bf16.msra.mxu3 %v644_v18 }
  0x15   :  { %377 = vmatpush.bf16.msra.mxu1 %v628_v19 }
  0x16   :  { %365 = vmatpush.bf16.msra.mxu0 %v619_v20 }
  0x17   :  { %391 = vmatpush.bf16.msra.mxu2 %v635_v21 }
  0x18   :  { %404 = vmatpush.bf16.msra.mxu3 %v643_v22 }
  0x19   :  { %378 = vmatpush.bf16.msra.mxu1 %v627_v23 }
  0x1a   :  { %366 = vmatpush.bf16.msra.mxu0 %v618_v24 }
  0x1b   :  { %392 = vmatpush.bf16.msra.mxu2 %v634_v26 }
  0x1c   :  { %405 = vmatpush.bf16.msra.mxu3 %v642_v27 }
  0x1d   :  { %379 = vmatpush.bf16.msra.mxu1 %v626_v29 }
  0x1e   :  { %367 = vmatpush.bf16.msra.mxu0 %v617_v31 }
  0x1f   :  { %393 = vmatpush.bf16.msra.mxu2 %v633_v34 }
  0x20   :  { %406 = vmatpush.bf16.msra.mxu3 %v641_v36 }
  0x21   :  { %380 = vmatpush.bf16.msra.mxu1 %v625_v37  ;;  %368 = vmatmul.bf16.vlgmr.msra.gmra.mxu0 %v110_v39 }
  0x22   :  { %412 = vmatpush.bf16.msrb.mxu0 %v656_v33  ;;  %394 = vmatmul.bf16.vlgmr.msra.gmra.mxu2 %v112_v40 }
  0x23   :  { %407 = vmatmul.bf16.vlgmr.msra.gmra.mxu3 %v113_v42 }
  0x24   :  { %381 = vmatmul.bf16.vlgmr.msra.gmra.mxu1 %v111_v43 }
  0x26   :  { %413 = vmatpush.bf16.msrb.mxu0 %v655_v41 }
  0x2a   :  { %414 = vmatpush.bf16.msrb.mxu0 %v654_v44 }
  0x2e   :  { %415 = vmatpush.bf16.msrb.mxu0 %v653_v45 }
  0x32   :  { %416 = vmatpush.bf16.msrb.mxu0 %v652_v46 }
  0x36   :  { %417 = vmatpush.bf16.msrb.mxu0 %v651_v47 }
  0x3a   :  { %418 = vmatpush.bf16.msrb.mxu0 %v650_v48 }
  0x3e   :  { %419 = vmatpush.bf16.msrb.mxu0 %v649_v51 }
  0x41   :  { %420 = vmatmul.bf16.vlgmr.msrb.gmra.mxu0 %v114_v52 }
  0x9e   :  { %v369_v53 = vpop.f32.mrf.mxu0 }
  0xa1   :  { %v382_v54 = vpop.f32.mrf.mxu1 }
  0xa2   :  { %v383_v61 = vadd.f32 %v382_v54, %v369_v53 }
  0xa5   :  { %v395_v55 = vpop.f32.mrf.mxu2 }
  0xa6   :  { %v371_v56 = vpop.f32.mrf.mxu0  ;;  %v408_v57 = vpop.f32.mrf.mxu3  ;;  %v396_v62 = vadd.f32 %v395_v55, %v383_v61 }
  0xa8   :  { %v409_v63 = vadd.f32 %v408_v57, %v396_v62 }
  0xa9   :  { %v384_v58 = vpop.f32.mrf.mxu1 }
  0xad   :  { %v397_v59 = vpop.f32.mrf.mxu2 }
  0xae   :  { %v410_v60 = vpop.f32.mrf.mxu3 }
  0xbe   :  { %v421_v0 = vpop.f32.mrf.mxu0 }
  0xbf   :  { %v422_v1 = vadd.f32 %v421_v0, %v409_v63 }
  0xc1   :  { %v431_v2 = vpack.c.bf16 %v422_v1, %v422_v1  ;;  %v433_v3 = vrot.slane %v422_v1, 4  ;;  %v439_v4 = vmul.f32 %v422_v1, %v422_v1 }
  0xc3   :  { %432 = vst [vmem:[%s814_s2] sm:$0xf] %v431_v2  ;;  %v434_v5 = vadd.f32 %v433_v3, %v422_v1  ;;  %v440_v6 = vrot.slane %v439_v4, 4 }
  0xc5   :  { %v435_v7 = vrot.slane %v434_v5, 2  ;;  %v441_v8 = vadd.f32 %v440_v6, %v439_v4 }
  0xc6   :  { %v423_v9 = vpop.f32.mrf.mxu0 }
  0xc7   :  { %v436_v10 = vadd.f32 %v435_v7, %v434_v5  ;;  %v442_v11 = vrot.slane %v441_v8, 2 }
  0xc9   :  { %v437_v12 = vrot.slane %v436_v10, 1  ;;  %v443_v13 = vadd.f32 %v442_v11, %v441_v8 }
  0xcb   :  { %v444_v14 = vrot.slane %v443_v13, 1  ;;  %v438_v15 = vadd.f32 %v437_v12, %v436_v10 }
  0xcd   :  { %v445_v16 = vadd.f32 %v444_v14, %v443_v13 }
  0xcf   :  { %v447_v17 = vsel %vm446_vm0, %v438_v15, %v445_v16 }
  0xd0   :  { %448 = vst [vmem:[%s815_s3] sm:$0x3] %v447_v17 }

</bundles_post_ra>
